<compile_context>
chip_gen: v7x
topology: tpu7x:2x2x1
jax: 0.10.0
libtpu: 0.0.40
codegen_flags: <defaults>
</compile_context>

<pallas_src>
import functools
import math

import jax
import jax.numpy as jnp
import numpy as np
from jax.experimental import pallas as pl
from jax.experimental.pallas import tpu as pltpu


def _layernorm(x, g, b, eps=1e-5):
    mu = jnp.mean(x, axis=-1, keepdims=True)
    var = jnp.mean((x - mu) ** 2, axis=-1, keepdims=True)
    return (x - mu) * jax.lax.rsqrt(var + eps) * g + b


def _gelu_exact(x):
    # PyTorch nn.GELU() default = exact erf-based GELU.
    return 0.5 * x * (1.0 + jax.lax.erf(x / math.sqrt(2.0)))


def _decoder_kernel(
    # data tiles (bf16)
    q_ref, kv_ref,
    # packed params
    lnp_kv, lnp_q, b_kv, b3, b1, bp,
    wkv, wq, wo, w1, w2, wp,
    # output (bf16)
    out_ref,
    # scratch (per batch-tile K / V, bf16)
    k_scr, v_scr,
    *, scale, dqk,
):
    n_idx = pl.program_id(1)
    Bt, M, Dkv = kv_ref.shape
    _, tn, Dq = q_ref.shape
    f32, bf16 = jnp.float32, jnp.bfloat16

    # ---- per batch-tile K / V: one fused MXU pass, reused for every query tile ----
    @pl.when(n_idx == 0)
    def _():
        kv = kv_ref[...].astype(f32).reshape(Bt * M, Dkv)
        kv_n = _layernorm(kv, lnp_kv[0], lnp_kv[1]).astype(bf16)
        # fused K|V projection: one pass over the same LHS, 2*Dqk output lanes
        KV = jnp.dot(kv_n, wkv[...], preferred_element_type=f32) + b_kv[0]
        # NOTE: K is kept (Bt, M, Dqk); the 'bnd,bmd' contraction below maps
        # directly onto the MXU transposed-operand path (canonical flash form),
        # so no explicit per-tile K transpose is required.
        k_scr[...] = KV[:, :dqk].reshape(Bt, M, dqk).astype(bf16)
        v_scr[...] = KV[:, dqk:].reshape(Bt, M, -1).astype(bf16)

    # ---- per (batch-tile, query-tile) work ----
    q = q_ref[...].astype(f32).reshape(Bt * tn, Dq)
    q_n = _layernorm(q, lnp_q[0], lnp_q[1]).astype(bf16)
    Q = jnp.dot(q_n, wq[...], preferred_element_type=f32) + b3[0]      # (Bt*tn, Dqk)
    Qh = (Q * scale).reshape(Bt, tn, dqk).astype(bf16)

    # scores: contract last dims of Q and K (A @ B^T form, MXU-native)
    scores = jnp.einsum("bnd,bmd->bnm", Qh, k_scr[...],
                        preferred_element_type=f32)                    # (Bt, tn, M)
    scores = scores - jnp.max(scores, axis=-1, keepdims=True)
    p = jnp.exp(scores)
    attn = p * pl.reciprocal(jnp.sum(p, axis=-1, keepdims=True), approx=True)

    weighted = jnp.einsum("bnm,bmd->bnd", attn.astype(bf16), v_scr[...],
                          preferred_element_type=f32)                  # (Bt, tn, Dv)
    weighted = weighted.reshape(Bt * tn, -1).astype(bf16)
    attn_out = jnp.dot(weighted, wo[...], preferred_element_type=f32) + b3[1]

    # use_query_residual = False
    x = attn_out

    # ---- FeedForward with residual ----
    xn = _layernorm(x, lnp_q[2], lnp_q[3]).astype(bf16)
    h = jnp.dot(xn, w1[...], preferred_element_type=f32) + b1[0]
    h = _gelu_exact(h).astype(bf16)
    mlp_out = jnp.dot(h, w2[...], preferred_element_type=f32) + b3[2]
    x = x + mlp_out

    # ---- final projection ----
    out = jnp.dot(x.astype(bf16), wp[...], preferred_element_type=f32) + bp[0]
    out_ref[...] = out.reshape(Bt, tn, -1).astype(out_ref.dtype)


def _divisor_tile(total, cap, mult=1):
    """Largest divisor of `total` that is <= cap and a multiple of `mult`."""
    cap = max(1, min(cap, total))
    for t in range(cap, 0, -1):
        if total % t == 0 and t % mult == 0:
            return t
    return total  # full extent is always a legal block size


def _vmem_limit_bytes():
    """Generation-dependent VMEM scoped limit."""
    cap = None
    try:
        cap = pltpu.get_tpu_info().vmem_capacity_bytes
    except Exception:
        cap = None
    if cap is not None and cap <= 64 * 1024 * 1024:
        return 40 * 1024 * 1024      # v7x: 64 MiB physical, leave headroom
    return 80 * 1024 * 1024          # v5e / v6e: 128 MiB physical


def _pack_params(params, P_pad):
    f32, bf16 = jnp.float32, jnp.bfloat16
    lnp_kv = jnp.concatenate(
        [params["ln_kv_g"], params["ln_kv_b"]], axis=0).astype(f32)          # (2, Dkv)
    lnp_q = jnp.concatenate(
        [params["ln_q_g"], params["ln_q_b"],
         params["ln_x_g"], params["ln_x_b"]], axis=0).astype(f32)            # (4, Dq)
    # fused K|V projection weights / biases
    wkv = jnp.concatenate([params["wk"], params["wv"]], axis=1).astype(bf16)  # (Dkv, 2*Dqk)
    b_kv = jnp.concatenate([params["bk"], params["bv"]], axis=1).astype(f32)  # (1, 2*Dqk)
    b3 = jnp.concatenate(
        [params["bq"], params["bo"], params["b2"]], axis=0).astype(f32)      # (3, Dq)
    P = params["wp"].shape[1]
    wp = jnp.pad(params["wp"], ((0, 0), (0, P_pad - P))).astype(bf16)
    bp = jnp.pad(params["bp"], ((0, 0), (0, P_pad - P))).astype(f32)
    return [
        lnp_kv, lnp_q, b_kv, b3, params["b1"].astype(f32), bp,
        wkv, params["wq"].astype(bf16), params["wo"].astype(bf16),
        params["w1"].astype(bf16), params["w2"].astype(bf16), wp,
    ]


def perceiver_decoder(query, latents, params, *, block_b=8, block_n=512):
    """query: (B, N, Dq) f32, latents: (B, M, Dkv) f32 -> (B, N, P) f32."""
    B, N, Dq = query.shape
    _, M, Dkv = latents.shape
    P = params["wp"].shape[1]
    Dqk = params["wq"].shape[1]
    # default PerceiverDecoder config: qk_out = v_out = attention output = query_dim
    assert params["wk"].shape[1] == Dqk == Dq and params["wv"].shape[1] == Dq, (
        "packed layout assumes qk_out_dim == v_out_dim == query_dim")
    scale = float(Dqk ** -0.5)                      # num_heads = 1

    # Output lane padding only when waste <= 2x; tiny projection dims keep
    # masked stores instead of writing 8x padded bytes.
    if P % 128 == 0 or P < 64:
        P_pad = P
    else:
        P_pad = ((P + 127) // 128) * 128

    # Pad N to a multiple of 8 so the query tile satisfies the sublane constraint.
    N_pad = ((N + 7) // 8) * 8
    if N_pad != N:
        query = jnp.pad(query, ((0, 0), (0, N_pad - N), (0, 0)))

    # bf16 inputs: halves HBM DMA traffic; LN math stays f32 inside the kernel.
    query_bf = query.astype(jnp.bfloat16)
    latents_bf = latents.astype(jnp.bfloat16)

    vmem_limit = _vmem_limit_bytes()

    # Batch tile: keep >= 2 parallel grid steps when possible (v7x megacore).
    Bt = _divisor_tile(B, min(block_b, max(1, B // 2)))
    # Query tile: bound the (Bt, tn, M) f32 softmax temporaries (~3 live copies).
    score_budget = vmem_limit // 4
    cap_scores = max(8, (score_budget // max(1, Bt * M * 4 * 3)) // 8 * 8)
    tn = _divisor_tile(N_pad, min(block_n, cap_scores), mult=8)
    grid = (B // Bt, N_pad // tn)

    packed = _pack_params(params, P_pad)
    kernel = functools.partial(_decoder_kernel, scale=scale, dqk=Dqk)

    def run(const_kw):
        in_specs = [
            pl.BlockSpec((Bt, tn, Dq), lambda b, n: (b, n, 0)),
            # latents block is constant across the n axis (read only at n==0):
            # single-buffer it to halve its VMEM footprint.
            pl.BlockSpec((Bt, M, Dkv), lambda b, n: (b, 0, 0), **const_kw),
        ] + [pl.BlockSpec(w.shape, lambda b, n: (0, 0), **const_kw) for w in packed]
        out_spec = pl.BlockSpec((Bt, tn, P_pad), lambda b, n: (b, n, 0))
        out = pl.pallas_call(
            kernel,
            out_shape=jax.ShapeDtypeStruct((B, N_pad, P_pad), jnp.bfloat16),
            grid_spec=pltpu.PrefetchScalarGridSpec(
                num_scalar_prefetch=0,
                grid=grid,
                in_specs=in_specs,
                out_specs=out_spec,
                scratch_shapes=[
                    pltpu.VMEM((Bt, M, Dqk), jnp.bfloat16),   # K
                    pltpu.VMEM((Bt, M, Dq), jnp.bfloat16),    # V
                ],
            ),
            compiler_params=pltpu.CompilerParams(
                dimension_semantics=("parallel", "arbitrary"),
                vmem_limit_bytes=vmem_limit,
            ),
        )(query_bf, latents_bf, *packed)
        return jax.block_until_ready(out)

    try:
        # Constant-index operands single-buffered (double buffering is pure waste).
        out_padded = run(dict(pipeline_mode=pl.Buffered(1)))
    except Exception:
        # Fallback: default (double-buffered) specs.
        out_padded = run({})

    return out_padded[:, :N, :P].astype(jnp.float32)


def perceiver_decoder_ref(query, latents, params):
    """Pure-JAX f32 reference mirroring the PyTorch forward (eval, no mask)."""
    def ln(x, g, b):
        return _layernorm(x, g[0], b[0])

    kv_n = ln(latents, params["ln_kv_g"], params["ln_kv_b"])
    q_n = ln(query, params["ln_q_g"], params["ln_q_b"])
    K = kv_n @ params["wk"] + params["bk"][0]
    Q = q_n @ params["wq"] + params["bq"][0]
    V = kv_n @ params["wv"] + params["bv"][0]
    scale = params["wq"].shape[1] ** -0.5
    scores = jnp.einsum("bnd,bmd->bnm", Q, K) * scale
    attn = jax.nn.softmax(scores, axis=-1)
    weighted = jnp.einsum("bnm,bmd->bnd", attn, V)
    attn_out = weighted @ params["wo"] + params["bo"][0]
    x = attn_out
    xn = ln(x, params["ln_x_g"], params["ln_x_b"])
    h = _gelu_exact(xn @ params["w1"] + params["b1"][0])
    x = x + (h @ params["w2"] + params["b2"][0])
    return x @ params["wp"] + params["bp"][0]


def init_params(key, latent_dim, query_dim, widening_factor, projection_dim):
    qk_out = query_dim
    v_out = query_dim
    hidden = query_dim * widening_factor
    shapes = {
        "ln_kv_g": (1, latent_dim), "ln_kv_b": (1, latent_dim),
        "ln_q_g": (1, query_dim), "ln_q_b": (1, query_dim),
        "wk": (latent_dim, qk_out), "bk": (1, qk_out),
        "wq": (query_dim, qk_out), "bq": (1, qk_out),
        "wv": (latent_dim, v_out), "bv": (1, v_out),
        "wo": (v_out, query_dim), "bo": (1, query_dim),
        "ln_x_g": (1, query_dim), "ln_x_b": (1, query_dim),
        "w1": (query_dim, hidden), "b1": (1, hidden),
        "w2": (hidden, query_dim), "b2": (1, query_dim),
        "wp": (query_dim, projection_dim), "bp": (1, projection_dim),
    }
    params = {}
    keys = jax.random.split(key, len(shapes))
    for k, (name, shape) in zip(keys, shapes.items()):
        if name.startswith("ln_") and name.endswith("_g"):
            params[name] = jnp.ones(shape, jnp.float32)
        elif name.startswith("ln_") and name.endswith("_b"):
            params[name] = jnp.zeros(shape, jnp.float32)
        elif name.startswith("b"):
            params[name] = 0.01 * jax.random.normal(k, shape, jnp.float32)
        else:
            fan_in = shape[0]
            params[name] = jax.random.normal(k, shape, jnp.float32) / math.sqrt(fan_in)
    return params


if __name__ == "__main__":
    B, N, M = 2, 8, 16          # batch, query seq, latent seq
    query_dim, latent_dim = 32, 32
    widening_factor = 1
    projection_dim = 16

    key = jax.random.PRNGKey(0)
    k_q, k_l, k_p = jax.random.split(key, 3)
    query = jax.random.normal(k_q, (B, N, query_dim), jnp.float32)
    latents = jax.random.normal(k_l, (B, M, latent_dim), jnp.float32)
    params = init_params(k_p, latent_dim, query_dim, widening_factor, projection_dim)

    out = perceiver_decoder(query, latents, params)
    out = jax.block_until_ready(out)

    ref = perceiver_decoder_ref(query, latents, params)
    # bf16 inputs / MXU operands / output store -> looser agreement vs. pure-f32 ref.
    np.testing.assert_allclose(np.asarray(out), np.asarray(ref), rtol=6e-2, atol=6e-2)

    print("KERNEL_OK")
</pallas_src>

<mosaic_0001>
module attributes {stable_mosaic.version = 11 : i64} {
  func.func @_decoder_kernel(%arg0: i32, %arg1: i32, %arg2: memref<1x8x32xbf16, #tpu.memory_space<vmem>>, %arg3: memref<1x16x32xbf16, #tpu.memory_space<vmem>>, %arg4: memref<2x32xf32, #tpu.memory_space<vmem>>, %arg5: memref<4x32xf32, #tpu.memory_space<vmem>>, %arg6: memref<1x64xf32, #tpu.memory_space<vmem>>, %arg7: memref<3x32xf32, #tpu.memory_space<vmem>>, %arg8: memref<1x32xf32, #tpu.memory_space<vmem>>, %arg9: memref<1x16xf32, #tpu.memory_space<vmem>>, %arg10: memref<32x64xbf16, #tpu.memory_space<vmem>>, %arg11: memref<32x32xbf16, #tpu.memory_space<vmem>>, %arg12: memref<32x32xbf16, #tpu.memory_space<vmem>>, %arg13: memref<32x32xbf16, #tpu.memory_space<vmem>>, %arg14: memref<32x32xbf16, #tpu.memory_space<vmem>>, %arg15: memref<32x16xbf16, #tpu.memory_space<vmem>>, %arg16: memref<1x8x16xbf16, #tpu.memory_space<vmem>>, %arg17: memref<1x16x32xbf16, #tpu.memory_space<vmem>>, %arg18: memref<1x16x32xbf16, #tpu.memory_space<vmem>>) attributes {dimension_semantics = [#tpu.dimension_semantics<parallel>, #tpu.dimension_semantics<arbitrary>], iteration_bounds = array<i64: 2, 1>, scalar_prefetch = 0 : i64, scratch_operands = 2 : i64, tpu.core_type = #tpu.core_type<tc>, window_params = [{transform_indices = @transform_0, window_bounds = array<i64: 1, 8, 32>}, {pipeline_mode = #tpu.pipeline_mode<synchronous>, transform_indices = @transform_1, window_bounds = array<i64: 1, 16, 32>}, {pipeline_mode = #tpu.pipeline_mode<synchronous>, transform_indices = @transform_2, window_bounds = array<i64: 2, 32>}, {pipeline_mode = #tpu.pipeline_mode<synchronous>, transform_indices = @transform_3, window_bounds = array<i64: 4, 32>}, {pipeline_mode = #tpu.pipeline_mode<synchronous>, transform_indices = @transform_4, window_bounds = array<i64: 1, 64>}, {pipeline_mode = #tpu.pipeline_mode<synchronous>, transform_indices = @transform_5, window_bounds = array<i64: 3, 32>}, {pipeline_mode = #tpu.pipeline_mode<synchronous>, transform_indices = @transform_6, window_bounds = array<i64: 1, 32>}, {pipeline_mode = #tpu.pipeline_mode<synchronous>, transform_indices = @transform_7, window_bounds = array<i64: 1, 16>}, {pipeline_mode = #tpu.pipeline_mode<synchronous>, transform_indices = @transform_8, window_bounds = array<i64: 32, 64>}, {pipeline_mode = #tpu.pipeline_mode<synchronous>, transform_indices = @transform_9, window_bounds = array<i64: 32, 32>}, {pipeline_mode = #tpu.pipeline_mode<synchronous>, transform_indices = @transform_10, window_bounds = array<i64: 32, 32>}, {pipeline_mode = #tpu.pipeline_mode<synchronous>, transform_indices = @transform_11, window_bounds = array<i64: 32, 32>}, {pipeline_mode = #tpu.pipeline_mode<synchronous>, transform_indices = @transform_12, window_bounds = array<i64: 32, 32>}, {pipeline_mode = #tpu.pipeline_mode<synchronous>, transform_indices = @transform_13, window_bounds = array<i64: 32, 16>}, {transform_indices = @transform_14, window_bounds = array<i64: 1, 8, 16>}]} {
    %c0_i32 = arith.constant 0 : i32
    %0 = arith.cmpi eq, %arg1, %c0_i32 : i32
    %1 = arith.extui %0 : i1 to i32
    %c0_i32_0 = arith.constant 0 : i32
    %2 = arith.cmpi ne, %1, %c0_i32_0 : i32
    scf.if %2 {
      %c0_59 = arith.constant 0 : index
      %c0_60 = arith.constant 0 : index
      %c0_61 = arith.constant 0 : index
      %134 = vector.load %arg3[%c0_59, %c0_60, %c0_61] : memref<1x16x32xbf16, #tpu.memory_space<vmem>>, vector<1x16x32xbf16>
      %135 = arith.extf %134 : vector<1x16x32xbf16> to vector<1x16x32xf32>
      %136 = vector.shape_cast %135 : vector<1x16x32xf32> to vector<16x32xf32>
      %c0_62 = arith.constant 0 : index
      %c0_63 = arith.constant 0 : index
      %137 = vector.load %arg4[%c0_62, %c0_63] : memref<2x32xf32, #tpu.memory_space<vmem>>, vector<1x32xf32>
      %138 = vector.shape_cast %137 : vector<1x32xf32> to vector<32xf32>
      %c1_64 = arith.constant 1 : index
      %c0_65 = arith.constant 0 : index
      %139 = vector.load %arg4[%c1_64, %c0_65] : memref<2x32xf32, #tpu.memory_space<vmem>>, vector<1x32xf32>
      %140 = vector.shape_cast %139 : vector<1x32xf32> to vector<32xf32>
      %cst_66 = arith.constant dense<0.000000e+00> : vector<16xf32>
      %141 = vector.multi_reduction <add>, %136, %cst_66 [1] : vector<16x32xf32> to vector<16xf32>
      %142 = vector.shape_cast %141 : vector<16xf32> to vector<16x1xf32>
      %cst_67 = arith.constant 3.200000e+01 : f32
      %143 = vector.broadcast %cst_67 : f32 to vector<16x1xf32>
      %144 = arith.divf %142, %143 : vector<16x1xf32>
      %145 = vector.broadcast %144 : vector<16x1xf32> to vector<16x32xf32>
      %146 = arith.subf %136, %145 : vector<16x32xf32>
      %147 = arith.mulf %146, %146 : vector<16x32xf32>
      %cst_68 = arith.constant dense<0.000000e+00> : vector<16xf32>
      %148 = vector.multi_reduction <add>, %147, %cst_68 [1] : vector<16x32xf32> to vector<16xf32>
      %149 = vector.shape_cast %148 : vector<16xf32> to vector<16x1xf32>
      %cst_69 = arith.constant 3.200000e+01 : f32
      %150 = vector.broadcast %cst_69 : f32 to vector<16x1xf32>
      %151 = arith.divf %149, %150 : vector<16x1xf32>
      %152 = vector.broadcast %144 : vector<16x1xf32> to vector<16x32xf32>
      %153 = arith.subf %136, %152 : vector<16x32xf32>
      %cst_70 = arith.constant 9.99999974E-6 : f32
      %154 = vector.broadcast %cst_70 : f32 to vector<16x1xf32>
      %155 = arith.addf %151, %154 : vector<16x1xf32>
      %156 = math.rsqrt %155 : vector<16x1xf32>
      %157 = vector.broadcast %156 : vector<16x1xf32> to vector<16x32xf32>
      %158 = arith.mulf %153, %157 : vector<16x32xf32>
      %159 = vector.shape_cast %138 : vector<32xf32> to vector<1x32xf32>
      %160 = vector.broadcast %159 : vector<1x32xf32> to vector<16x32xf32>
      %161 = arith.mulf %158, %160 : vector<16x32xf32>
      %162 = vector.shape_cast %140 : vector<32xf32> to vector<1x32xf32>
      %163 = vector.broadcast %162 : vector<1x32xf32> to vector<16x32xf32>
      %164 = arith.addf %161, %163 : vector<16x32xf32>
      %165 = arith.truncf %164 : vector<16x32xf32> to vector<16x32xbf16>
      %c0_71 = arith.constant 0 : index
      %c0_72 = arith.constant 0 : index
      %166 = vector.load %arg10[%c0_71, %c0_72] : memref<32x64xbf16, #tpu.memory_space<vmem>>, vector<32x64xbf16>
      %cst_73 = arith.constant dense<0.000000e+00> : vector<16x64xf32>
      %167 = tpu.matmul %165, %166, %cst_73 {dimension_numbers = #tpu.dot_dimension_numbers<[1], [0], [0], [1], [0, 0, 1, 1], [], []>} : vector<16x32xbf16>, vector<32x64xbf16>, vector<16x64xf32> -> vector<16x64xf32>
      %c0_74 = arith.constant 0 : index
      %c0_75 = arith.constant 0 : index
      %168 = vector.load %arg6[%c0_74, %c0_75] : memref<1x64xf32, #tpu.memory_space<vmem>>, vector<1x64xf32>
      %169 = vector.shape_cast %168 : vector<1x64xf32> to vector<64xf32>
      %170 = vector.shape_cast %169 : vector<64xf32> to vector<1x64xf32>
      %171 = vector.broadcast %170 : vector<1x64xf32> to vector<16x64xf32>
      %172 = arith.addf %167, %171 : vector<16x64xf32>
      %173 = vector.extract_strided_slice %172 {offsets = [0, 0], sizes = [16, 32], strides = [1, 1]} : vector<16x64xf32> to vector<16x32xf32>
      %174 = vector.shape_cast %173 : vector<16x32xf32> to vector<1x16x32xf32>
      %175 = arith.truncf %174 : vector<1x16x32xf32> to vector<1x16x32xbf16>
      %c0_76 = arith.constant 0 : index
      %c0_77 = arith.constant 0 : index
      %c0_78 = arith.constant 0 : index
      %176 = vector.load %arg17[%c0_76, %c0_77, %c0_78] : memref<1x16x32xbf16, #tpu.memory_space<vmem>>, vector<1x16x32xbf16>
      tpu.vector_store %arg17[%c0_76, %c0_77, %c0_78], %175 {strides = array<i32>} : memref<1x16x32xbf16, #tpu.memory_space<vmem>>, vector<1x16x32xbf16>,
      %177 = vector.extract_strided_slice %172 {offsets = [0, 32], sizes = [16, 32], strides = [1, 1]} : vector<16x64xf32> to vector<16x32xf32>
      %178 = vector.shape_cast %177 : vector<16x32xf32> to vector<1x16x32xf32>
      %179 = arith.truncf %178 : vector<1x16x32xf32> to vector<1x16x32xbf16>
      %c0_79 = arith.constant 0 : index
      %c0_80 = arith.constant 0 : index
      %c0_81 = arith.constant 0 : index
      %180 = vector.load %arg18[%c0_79, %c0_80, %c0_81] : memref<1x16x32xbf16, #tpu.memory_space<vmem>>, vector<1x16x32xbf16>
      tpu.vector_store %arg18[%c0_79, %c0_80, %c0_81], %179 {strides = array<i32>} : memref<1x16x32xbf16, #tpu.memory_space<vmem>>, vector<1x16x32xbf16>,
    } else {
    }
    %c0 = arith.constant 0 : index
    %c0_1 = arith.constant 0 : index
    %c0_2 = arith.constant 0 : index
    %3 = vector.load %arg2[%c0, %c0_1, %c0_2] : memref<1x8x32xbf16, #tpu.memory_space<vmem>>, vector<1x8x32xbf16>
    %4 = arith.extf %3 : vector<1x8x32xbf16> to vector<1x8x32xf32>
    %5 = vector.shape_cast %4 : vector<1x8x32xf32> to vector<8x32xf32>
    %c0_3 = arith.constant 0 : index
    %c0_4 = arith.constant 0 : index
    %6 = vector.load %arg5[%c0_3, %c0_4] : memref<4x32xf32, #tpu.memory_space<vmem>>, vector<1x32xf32>
    %7 = vector.shape_cast %6 : vector<1x32xf32> to vector<32xf32>
    %c1 = arith.constant 1 : index
    %c0_5 = arith.constant 0 : index
    %8 = vector.load %arg5[%c1, %c0_5] : memref<4x32xf32, #tpu.memory_space<vmem>>, vector<1x32xf32>
    %9 = vector.shape_cast %8 : vector<1x32xf32> to vector<32xf32>
    %cst = arith.constant dense<0.000000e+00> : vector<8xf32>
    %10 = vector.multi_reduction <add>, %5, %cst [1] : vector<8x32xf32> to vector<8xf32>
    %11 = vector.shape_cast %10 : vector<8xf32> to vector<8x1xf32>
    %cst_6 = arith.constant 3.200000e+01 : f32
    %12 = vector.broadcast %cst_6 : f32 to vector<8x1xf32>
    %13 = arith.divf %11, %12 : vector<8x1xf32>
    %14 = vector.broadcast %13 : vector<8x1xf32> to vector<8x32xf32>
    %15 = arith.subf %5, %14 : vector<8x32xf32>
    %16 = arith.mulf %15, %15 : vector<8x32xf32>
    %cst_7 = arith.constant dense<0.000000e+00> : vector<8xf32>
    %17 = vector.multi_reduction <add>, %16, %cst_7 [1] : vector<8x32xf32> to vector<8xf32>
    %18 = vector.shape_cast %17 : vector<8xf32> to vector<8x1xf32>
    %cst_8 = arith.constant 3.200000e+01 : f32
    %19 = vector.broadcast %cst_8 : f32 to vector<8x1xf32>
    %20 = arith.divf %18, %19 : vector<8x1xf32>
    %21 = vector.broadcast %13 : vector<8x1xf32> to vector<8x32xf32>
    %22 = arith.subf %5, %21 : vector<8x32xf32>
    %cst_9 = arith.constant 9.99999974E-6 : f32
    %23 = vector.broadcast %cst_9 : f32 to vector<8x1xf32>
    %24 = arith.addf %20, %23 : vector<8x1xf32>
    %25 = math.rsqrt %24 : vector<8x1xf32>
    %26 = vector.broadcast %25 : vector<8x1xf32> to vector<8x32xf32>
    %27 = arith.mulf %22, %26 : vector<8x32xf32>
    %28 = vector.shape_cast %7 : vector<32xf32> to vector<1x32xf32>
    %29 = vector.broadcast %28 : vector<1x32xf32> to vector<8x32xf32>
    %30 = arith.mulf %27, %29 : vector<8x32xf32>
    %31 = vector.shape_cast %9 : vector<32xf32> to vector<1x32xf32>
    %32 = vector.broadcast %31 : vector<1x32xf32> to vector<8x32xf32>
    %33 = arith.addf %30, %32 : vector<8x32xf32>
    %34 = arith.truncf %33 : vector<8x32xf32> to vector<8x32xbf16>
    %c0_10 = arith.constant 0 : index
    %c0_11 = arith.constant 0 : index
    %35 = vector.load %arg11[%c0_10, %c0_11] : memref<32x32xbf16, #tpu.memory_space<vmem>>, vector<32x32xbf16>
    %cst_12 = arith.constant dense<0.000000e+00> : vector<8x32xf32>
    %36 = tpu.matmul %34, %35, %cst_12 {dimension_numbers = #tpu.dot_dimension_numbers<[1], [0], [0], [1], [0, 0, 1, 1], [], []>} : vector<8x32xbf16>, vector<32x32xbf16>, vector<8x32xf32> -> vector<8x32xf32>
    %c0_13 = arith.constant 0 : index
    %c0_14 = arith.constant 0 : index
    %37 = vector.load %arg7[%c0_13, %c0_14] : memref<3x32xf32, #tpu.memory_space<vmem>>, vector<1x32xf32>
    %38 = vector.shape_cast %37 : vector<1x32xf32> to vector<32xf32>
    %39 = vector.shape_cast %38 : vector<32xf32> to vector<1x32xf32>
    %40 = vector.broadcast %39 : vector<1x32xf32> to vector<8x32xf32>
    %41 = arith.addf %36, %40 : vector<8x32xf32>
    %cst_15 = arith.constant 0.176776692 : f32
    %42 = vector.broadcast %cst_15 : f32 to vector<8x32xf32>
    %43 = arith.mulf %41, %42 : vector<8x32xf32>
    %44 = vector.shape_cast %43 : vector<8x32xf32> to vector<1x8x32xf32>
    %45 = arith.truncf %44 : vector<1x8x32xf32> to vector<1x8x32xbf16>
    %c0_16 = arith.constant 0 : index
    %c0_17 = arith.constant 0 : index
    %c0_18 = arith.constant 0 : index
    %46 = vector.load %arg17[%c0_16, %c0_17, %c0_18] : memref<1x16x32xbf16, #tpu.memory_space<vmem>>, vector<1x16x32xbf16>
    "tpu.trace_start"() <{level = 10 : i32, message = "bnd,bmd->bnm"}> : () -> ()
    %cst_19 = arith.constant dense<0.000000e+00> : vector<1x8x16xf32>
    %47 = tpu.matmul %45, %46, %cst_19 {dimension_numbers = #tpu.dot_dimension_numbers<[2], [2], [1], [1], [0, 0, 0, 1, 1, 1], [0], [0]>} : vector<1x8x32xbf16>, vector<1x16x32xbf16>, vector<1x8x16xf32> -> vector<1x8x16xf32>
    "tpu.trace_stop"() : () -> ()
    %cst_20 = arith.constant dense<0xFF800000> : vector<1x8xf32>
    %48 = vector.multi_reduction <maximumf>, %47, %cst_20 [2] : vector<1x8x16xf32> to vector<1x8xf32>
    %49 = vector.shape_cast %48 : vector<1x8xf32> to vector<1x8x1xf32>
    %50 = vector.broadcast %49 : vector<1x8x1xf32> to vector<1x8x16xf32>
    %51 = arith.subf %47, %50 : vector<1x8x16xf32>
    %52 = math.exp %51 : vector<1x8x16xf32>
    %cst_21 = arith.constant dense<0.000000e+00> : vector<1x8xf32>
    %53 = vector.multi_reduction <add>, %52, %cst_21 [2] : vector<1x8x16xf32> to vector<1x8xf32>
    %54 = vector.shape_cast %53 : vector<1x8xf32> to vector<1x8x1xf32>
    %55 = tpu.reciprocal %54 {approx = true} : vector<1x8x1xf32> -> vector<1x8x1xf32>
    %56 = vector.broadcast %55 : vector<1x8x1xf32> to vector<1x8x16xf32>
    %57 = arith.mulf %52, %56 : vector<1x8x16xf32>
    %58 = arith.truncf %57 : vector<1x8x16xf32> to vector<1x8x16xbf16>
    %c0_22 = arith.constant 0 : index
    %c0_23 = arith.constant 0 : index
    %c0_24 = arith.constant 0 : index
    %59 = vector.load %arg18[%c0_22, %c0_23, %c0_24] : memref<1x16x32xbf16, #tpu.memory_space<vmem>>, vector<1x16x32xbf16>
    "tpu.trace_start"() <{level = 10 : i32, message = "bnm,bmd->bnd"}> : () -> ()
    %cst_25 = arith.constant dense<0.000000e+00> : vector<1x8x32xf32>
    %60 = tpu.matmul %58, %59, %cst_25 {dimension_numbers = #tpu.dot_dimension_numbers<[2], [1], [1], [2], [0, 0, 0, 1, 1, 2], [0], [0]>} : vector<1x8x16xbf16>, vector<1x16x32xbf16>, vector<1x8x32xf32> -> vector<1x8x32xf32>
    "tpu.trace_stop"() : () -> ()
    %61 = vector.shape_cast %60 : vector<1x8x32xf32> to vector<8x32xf32>
    %62 = arith.truncf %61 : vector<8x32xf32> to vector<8x32xbf16>
    %c0_26 = arith.constant 0 : index
    %c0_27 = arith.constant 0 : index
    %63 = vector.load %arg12[%c0_26, %c0_27] : memref<32x32xbf16, #tpu.memory_space<vmem>>, vector<32x32xbf16>
    %cst_28 = arith.constant dense<0.000000e+00> : vector<8x32xf32>
    %64 = tpu.matmul %62, %63, %cst_28 {dimension_numbers = #tpu.dot_dimension_numbers<[1], [0], [0], [1], [0, 0, 1, 1], [], []>} : vector<8x32xbf16>, vector<32x32xbf16>, vector<8x32xf32> -> vector<8x32xf32>
    %c1_29 = arith.constant 1 : index
    %c0_30 = arith.constant 0 : index
    %65 = vector.load %arg7[%c1_29, %c0_30] : memref<3x32xf32, #tpu.memory_space<vmem>>, vector<1x32xf32>
    %66 = vector.shape_cast %65 : vector<1x32xf32> to vector<32xf32>
    %67 = vector.shape_cast %66 : vector<32xf32> to vector<1x32xf32>
    %68 = vector.broadcast %67 : vector<1x32xf32> to vector<8x32xf32>
    %69 = arith.addf %64, %68 : vector<8x32xf32>
    %c2 = arith.constant 2 : index
    %c0_31 = arith.constant 0 : index
    %70 = vector.load %arg5[%c2, %c0_31] : memref<4x32xf32, #tpu.memory_space<vmem>>, vector<1x32xf32>
    %71 = vector.shape_cast %70 : vector<1x32xf32> to vector<32xf32>
    %c3 = arith.constant 3 : index
    %c0_32 = arith.constant 0 : index
    %72 = vector.load %arg5[%c3, %c0_32] : memref<4x32xf32, #tpu.memory_space<vmem>>, vector<1x32xf32>
    %73 = vector.shape_cast %72 : vector<1x32xf32> to vector<32xf32>
    %cst_33 = arith.constant dense<0.000000e+00> : vector<8xf32>
    %74 = vector.multi_reduction <add>, %69, %cst_33 [1] : vector<8x32xf32> to vector<8xf32>
    %75 = vector.shape_cast %74 : vector<8xf32> to vector<8x1xf32>
    %cst_34 = arith.constant 3.200000e+01 : f32
    %76 = vector.broadcast %cst_34 : f32 to vector<8x1xf32>
    %77 = arith.divf %75, %76 : vector<8x1xf32>
    %78 = vector.broadcast %77 : vector<8x1xf32> to vector<8x32xf32>
    %79 = arith.subf %69, %78 : vector<8x32xf32>
    %80 = arith.mulf %79, %79 : vector<8x32xf32>
    %cst_35 = arith.constant dense<0.000000e+00> : vector<8xf32>
    %81 = vector.multi_reduction <add>, %80, %cst_35 [1] : vector<8x32xf32> to vector<8xf32>
    %82 = vector.shape_cast %81 : vector<8xf32> to vector<8x1xf32>
    %cst_36 = arith.constant 3.200000e+01 : f32
    %83 = vector.broadcast %cst_36 : f32 to vector<8x1xf32>
    %84 = arith.divf %82, %83 : vector<8x1xf32>
    %85 = vector.broadcast %77 : vector<8x1xf32> to vector<8x32xf32>
    %86 = arith.subf %69, %85 : vector<8x32xf32>
    %cst_37 = arith.constant 9.99999974E-6 : f32
    %87 = vector.broadcast %cst_37 : f32 to vector<8x1xf32>
    %88 = arith.addf %84, %87 : vector<8x1xf32>
    %89 = math.rsqrt %88 : vector<8x1xf32>
    %90 = vector.broadcast %89 : vector<8x1xf32> to vector<8x32xf32>
    %91 = arith.mulf %86, %90 : vector<8x32xf32>
    %92 = vector.shape_cast %71 : vector<32xf32> to vector<1x32xf32>
    %93 = vector.broadcast %92 : vector<1x32xf32> to vector<8x32xf32>
    %94 = arith.mulf %91, %93 : vector<8x32xf32>
    %95 = vector.shape_cast %73 : vector<32xf32> to vector<1x32xf32>
    %96 = vector.broadcast %95 : vector<1x32xf32> to vector<8x32xf32>
    %97 = arith.addf %94, %96 : vector<8x32xf32>
    %98 = arith.truncf %97 : vector<8x32xf32> to vector<8x32xbf16>
    %c0_38 = arith.constant 0 : index
    %c0_39 = arith.constant 0 : index
    %99 = vector.load %arg13[%c0_38, %c0_39] : memref<32x32xbf16, #tpu.memory_space<vmem>>, vector<32x32xbf16>
    %cst_40 = arith.constant dense<0.000000e+00> : vector<8x32xf32>
    %100 = tpu.matmul %98, %99, %cst_40 {dimension_numbers = #tpu.dot_dimension_numbers<[1], [0], [0], [1], [0, 0, 1, 1], [], []>} : vector<8x32xbf16>, vector<32x32xbf16>, vector<8x32xf32> -> vector<8x32xf32>
    %c0_41 = arith.constant 0 : index
    %c0_42 = arith.constant 0 : index
    %101 = vector.load %arg8[%c0_41, %c0_42] : memref<1x32xf32, #tpu.memory_space<vmem>>, vector<1x32xf32>
    %102 = vector.shape_cast %101 : vector<1x32xf32> to vector<32xf32>
    %103 = vector.shape_cast %102 : vector<32xf32> to vector<1x32xf32>
    %104 = vector.broadcast %103 : vector<1x32xf32> to vector<8x32xf32>
    %105 = arith.addf %100, %104 : vector<8x32xf32>
    %cst_43 = arith.constant 5.000000e-01 : f32
    %106 = vector.broadcast %cst_43 : f32 to vector<8x32xf32>
    %107 = arith.mulf %106, %105 : vector<8x32xf32>
    %cst_44 = arith.constant 1.41421354 : f32
    %108 = vector.broadcast %cst_44 : f32 to vector<8x32xf32>
    %109 = arith.divf %105, %108 : vector<8x32xf32>
    %110 = math.erf %109 : vector<8x32xf32>
    %cst_45 = arith.constant 1.000000e+00 : f32
    %111 = vector.broadcast %cst_45 : f32 to vector<8x32xf32>
    %112 = arith.addf %111, %110 : vector<8x32xf32>
    %113 = arith.mulf %107, %112 : vector<8x32xf32>
    %114 = arith.truncf %113 : vector<8x32xf32> to vector<8x32xbf16>
    %c0_46 = arith.constant 0 : index
    %c0_47 = arith.constant 0 : index
    %115 = vector.load %arg14[%c0_46, %c0_47] : memref<32x32xbf16, #tpu.memory_space<vmem>>, vector<32x32xbf16>
    %cst_48 = arith.constant dense<0.000000e+00> : vector<8x32xf32>
    %116 = tpu.matmul %114, %115, %cst_48 {dimension_numbers = #tpu.dot_dimension_numbers<[1], [0], [0], [1], [0, 0, 1, 1], [], []>} : vector<8x32xbf16>, vector<32x32xbf16>, vector<8x32xf32> -> vector<8x32xf32>
    %c2_49 = arith.constant 2 : index
    %c0_50 = arith.constant 0 : index
    %117 = vector.load %arg7[%c2_49, %c0_50] : memref<3x32xf32, #tpu.memory_space<vmem>>, vector<1x32xf32>
    %118 = vector.shape_cast %117 : vector<1x32xf32> to vector<32xf32>
    %119 = vector.shape_cast %118 : vector<32xf32> to vector<1x32xf32>
    %120 = vector.broadcast %119 : vector<1x32xf32> to vector<8x32xf32>
    %121 = arith.addf %116, %120 : vector<8x32xf32>
    %122 = arith.addf %69, %121 : vector<8x32xf32>
    %123 = arith.truncf %122 : vector<8x32xf32> to vector<8x32xbf16>
    %c0_51 = arith.constant 0 : index
    %c0_52 = arith.constant 0 : index
    %124 = vector.load %arg15[%c0_51, %c0_52] : memref<32x16xbf16, #tpu.memory_space<vmem>>, vector<32x16xbf16>
    %cst_53 = arith.constant dense<0.000000e+00> : vector<8x16xf32>
    %125 = tpu.matmul %123, %124, %cst_53 {dimension_numbers = #tpu.dot_dimension_numbers<[1], [0], [0], [1], [0, 0, 1, 1], [], []>} : vector<8x32xbf16>, vector<32x16xbf16>, vector<8x16xf32> -> vector<8x16xf32>
    %c0_54 = arith.constant 0 : index
    %c0_55 = arith.constant 0 : index
    %126 = vector.load %arg9[%c0_54, %c0_55] : memref<1x16xf32, #tpu.memory_space<vmem>>, vector<1x16xf32>
    %127 = vector.shape_cast %126 : vector<1x16xf32> to vector<16xf32>
    %128 = vector.shape_cast %127 : vector<16xf32> to vector<1x16xf32>
    %129 = vector.broadcast %128 : vector<1x16xf32> to vector<8x16xf32>
    %130 = arith.addf %125, %129 : vector<8x16xf32>
    %131 = vector.shape_cast %130 : vector<8x16xf32> to vector<1x8x16xf32>
    %132 = arith.truncf %131 : vector<1x8x16xf32> to vector<1x8x16xbf16>
    %c0_56 = arith.constant 0 : index
    %c0_57 = arith.constant 0 : index
    %c0_58 = arith.constant 0 : index
    %133 = vector.load %arg16[%c0_56, %c0_57, %c0_58] : memref<1x8x16xbf16, #tpu.memory_space<vmem>>, vector<1x8x16xbf16>
    tpu.vector_store %arg16[%c0_56, %c0_57, %c0_58], %132 {strides = array<i32>} : memref<1x8x16xbf16, #tpu.memory_space<vmem>>, vector<1x8x16xbf16>,
    return
  }
  func.func @transform_0(%arg0: i32, %arg1: i32) -> (i32, i32, i32) {
    %c0_i32 = arith.constant 0 : i32
    %c0_i32_0 = arith.constant 0 : i32
    return %arg0, %arg1, %c0_i32 : i32, i32, i32
  }
  func.func @transform_1(%arg0: i32, %arg1: i32) -> (i32, i32, i32) {
    %c0_i32 = arith.constant 0 : i32
    %c0_i32_0 = arith.constant 0 : i32
    %c0_i32_1 = arith.constant 0 : i32
    return %arg0, %c0_i32, %c0_i32_0 : i32, i32, i32
  }
  func.func @transform_2(%arg0: i32, %arg1: i32) -> (i32, i32) {
    %c0_i32 = arith.constant 0 : i32
    %c0_i32_0 = arith.constant 0 : i32
    %c0_i32_1 = arith.constant 0 : i32
    return %c0_i32, %c0_i32_0 : i32, i32
  }
  func.func @transform_3(%arg0: i32, %arg1: i32) -> (i32, i32) {
    %c0_i32 = arith.constant 0 : i32
    %c0_i32_0 = arith.constant 0 : i32
    %c0_i32_1 = arith.constant 0 : i32
    return %c0_i32, %c0_i32_0 : i32, i32
  }
  func.func @transform_4(%arg0: i32, %arg1: i32) -> (i32, i32) {
    %c0_i32 = arith.constant 0 : i32
    %c0_i32_0 = arith.constant 0 : i32
    %c0_i32_1 = arith.constant 0 : i32
    return %c0_i32, %c0_i32_0 : i32, i32
  }
  func.func @transform_5(%arg0: i32, %arg1: i32) -> (i32, i32) {
    %c0_i32 = arith.constant 0 : i32
    %c0_i32_0 = arith.constant 0 : i32
    %c0_i32_1 = arith.constant 0 : i32
    return %c0_i32, %c0_i32_0 : i32, i32
  }
  func.func @transform_6(%arg0: i32, %arg1: i32) -> (i32, i32) {
    %c0_i32 = arith.constant 0 : i32
    %c0_i32_0 = arith.constant 0 : i32
    %c0_i32_1 = arith.constant 0 : i32
    return %c0_i32, %c0_i32_0 : i32, i32
  }
  func.func @transform_7(%arg0: i32, %arg1: i32) -> (i32, i32) {
    %c0_i32 = arith.constant 0 : i32
    %c0_i32_0 = arith.constant 0 : i32
    %c0_i32_1 = arith.constant 0 : i32
    return %c0_i32, %c0_i32_0 : i32, i32
  }
  func.func @transform_8(%arg0: i32, %arg1: i32) -> (i32, i32) {
    %c0_i32 = arith.constant 0 : i32
    %c0_i32_0 = arith.constant 0 : i32
    %c0_i32_1 = arith.constant 0 : i32
    return %c0_i32, %c0_i32_0 : i32, i32
  }
  func.func @transform_9(%arg0: i32, %arg1: i32) -> (i32, i32) {
    %c0_i32 = arith.constant 0 : i32
    %c0_i32_0 = arith.constant 0 : i32
    %c0_i32_1 = arith.constant 0 : i32
    return %c0_i32, %c0_i32_0 : i32, i32
  }
  func.func @transform_10(%arg0: i32, %arg1: i32) -> (i32, i32) {
    %c0_i32 = arith.constant 0 : i32
    %c0_i32_0 = arith.constant 0 : i32
    %c0_i32_1 = arith.constant 0 : i32
    return %c0_i32, %c0_i32_0 : i32, i32
  }
  func.func @transform_11(%arg0: i32, %arg1: i32) -> (i32, i32) {
    %c0_i32 = arith.constant 0 : i32
    %c0_i32_0 = arith.constant 0 : i32
    %c0_i32_1 = arith.constant 0 : i32
    return %c0_i32, %c0_i32_0 : i32, i32
  }
  func.func @transform_12(%arg0: i32, %arg1: i32) -> (i32, i32) {
    %c0_i32 = arith.constant 0 : i32
    %c0_i32_0 = arith.constant 0 : i32
    %c0_i32_1 = arith.constant 0 : i32
    return %c0_i32, %c0_i32_0 : i32, i32
  }
  func.func @transform_13(%arg0: i32, %arg1: i32) -> (i32, i32) {
    %c0_i32 = arith.constant 0 : i32
    %c0_i32_0 = arith.constant 0 : i32
    %c0_i32_1 = arith.constant 0 : i32
    return %c0_i32, %c0_i32_0 : i32, i32
  }
  func.func @transform_14(%arg0: i32, %arg1: i32) -> (i32, i32, i32) {
    %c0_i32 = arith.constant 0 : i32
    %c0_i32_0 = arith.constant 0 : i32
    return %arg0, %arg1, %c0_i32 : i32, i32, i32
  }
}

module attributes {stable_mosaic.version = 11 : i64} {
  func.func @_decoder_kernel(%arg0: i32, %arg1: i32, %arg2: memref<1x8x32xbf16, #tpu.memory_space<vmem>>, %arg3: memref<1x16x32xbf16, #tpu.memory_space<vmem>>, %arg4: memref<2x32xf32, #tpu.memory_space<vmem>>, %arg5: memref<4x32xf32, #tpu.memory_space<vmem>>, %arg6: memref<1x64xf32, #tpu.memory_space<vmem>>, %arg7: memref<3x32xf32, #tpu.memory_space<vmem>>, %arg8: memref<1x32xf32, #tpu.memory_space<vmem>>, %arg9: memref<1x16xf32, #tpu.memory_space<vmem>>, %arg10: memref<32x64xbf16, #tpu.memory_space<vmem>>, %arg11: memref<32x32xbf16, #tpu.memory_space<vmem>>, %arg12: memref<32x32xbf16, #tpu.memory_space<vmem>>, %arg13: memref<32x32xbf16, #tpu.memory_space<vmem>>, %arg14: memref<32x32xbf16, #tpu.memory_space<vmem>>, %arg15: memref<32x16xbf16, #tpu.memory_space<vmem>>, %arg16: memref<1x8x16xbf16, #tpu.memory_space<vmem>>, %arg17: memref<1x16x32xbf16, #tpu.memory_space<vmem>>, %arg18: memref<1x16x32xbf16, #tpu.memory_space<vmem>>) attributes {dimension_semantics = [#tpu.dimension_semantics<parallel>, #tpu.dimension_semantics<arbitrary>], iteration_bounds = array<i64: 2, 1>, scalar_prefetch = 0 : i64, scratch_operands = 2 : i64, tpu.core_type = #tpu.core_type<tc>, window_params = [{transform_indices = @transform_0, window_bounds = array<i64: 1, 8, 32>}, {transform_indices = @transform_1, window_bounds = array<i64: 1, 16, 32>}, {pipeline_mode = #tpu.pipeline_mode<synchronous>, transform_indices = @transform_2, window_bounds = array<i64: 2, 32>}, {pipeline_mode = #tpu.pipeline_mode<synchronous>, transform_indices = @transform_3, window_bounds = array<i64: 4, 32>}, {pipeline_mode = #tpu.pipeline_mode<synchronous>, transform_indices = @transform_4, window_bounds = array<i64: 1, 64>}, {pipeline_mode = #tpu.pipeline_mode<synchronous>, transform_indices = @transform_5, window_bounds = array<i64: 3, 32>}, {pipeline_mode = #tpu.pipeline_mode<synchronous>, transform_indices = @transform_6, window_bounds = array<i64: 1, 32>}, {pipeline_mode = #tpu.pipeline_mode<synchronous>, transform_indices = @transform_7, window_bounds = array<i64: 1, 16>}, {pipeline_mode = #tpu.pipeline_mode<synchronous>, transform_indices = @transform_8, window_bounds = array<i64: 32, 64>}, {pipeline_mode = #tpu.pipeline_mode<synchronous>, transform_indices = @transform_9, window_bounds = array<i64: 32, 32>}, {pipeline_mode = #tpu.pipeline_mode<synchronous>, transform_indices = @transform_10, window_bounds = array<i64: 32, 32>}, {pipeline_mode = #tpu.pipeline_mode<synchronous>, transform_indices = @transform_11, window_bounds = array<i64: 32, 32>}, {pipeline_mode = #tpu.pipeline_mode<synchronous>, transform_indices = @transform_12, window_bounds = array<i64: 32, 32>}, {pipeline_mode = #tpu.pipeline_mode<synchronous>, transform_indices = @transform_13, window_bounds = array<i64: 32, 16>}, {transform_indices = @transform_14, window_bounds = array<i64: 1, 8, 16>}]} {
    %c0_i32 = arith.constant 0 : i32
    %0 = arith.cmpi eq, %arg1, %c0_i32 : i32
    %1 = arith.extui %0 : i1 to i32
    %c0_i32_0 = arith.constant 0 : i32
    %2 = arith.cmpi ne, %1, %c0_i32_0 : i32
    scf.if %2 {
      %c0_59 = arith.constant 0 : index
      %c0_60 = arith.constant 0 : index
      %c0_61 = arith.constant 0 : index
      %134 = vector.load %arg3[%c0_59, %c0_60, %c0_61] : memref<1x16x32xbf16, #tpu.memory_space<vmem>>, vector<1x16x32xbf16>
      %135 = arith.extf %134 : vector<1x16x32xbf16> to vector<1x16x32xf32>
      %136 = vector.shape_cast %135 : vector<1x16x32xf32> to vector<16x32xf32>
      %c0_62 = arith.constant 0 : index
      %c0_63 = arith.constant 0 : index
      %137 = vector.load %arg4[%c0_62, %c0_63] : memref<2x32xf32, #tpu.memory_space<vmem>>, vector<1x32xf32>
      %138 = vector.shape_cast %137 : vector<1x32xf32> to vector<32xf32>
      %c1_64 = arith.constant 1 : index
      %c0_65 = arith.constant 0 : index
      %139 = vector.load %arg4[%c1_64, %c0_65] : memref<2x32xf32, #tpu.memory_space<vmem>>, vector<1x32xf32>
      %140 = vector.shape_cast %139 : vector<1x32xf32> to vector<32xf32>
      %cst_66 = arith.constant dense<0.000000e+00> : vector<16xf32>
      %141 = vector.multi_reduction <add>, %136, %cst_66 [1] : vector<16x32xf32> to vector<16xf32>
      %142 = vector.shape_cast %141 : vector<16xf32> to vector<16x1xf32>
      %cst_67 = arith.constant 3.200000e+01 : f32
      %143 = vector.broadcast %cst_67 : f32 to vector<16x1xf32>
      %144 = arith.divf %142, %143 : vector<16x1xf32>
      %145 = vector.broadcast %144 : vector<16x1xf32> to vector<16x32xf32>
      %146 = arith.subf %136, %145 : vector<16x32xf32>
      %147 = arith.mulf %146, %146 : vector<16x32xf32>
      %cst_68 = arith.constant dense<0.000000e+00> : vector<16xf32>
      %148 = vector.multi_reduction <add>, %147, %cst_68 [1] : vector<16x32xf32> to vector<16xf32>
      %149 = vector.shape_cast %148 : vector<16xf32> to vector<16x1xf32>
      %cst_69 = arith.constant 3.200000e+01 : f32
      %150 = vector.broadcast %cst_69 : f32 to vector<16x1xf32>
      %151 = arith.divf %149, %150 : vector<16x1xf32>
      %152 = vector.broadcast %144 : vector<16x1xf32> to vector<16x32xf32>
      %153 = arith.subf %136, %152 : vector<16x32xf32>
      %cst_70 = arith.constant 9.99999974E-6 : f32
      %154 = vector.broadcast %cst_70 : f32 to vector<16x1xf32>
      %155 = arith.addf %151, %154 : vector<16x1xf32>
      %156 = math.rsqrt %155 : vector<16x1xf32>
      %157 = vector.broadcast %156 : vector<16x1xf32> to vector<16x32xf32>
      %158 = arith.mulf %153, %157 : vector<16x32xf32>
      %159 = vector.shape_cast %138 : vector<32xf32> to vector<1x32xf32>
      %160 = vector.broadcast %159 : vector<1x32xf32> to vector<16x32xf32>
      %161 = arith.mulf %158, %160 : vector<16x32xf32>
      %162 = vector.shape_cast %140 : vector<32xf32> to vector<1x32xf32>
      %163 = vector.broadcast %162 : vector<1x32xf32> to vector<16x32xf32>
      %164 = arith.addf %161, %163 : vector<16x32xf32>
      %165 = arith.truncf %164 : vector<16x32xf32> to vector<16x32xbf16>
      %c0_71 = arith.constant 0 : index
      %c0_72 = arith.constant 0 : index
      %166 = vector.load %arg10[%c0_71, %c0_72] : memref<32x64xbf16, #tpu.memory_space<vmem>>, vector<32x64xbf16>
      %cst_73 = arith.constant dense<0.000000e+00> : vector<16x64xf32>
      %167 = tpu.matmul %165, %166, %cst_73 {dimension_numbers = #tpu.dot_dimension_numbers<[1], [0], [0], [1], [0, 0, 1, 1], [], []>} : vector<16x32xbf16>, vector<32x64xbf16>, vector<16x64xf32> -> vector<16x64xf32>
      %c0_74 = arith.constant 0 : index
      %c0_75 = arith.constant 0 : index
      %168 = vector.load %arg6[%c0_74, %c0_75] : memref<1x64xf32, #tpu.memory_space<vmem>>, vector<1x64xf32>
      %169 = vector.shape_cast %168 : vector<1x64xf32> to vector<64xf32>
      %170 = vector.shape_cast %169 : vector<64xf32> to vector<1x64xf32>
      %171 = vector.broadcast %170 : vector<1x64xf32> to vector<16x64xf32>
      %172 = arith.addf %167, %171 : vector<16x64xf32>
      %173 = vector.extract_strided_slice %172 {offsets = [0, 0], sizes = [16, 32], strides = [1, 1]} : vector<16x64xf32> to vector<16x32xf32>
      %174 = vector.shape_cast %173 : vector<16x32xf32> to vector<1x16x32xf32>
      %175 = arith.truncf %174 : vector<1x16x32xf32> to vector<1x16x32xbf16>
      %c0_76 = arith.constant 0 : index
      %c0_77 = arith.constant 0 : index
      %c0_78 = arith.constant 0 : index
      %176 = vector.load %arg17[%c0_76, %c0_77, %c0_78] : memref<1x16x32xbf16, #tpu.memory_space<vmem>>, vector<1x16x32xbf16>
      tpu.vector_store %arg17[%c0_76, %c0_77, %c0_78], %175 {strides = array<i32>} : memref<1x16x32xbf16, #tpu.memory_space<vmem>>, vector<1x16x32xbf16>,
      %177 = vector.extract_strided_slice %172 {offsets = [0, 32], sizes = [16, 32], strides = [1, 1]} : vector<16x64xf32> to vector<16x32xf32>
      %178 = vector.shape_cast %177 : vector<16x32xf32> to vector<1x16x32xf32>
      %179 = arith.truncf %178 : vector<1x16x32xf32> to vector<1x16x32xbf16>
      %c0_79 = arith.constant 0 : index
      %c0_80 = arith.constant 0 : index
      %c0_81 = arith.constant 0 : index
      %180 = vector.load %arg18[%c0_79, %c0_80, %c0_81] : memref<1x16x32xbf16, #tpu.memory_space<vmem>>, vector<1x16x32xbf16>
      tpu.vector_store %arg18[%c0_79, %c0_80, %c0_81], %179 {strides = array<i32>} : memref<1x16x32xbf16, #tpu.memory_space<vmem>>, vector<1x16x32xbf16>,
    } else {
    }
    %c0 = arith.constant 0 : index
    %c0_1 = arith.constant 0 : index
    %c0_2 = arith.constant 0 : index
    %3 = vector.load %arg2[%c0, %c0_1, %c0_2] : memref<1x8x32xbf16, #tpu.memory_space<vmem>>, vector<1x8x32xbf16>
    %4 = arith.extf %3 : vector<1x8x32xbf16> to vector<1x8x32xf32>
    %5 = vector.shape_cast %4 : vector<1x8x32xf32> to vector<8x32xf32>
    %c0_3 = arith.constant 0 : index
    %c0_4 = arith.constant 0 : index
    %6 = vector.load %arg5[%c0_3, %c0_4] : memref<4x32xf32, #tpu.memory_space<vmem>>, vector<1x32xf32>
    %7 = vector.shape_cast %6 : vector<1x32xf32> to vector<32xf32>
    %c1 = arith.constant 1 : index
    %c0_5 = arith.constant 0 : index
    %8 = vector.load %arg5[%c1, %c0_5] : memref<4x32xf32, #tpu.memory_space<vmem>>, vector<1x32xf32>
    %9 = vector.shape_cast %8 : vector<1x32xf32> to vector<32xf32>
    %cst = arith.constant dense<0.000000e+00> : vector<8xf32>
    %10 = vector.multi_reduction <add>, %5, %cst [1] : vector<8x32xf32> to vector<8xf32>
    %11 = vector.shape_cast %10 : vector<8xf32> to vector<8x1xf32>
    %cst_6 = arith.constant 3.200000e+01 : f32
    %12 = vector.broadcast %cst_6 : f32 to vector<8x1xf32>
    %13 = arith.divf %11, %12 : vector<8x1xf32>
    %14 = vector.broadcast %13 : vector<8x1xf32> to vector<8x32xf32>
    %15 = arith.subf %5, %14 : vector<8x32xf32>
    %16 = arith.mulf %15, %15 : vector<8x32xf32>
    %cst_7 = arith.constant dense<0.000000e+00> : vector<8xf32>
    %17 = vector.multi_reduction <add>, %16, %cst_7 [1] : vector<8x32xf32> to vector<8xf32>
    %18 = vector.shape_cast %17 : vector<8xf32> to vector<8x1xf32>
    %cst_8 = arith.constant 3.200000e+01 : f32
    %19 = vector.broadcast %cst_8 : f32 to vector<8x1xf32>
    %20 = arith.divf %18, %19 : vector<8x1xf32>
    %21 = vector.broadcast %13 : vector<8x1xf32> to vector<8x32xf32>
    %22 = arith.subf %5, %21 : vector<8x32xf32>
    %cst_9 = arith.constant 9.99999974E-6 : f32
    %23 = vector.broadcast %cst_9 : f32 to vector<8x1xf32>
    %24 = arith.addf %20, %23 : vector<8x1xf32>
    %25 = math.rsqrt %24 : vector<8x1xf32>
    %26 = vector.broadcast %25 : vector<8x1xf32> to vector<8x32xf32>
    %27 = arith.mulf %22, %26 : vector<8x32xf32>
    %28 = vector.shape_cast %7 : vector<32xf32> to vector<1x32xf32>
    %29 = vector.broadcast %28 : vector<1x32xf32> to vector<8x32xf32>
    %30 = arith.mulf %27, %29 : vector<8x32xf32>
    %31 = vector.shape_cast %9 : vector<32xf32> to vector<1x32xf32>
    %32 = vector.broadcast %31 : vector<1x32xf32> to vector<8x32xf32>
    %33 = arith.addf %30, %32 : vector<8x32xf32>
    %34 = arith.truncf %33 : vector<8x32xf32> to vector<8x32xbf16>
    %c0_10 = arith.constant 0 : index
    %c0_11 = arith.constant 0 : index
    %35 = vector.load %arg11[%c0_10, %c0_11] : memref<32x32xbf16, #tpu.memory_space<vmem>>, vector<32x32xbf16>
    %cst_12 = arith.constant dense<0.000000e+00> : vector<8x32xf32>
    %36 = tpu.matmul %34, %35, %cst_12 {dimension_numbers = #tpu.dot_dimension_numbers<[1], [0], [0], [1], [0, 0, 1, 1], [], []>} : vector<8x32xbf16>, vector<32x32xbf16>, vector<8x32xf32> -> vector<8x32xf32>
    %c0_13 = arith.constant 0 : index
    %c0_14 = arith.constant 0 : index
    %37 = vector.load %arg7[%c0_13, %c0_14] : memref<3x32xf32, #tpu.memory_space<vmem>>, vector<1x32xf32>
    %38 = vector.shape_cast %37 : vector<1x32xf32> to vector<32xf32>
    %39 = vector.shape_cast %38 : vector<32xf32> to vector<1x32xf32>
    %40 = vector.broadcast %39 : vector<1x32xf32> to vector<8x32xf32>
    %41 = arith.addf %36, %40 : vector<8x32xf32>
    %cst_15 = arith.constant 0.176776692 : f32
    %42 = vector.broadcast %cst_15 : f32 to vector<8x32xf32>
    %43 = arith.mulf %41, %42 : vector<8x32xf32>
    %44 = vector.shape_cast %43 : vector<8x32xf32> to vector<1x8x32xf32>
    %45 = arith.truncf %44 : vector<1x8x32xf32> to vector<1x8x32xbf16>
    %c0_16 = arith.constant 0 : index
    %c0_17 = arith.constant 0 : index
    %c0_18 = arith.constant 0 : index
    %46 = vector.load %arg17[%c0_16, %c0_17, %c0_18] : memref<1x16x32xbf16, #tpu.memory_space<vmem>>, vector<1x16x32xbf16>
    "tpu.trace_start"() <{level = 10 : i32, message = "bnd,bmd->bnm"}> : () -> ()
    %cst_19 = arith.constant dense<0.000000e+00> : vector<1x8x16xf32>
    %47 = tpu.matmul %45, %46, %cst_19 {dimension_numbers = #tpu.dot_dimension_numbers<[2], [2], [1], [1], [0, 0, 0, 1, 1, 1], [0], [0]>} : vector<1x8x32xbf16>, vector<1x16x32xbf16>, vector<1x8x16xf32> -> vector<1x8x16xf32>
    "tpu.trace_stop"() : () -> ()
    %cst_20 = arith.constant dense<0xFF800000> : vector<1x8xf32>
    %48 = vector.multi_reduction <maximumf>, %47, %cst_20 [2] : vector<1x8x16xf32> to vector<1x8xf32>
    %49 = vector.shape_cast %48 : vector<1x8xf32> to vector<1x8x1xf32>
    %50 = vector.broadcast %49 : vector<1x8x1xf32> to vector<1x8x16xf32>
    %51 = arith.subf %47, %50 : vector<1x8x16xf32>
    %52 = math.exp %51 : vector<1x8x16xf32>
    %cst_21 = arith.constant dense<0.000000e+00> : vector<1x8xf32>
    %53 = vector.multi_reduction <add>, %52, %cst_21 [2] : vector<1x8x16xf32> to vector<1x8xf32>
    %54 = vector.shape_cast %53 : vector<1x8xf32> to vector<1x8x1xf32>
    %55 = tpu.reciprocal %54 {approx = true} : vector<1x8x1xf32> -> vector<1x8x1xf32>
    %56 = vector.broadcast %55 : vector<1x8x1xf32> to vector<1x8x16xf32>
    %57 = arith.mulf %52, %56 : vector<1x8x16xf32>
    %58 = arith.truncf %57 : vector<1x8x16xf32> to vector<1x8x16xbf16>
    %c0_22 = arith.constant 0 : index
    %c0_23 = arith.constant 0 : index
    %c0_24 = arith.constant 0 : index
    %59 = vector.load %arg18[%c0_22, %c0_23, %c0_24] : memref<1x16x32xbf16, #tpu.memory_space<vmem>>, vector<1x16x32xbf16>
    "tpu.trace_start"() <{level = 10 : i32, message = "bnm,bmd->bnd"}> : () -> ()
    %cst_25 = arith.constant dense<0.000000e+00> : vector<1x8x32xf32>
    %60 = tpu.matmul %58, %59, %cst_25 {dimension_numbers = #tpu.dot_dimension_numbers<[2], [1], [1], [2], [0, 0, 0, 1, 1, 2], [0], [0]>} : vector<1x8x16xbf16>, vector<1x16x32xbf16>, vector<1x8x32xf32> -> vector<1x8x32xf32>
    "tpu.trace_stop"() : () -> ()
    %61 = vector.shape_cast %60 : vector<1x8x32xf32> to vector<8x32xf32>
    %62 = arith.truncf %61 : vector<8x32xf32> to vector<8x32xbf16>
    %c0_26 = arith.constant 0 : index
    %c0_27 = arith.constant 0 : index
    %63 = vector.load %arg12[%c0_26, %c0_27] : memref<32x32xbf16, #tpu.memory_space<vmem>>, vector<32x32xbf16>
    %cst_28 = arith.constant dense<0.000000e+00> : vector<8x32xf32>
    %64 = tpu.matmul %62, %63, %cst_28 {dimension_numbers = #tpu.dot_dimension_numbers<[1], [0], [0], [1], [0, 0, 1, 1], [], []>} : vector<8x32xbf16>, vector<32x32xbf16>, vector<8x32xf32> -> vector<8x32xf32>
    %c1_29 = arith.constant 1 : index
    %c0_30 = arith.constant 0 : index
    %65 = vector.load %arg7[%c1_29, %c0_30] : memref<3x32xf32, #tpu.memory_space<vmem>>, vector<1x32xf32>
    %66 = vector.shape_cast %65 : vector<1x32xf32> to vector<32xf32>
    %67 = vector.shape_cast %66 : vector<32xf32> to vector<1x32xf32>
    %68 = vector.broadcast %67 : vector<1x32xf32> to vector<8x32xf32>
    %69 = arith.addf %64, %68 : vector<8x32xf32>
    %c2 = arith.constant 2 : index
    %c0_31 = arith.constant 0 : index
    %70 = vector.load %arg5[%c2, %c0_31] : memref<4x32xf32, #tpu.memory_space<vmem>>, vector<1x32xf32>
    %71 = vector.shape_cast %70 : vector<1x32xf32> to vector<32xf32>
    %c3 = arith.constant 3 : index
    %c0_32 = arith.constant 0 : index
    %72 = vector.load %arg5[%c3, %c0_32] : memref<4x32xf32, #tpu.memory_space<vmem>>, vector<1x32xf32>
    %73 = vector.shape_cast %72 : vector<1x32xf32> to vector<32xf32>
    %cst_33 = arith.constant dense<0.000000e+00> : vector<8xf32>
    %74 = vector.multi_reduction <add>, %69, %cst_33 [1] : vector<8x32xf32> to vector<8xf32>
    %75 = vector.shape_cast %74 : vector<8xf32> to vector<8x1xf32>
    %cst_34 = arith.constant 3.200000e+01 : f32
    %76 = vector.broadcast %cst_34 : f32 to vector<8x1xf32>
    %77 = arith.divf %75, %76 : vector<8x1xf32>
    %78 = vector.broadcast %77 : vector<8x1xf32> to vector<8x32xf32>
    %79 = arith.subf %69, %78 : vector<8x32xf32>
    %80 = arith.mulf %79, %79 : vector<8x32xf32>
    %cst_35 = arith.constant dense<0.000000e+00> : vector<8xf32>
    %81 = vector.multi_reduction <add>, %80, %cst_35 [1] : vector<8x32xf32> to vector<8xf32>
    %82 = vector.shape_cast %81 : vector<8xf32> to vector<8x1xf32>
    %cst_36 = arith.constant 3.200000e+01 : f32
    %83 = vector.broadcast %cst_36 : f32 to vector<8x1xf32>
    %84 = arith.divf %82, %83 : vector<8x1xf32>
    %85 = vector.broadcast %77 : vector<8x1xf32> to vector<8x32xf32>
    %86 = arith.subf %69, %85 : vector<8x32xf32>
    %cst_37 = arith.constant 9.99999974E-6 : f32
    %87 = vector.broadcast %cst_37 : f32 to vector<8x1xf32>
    %88 = arith.addf %84, %87 : vector<8x1xf32>
    %89 = math.rsqrt %88 : vector<8x1xf32>
    %90 = vector.broadcast %89 : vector<8x1xf32> to vector<8x32xf32>
    %91 = arith.mulf %86, %90 : vector<8x32xf32>
    %92 = vector.shape_cast %71 : vector<32xf32> to vector<1x32xf32>
    %93 = vector.broadcast %92 : vector<1x32xf32> to vector<8x32xf32>
    %94 = arith.mulf %91, %93 : vector<8x32xf32>
    %95 = vector.shape_cast %73 : vector<32xf32> to vector<1x32xf32>
    %96 = vector.broadcast %95 : vector<1x32xf32> to vector<8x32xf32>
    %97 = arith.addf %94, %96 : vector<8x32xf32>
    %98 = arith.truncf %97 : vector<8x32xf32> to vector<8x32xbf16>
    %c0_38 = arith.constant 0 : index
    %c0_39 = arith.constant 0 : index
    %99 = vector.load %arg13[%c0_38, %c0_39] : memref<32x32xbf16, #tpu.memory_space<vmem>>, vector<32x32xbf16>
    %cst_40 = arith.constant dense<0.000000e+00> : vector<8x32xf32>
    %100 = tpu.matmul %98, %99, %cst_40 {dimension_numbers = #tpu.dot_dimension_numbers<[1], [0], [0], [1], [0, 0, 1, 1], [], []>} : vector<8x32xbf16>, vector<32x32xbf16>, vector<8x32xf32> -> vector<8x32xf32>
    %c0_41 = arith.constant 0 : index
    %c0_42 = arith.constant 0 : index
    %101 = vector.load %arg8[%c0_41, %c0_42] : memref<1x32xf32, #tpu.memory_space<vmem>>, vector<1x32xf32>
    %102 = vector.shape_cast %101 : vector<1x32xf32> to vector<32xf32>
    %103 = vector.shape_cast %102 : vector<32xf32> to vector<1x32xf32>
    %104 = vector.broadcast %103 : vector<1x32xf32> to vector<8x32xf32>
    %105 = arith.addf %100, %104 : vector<8x32xf32>
    %cst_43 = arith.constant 5.000000e-01 : f32
    %106 = vector.broadcast %cst_43 : f32 to vector<8x32xf32>
    %107 = arith.mulf %106, %105 : vector<8x32xf32>
    %cst_44 = arith.constant 1.41421354 : f32
    %108 = vector.broadcast %cst_44 : f32 to vector<8x32xf32>
    %109 = arith.divf %105, %108 : vector<8x32xf32>
    %110 = math.erf %109 : vector<8x32xf32>
    %cst_45 = arith.constant 1.000000e+00 : f32
    %111 = vector.broadcast %cst_45 : f32 to vector<8x32xf32>
    %112 = arith.addf %111, %110 : vector<8x32xf32>
    %113 = arith.mulf %107, %112 : vector<8x32xf32>
    %114 = arith.truncf %113 : vector<8x32xf32> to vector<8x32xbf16>
    %c0_46 = arith.constant 0 : index
    %c0_47 = arith.constant 0 : index
    %115 = vector.load %arg14[%c0_46, %c0_47] : memref<32x32xbf16, #tpu.memory_space<vmem>>, vector<32x32xbf16>
    %cst_48 = arith.constant dense<0.000000e+00> : vector<8x32xf32>
    %116 = tpu.matmul %114, %115, %cst_48 {dimension_numbers = #tpu.dot_dimension_numbers<[1], [0], [0], [1], [0, 0, 1, 1], [], []>} : vector<8x32xbf16>, vector<32x32xbf16>, vector<8x32xf32> -> vector<8x32xf32>
    %c2_49 = arith.constant 2 : index
    %c0_50 = arith.constant 0 : index
    %117 = vector.load %arg7[%c2_49, %c0_50] : memref<3x32xf32, #tpu.memory_space<vmem>>, vector<1x32xf32>
    %118 = vector.shape_cast %117 : vector<1x32xf32> to vector<32xf32>
    %119 = vector.shape_cast %118 : vector<32xf32> to vector<1x32xf32>
    %120 = vector.broadcast %119 : vector<1x32xf32> to vector<8x32xf32>
    %121 = arith.addf %116, %120 : vector<8x32xf32>
    %122 = arith.addf %69, %121 : vector<8x32xf32>
    %123 = arith.truncf %122 : vector<8x32xf32> to vector<8x32xbf16>
    %c0_51 = arith.constant 0 : index
    %c0_52 = arith.constant 0 : index
    %124 = vector.load %arg15[%c0_51, %c0_52] : memref<32x16xbf16, #tpu.memory_space<vmem>>, vector<32x16xbf16>
    %cst_53 = arith.constant dense<0.000000e+00> : vector<8x16xf32>
    %125 = tpu.matmul %123, %124, %cst_53 {dimension_numbers = #tpu.dot_dimension_numbers<[1], [0], [0], [1], [0, 0, 1, 1], [], []>} : vector<8x32xbf16>, vector<32x16xbf16>, vector<8x16xf32> -> vector<8x16xf32>
    %c0_54 = arith.constant 0 : index
    %c0_55 = arith.constant 0 : index
    %126 = vector.load %arg9[%c0_54, %c0_55] : memref<1x16xf32, #tpu.memory_space<vmem>>, vector<1x16xf32>
    %127 = vector.shape_cast %126 : vector<1x16xf32> to vector<16xf32>
    %128 = vector.shape_cast %127 : vector<16xf32> to vector<1x16xf32>
    %129 = vector.broadcast %128 : vector<1x16xf32> to vector<8x16xf32>
    %130 = arith.addf %125, %129 : vector<8x16xf32>
    %131 = vector.shape_cast %130 : vector<8x16xf32> to vector<1x8x16xf32>
    %132 = arith.truncf %131 : vector<1x8x16xf32> to vector<1x8x16xbf16>
    %c0_56 = arith.constant 0 : index
    %c0_57 = arith.constant 0 : index
    %c0_58 = arith.constant 0 : index
    %133 = vector.load %arg16[%c0_56, %c0_57, %c0_58] : memref<1x8x16xbf16, #tpu.memory_space<vmem>>, vector<1x8x16xbf16>
    tpu.vector_store %arg16[%c0_56, %c0_57, %c0_58], %132 {strides = array<i32>} : memref<1x8x16xbf16, #tpu.memory_space<vmem>>, vector<1x8x16xbf16>,
    return
  }
  func.func @transform_0(%arg0: i32, %arg1: i32) -> (i32, i32, i32) {
    %c0_i32 = arith.constant 0 : i32
    %c0_i32_0 = arith.constant 0 : i32
    return %arg0, %arg1, %c0_i32 : i32, i32, i32
  }
  func.func @transform_1(%arg0: i32, %arg1: i32) -> (i32, i32, i32) {
    %c0_i32 = arith.constant 0 : i32
    %c0_i32_0 = arith.constant 0 : i32
    %c0_i32_1 = arith.constant 0 : i32
    return %arg0, %c0_i32, %c0_i32_0 : i32, i32, i32
  }
  func.func @transform_2(%arg0: i32, %arg1: i32) -> (i32, i32) {
    %c0_i32 = arith.constant 0 : i32
    %c0_i32_0 = arith.constant 0 : i32
    %c0_i32_1 = arith.constant 0 : i32
    return %c0_i32, %c0_i32_0 : i32, i32
  }
  func.func @transform_3(%arg0: i32, %arg1: i32) -> (i32, i32) {
    %c0_i32 = arith.constant 0 : i32
    %c0_i32_0 = arith.constant 0 : i32
    %c0_i32_1 = arith.constant 0 : i32
    return %c0_i32, %c0_i32_0 : i32, i32
  }
  func.func @transform_4(%arg0: i32, %arg1: i32) -> (i32, i32) {
    %c0_i32 = arith.constant 0 : i32
    %c0_i32_0 = arith.constant 0 : i32
    %c0_i32_1 = arith.constant 0 : i32
    return %c0_i32, %c0_i32_0 : i32, i32
  }
  func.func @transform_5(%arg0: i32, %arg1: i32) -> (i32, i32) {
    %c0_i32 = arith.constant 0 : i32
    %c0_i32_0 = arith.constant 0 : i32
    %c0_i32_1 = arith.constant 0 : i32
    return %c0_i32, %c0_i32_0 : i32, i32
  }
  func.func @transform_6(%arg0: i32, %arg1: i32) -> (i32, i32) {
    %c0_i32 = arith.constant 0 : i32
    %c0_i32_0 = arith.constant 0 : i32
    %c0_i32_1 = arith.constant 0 : i32
    return %c0_i32, %c0_i32_0 : i32, i32
  }
  func.func @transform_7(%arg0: i32, %arg1: i32) -> (i32, i32) {
    %c0_i32 = arith.constant 0 : i32
    %c0_i32_0 = arith.constant 0 : i32
    %c0_i32_1 = arith.constant 0 : i32
    return %c0_i32, %c0_i32_0 : i32, i32
  }
  func.func @transform_8(%arg0: i32, %arg1: i32) -> (i32, i32) {
    %c0_i32 = arith.constant 0 : i32
    %c0_i32_0 = arith.constant 0 : i32
    %c0_i32_1 = arith.constant 0 : i32
    return %c0_i32, %c0_i32_0 : i32, i32
  }
  func.func @transform_9(%arg0: i32, %arg1: i32) -> (i32, i32) {
    %c0_i32 = arith.constant 0 : i32
    %c0_i32_0 = arith.constant 0 : i32
    %c0_i32_1 = arith.constant 0 : i32
    return %c0_i32, %c0_i32_0 : i32, i32
  }
  func.func @transform_10(%arg0: i32, %arg1: i32) -> (i32, i32) {
    %c0_i32 = arith.constant 0 : i32
    %c0_i32_0 = arith.constant 0 : i32
    %c0_i32_1 = arith.constant 0 : i32
    return %c0_i32, %c0_i32_0 : i32, i32
  }
  func.func @transform_11(%arg0: i32, %arg1: i32) -> (i32, i32) {
    %c0_i32 = arith.constant 0 : i32
    %c0_i32_0 = arith.constant 0 : i32
    %c0_i32_1 = arith.constant 0 : i32
    return %c0_i32, %c0_i32_0 : i32, i32
  }
  func.func @transform_12(%arg0: i32, %arg1: i32) -> (i32, i32) {
    %c0_i32 = arith.constant 0 : i32
    %c0_i32_0 = arith.constant 0 : i32
    %c0_i32_1 = arith.constant 0 : i32
    return %c0_i32, %c0_i32_0 : i32, i32
  }
  func.func @transform_13(%arg0: i32, %arg1: i32) -> (i32, i32) {
    %c0_i32 = arith.constant 0 : i32
    %c0_i32_0 = arith.constant 0 : i32
    %c0_i32_1 = arith.constant 0 : i32
    return %c0_i32, %c0_i32_0 : i32, i32
  }
  func.func @transform_14(%arg0: i32, %arg1: i32) -> (i32, i32, i32) {
    %c0_i32 = arith.constant 0 : i32
    %c0_i32_0 = arith.constant 0 : i32
    return %arg0, %arg1, %c0_i32 : i32, i32, i32
  }
}

</mosaic_0001>

<bundles_post_ra>
// kernel: tpu_custom_call.1
= control target key start
LH: loop header
LB: loop body
LE: loop exit
PB: predicated region body
PF: predicated region fallthrough
CT: control target
= control target key end

     0   :  { %s3078_s0 = inlined_call_operand.hbm [shape: bf16[2,8,32], index: 0, kind: input, shape index: {}]   ;;  %s3079_s1 = inlined_call_operand.hbm [shape: bf16[2,16,32], index: 1, kind: input, shape index: {}]   ;;  %s3080_s2 = inlined_call_operand.hbm [shape: f32[2,32], index: 2, kind: input, shape index: {}]   ;;  %s3081_s3 = inlined_call_operand.hbm [shape: f32[4,32], index: 3, kind: input, shape index: {}]   ;;  %s3082_s4 = inlined_call_operand.hbm [shape: f32[1,64], index: 4, kind: input, shape index: {}]   ;;  %s3083_s5 = inlined_call_operand.hbm [shape: f32[3,32], index: 5, kind: input, shape index: {}]   ;;  %s3084_s6 = inlined_call_operand.hbm [shape: f32[1,32], index: 6, kind: input, shape index: {}]   ;;  %s3085_s7 = inlined_call_operand.hbm [shape: f32[1,16], index: 7, kind: input, shape index: {}]   ;;  %s3086_s8 = inlined_call_operand.hbm [shape: bf16[32,64], index: 8, kind: input, shape index: {}]   ;;  %s3087_s9 = inlined_call_operand.hbm [shape: bf16[32,32], index: 9, kind: input, shape index: {}]   ;;  %s3088_s10 = inlined_call_operand.hbm [shape: bf16[32,32], index: 10, kind: input, shape index: {}]   ;;  %s3089_s11 = inlined_call_operand.hbm [shape: bf16[32,32], index: 11, kind: input, shape index: {}]   ;;  %s3090_s12 = inlined_call_operand.hbm [shape: bf16[32,32], index: 12, kind: input, shape index: {}]   ;;  %s3091_s13 = inlined_call_operand.hbm [shape: bf16[32,16], index: 13, kind: input, shape index: {}]   ;;  %s3092_s14 = inlined_call_operand.hbm [shape: bf16[2,8,16], index: 14, kind: output, shape index: {}]  }
   0x1   :  { %3114 = sst [smem:[#allocation44_spill]] %s3078_s0 }
   0x2   :  { %3115 = sst [smem:[#allocation45_spill]] %s3079_s1 }
   0x3   :  { %3116 = sst [smem:[#allocation46_spill]] %s3081_s3 }
   0x4   :  { %3117 = sst [smem:[#allocation47_spill]] %s3083_s5 }
   0x5   :  { %3118 = sst [smem:[#allocation48_spill]] %s3092_s14 }
   0x6   :  { %19 = vsyncpa [#allocation5], 0 }
   0x7   :  { %21 = vsyncpa [#allocation5 + $0x1], 0 }
   0x8   :  { %22 = vsyncpa [#allocation8], 0 }
   0x9   :  { %23 = vsyncpa [#allocation11], 0 }
   0xa   :  { %24 = vsyncpa [#allocation14], 0 }
   0xb   :  { %25 = vsyncpa [#allocation17], 0 }
   0xc   :  { %26 = vsyncpa [#allocation20], 0 }
   0xd   :  { %27 = vsyncpa [#allocation23], 0 }
   0xe   :  { %28 = vsyncpa [#allocation26], 0 }
   0xf   :  { %29 = vsyncpa [#allocation6], 0 }
  0x10   :  { %31 = vsyncpa [#allocation6 + $0x1], 0  ;;  %s2516_s29 = smov 0   ;;  %s2518_s30 = smov 0  }
  0x11   :  { %s2520_s15 = smov 0   ;;  %s2522_s16 = smov 0  }
  0x12   :  { %s2524_s17 = smov 0   ;;  %s2526_s18 = smov 0  }
  0x13 LB: > { %3119 = sst [smem:[#allocation38_spill]] %s2399_s29  ;;  %s3093_s19 = sadd.s32 4294967295, %s2419_s18   ;;  %s2419_s18 = sphi %s2526_s18, %s37_s18   ;;  %s2415_s17 = sphi %s2524_s17, %s3160_s17   ;;  %s2411_s16 = sphi %s2522_s16, %s3159_s16   ;;  %s2407_s15 = sphi %s2520_s15, %s3158_s15   ;;  %s2403_s30 = sphi %s2518_s30, %s3157_s30   ;;  %s2399_s29 = sphi %s2516_s29, %s3156_s29  }
  0x14   : > { %3120 = sst [smem:[#allocation39_spill]] %s2411_s16  ;;  %s1532_s20 = sadd.s32 4294967294, %s2419_s18  }
  0x15   : > { %p71_p0 = scmp.ne.s32.totalorder %s2403_s30, %s2399_s29  ;;  %p2552_p1 = scmp.eq.s32.totalorder %s3093_s19, 0 }
  0x16   : > { %p381_p2 = scmp.eq.s32.totalorder %s1532_s20, 1  ;;  %p1533_p3 = scmp.ge.s32.totalorder %s2419_s18, 1 }
  0x17   : > { %s3121_s21 = scalar_select %p2552_p1, 1, 0 }
  0x18   : > { %p2559_p4 = por %p2552_p1, %p71_p0  ;;  %p388_p5 = scmp.lt.s32.totalorder %s2419_s18, 3 }
  0x19   : > { %3122 = sst [smem:[#allocation40_spill]] %s3121_s21  ;;  %p2564_p6 = por %p381_p2, %p71_p0 }
  0x1a   : > { %s3123_s22 = scalar_select %p2559_p4, 1, 0 }
  0x1b   : > { %s3125_s23 = scalar_select %p2564_p6, 1, 0 }
  0x1c   : > { %3124 = sst [smem:[#allocation41_spill]] %s3123_s22  ;;  %s1602_s24 = sshll.u32 %s2411_s16, 7 }
  0x1d   : > { %3126 = sst [smem:[#allocation42_spill]] %s3125_s23  ;;  %p2569_p7 = pnand %p1533_p3, %p388_p5 }
  0x1e   : > { %s3129_s1 = sld [smem:[#allocation45_spill]]  ;;  %s2421_s20 = smov [#allocation7]  }
  0x1f   : > { %s3127_s25 = scalar_select %p2569_p7, 1, 0 }
  0x20   : > { %p1743_p8 = pneg %p2569_p7  ;;  %s403_s19 = sshll.u32 %s2421_s20, 4  ;;  %s2580_s19 = int_to_ptr.vmem [resolvable:$true] %s403_s19 }
  0x21   : > { %3128 = sst [smem:[#allocation43_spill]] %s3127_s25 }
  0x22   : > { %p2584_p9 = pnand %p1743_p8, %p2559_p4  ;;  %p2590_p10 = pnand %p1743_p8, %p2552_p1 }
  0x24   : > { %s2576_s28 = scalar_lea.hbm %s3129_s1, %s1602_s24  ;;  %p1911_p13 = pneg %p2584_p9 }
  0x25   : > { %s3131_s24 = scalar_select %p2590_p10, 1, 0 }
  0x26   : > { %s1909_s26 = scalar_lea.hbm %s2576_s28, 128  ;;  %s1914_s29 = scalar_lea.hbm %s3129_s1, 256 }
  0x27   : > { %p1910_p12 = scmp.ne.s32.totalorder %s2576_s28, %s1909_s26  ;;  %p1915_p3 = scmp.lt.u32.totalorder %s2576_s28, %s3129_s1 }
  0x28   : > { %p1916_p5 = scmp.lt.u32.totalorder %s1914_s29, %s1909_s26  ;;  %p1918_p6 = scmp.lt.u32.totalorder %s1909_s26, %s2576_s28 }
  0x29   : > { %p1912_p0 = pnand %p1911_p13, %p1910_p12 }
  0x2a   : > { %p1917_p8 = por %p1916_p5, %p1915_p3 }
  0x2b   : > { %p1913_p2 = pneg %p1912_p0 }
  0x2c   : > { %p1919_p11 = por %p1918_p6, %p1917_p8 }
  0x2e   : > { %p1920_p1 = pnand %p1919_p11, %p1913_p2 }
  0x30   : > { %1923 = shalt.err (!%p1920_p1)
}
  0x31   : > { %s1924_s21 = scalar_lea.vmem %s2580_s19, 128  ;;  %p1932_p7 = scmp.lt.s32.totalorder %s2580_s19, %s2580_s19 }
  0x32   : > { %p1925_p12 = scmp.ne.s32.totalorder %s2580_s19, %s1924_s21  ;;  %p1933_p10 = scmp.lt.s32.totalorder %s1924_s21, %s1924_s21 }
  0x34   : > { %p1927_p0 = pnand %p1925_p12, %p1911_p13  ;;  %p1934_p3 = por %p1933_p10, %p1932_p7 }
  0x36   : > { %p1928_p4 = pneg %p1927_p0 }
  0x38   : > { %p1935_p5 = pnand %p1934_p3, %p1928_p4 }
  0x3a   : > { %1938 = shalt.err (!%p1935_p5)
}
  0x3b   : > { %s3109_s14 = smov 64   ;;  %s3111_s29 = smov 4  }
  0x3c   : > { %1746 = dma.hbm_to_vmem [thread:$0]  (!%p2584_p9), %s2576_s28, 128, %s2580_s19, [#allocation8], %s3109_s14, %s3109_s14, %s3111_s29  }
  0x3d   : > { %s2424_s16 = smov [#allocation10]   ;;  %s3132_s3 = sld [smem:[#allocation46_spill]] }
  0x3e   : > { %s428_s26 = sshll.u32 %s2424_s16, 4  ;;  %p3133_p4 = scmp.ne.s32.totalorder %s3131_s24, 0  ;;  %s429_s26 = int_to_ptr.vmem [resolvable:$true] %s428_s26 }
  0x40   : > { %p2632_p6 = pneg %p3133_p4 }
  0x43   : > { %s1939_s21 = scalar_lea.hbm %s3132_s3, 64 }
  0x44   : > { %p1940_p1 = scmp.ne.s32.totalorder %s3132_s3, %s1939_s21  ;;  %p1946_p10 = scmp.lt.u32.totalorder %s1939_s21, %s3132_s3 }
  0x46   : > { %p1942_p7 = pnand %p2632_p6, %p1940_p1 }
  0x48   : > { %p1943_p9 = pneg %p1942_p7 }
  0x4a   : > { %p1948_p11 = pnand %p1946_p10, %p1943_p9 }
  0x4c   : > { %1951 = shalt.err (!%p1948_p11)
}
  0x4d   : > { %s1952_s28 = scalar_lea.vmem %s429_s26, 64  ;;  %p1960_p12 = scmp.lt.s32.totalorder %s429_s26, %s429_s26 }
  0x4e   : > { %p1953_p13 = scmp.ne.s32.totalorder %s429_s26, %s1952_s28  ;;  %p1961_p0 = scmp.lt.s32.totalorder %s1952_s28, %s1952_s28 }
  0x50   : > { %p1955_p2 = pnand %p1953_p13, %p2632_p6  ;;  %p1962_p3 = por %p1961_p0, %p1960_p12 }
  0x52   : > { %p1956_p8 = pneg %p1955_p2 }
  0x54   : > { %p1963_p5 = pnand %p1962_p3, %p1956_p8 }
  0x56   : > { %1966 = shalt.err (!%p1963_p5)
}
  0x57   : > { %1752 = dma.hbm_to_vmem [thread:$0]  (!%p3133_p4), %s3132_s3, 64, %s429_s26, [#allocation11]  }
  0x58   : > { %s2425_s16 = smov [#allocation13]   ;;  %s2426_s20 = smov [#allocation16]  }
  0x59   : > { %s450_s27 = sshll.u32 %s2425_s16, 4  ;;  %s472_s21 = sshll.u32 %s2426_s20, 4  ;;  %s451_s27 = int_to_ptr.vmem [resolvable:$true] %s450_s27  ;;  %s473_s21 = int_to_ptr.vmem [resolvable:$true] %s472_s21 }
  0x5a   : > { %s3135_s5 = sld [smem:[#allocation47_spill]] }
  0x60   : > { %s1967_s14 = scalar_lea.hbm %s3135_s5, 64 }
  0x61   : > { %p1968_p1 = scmp.ne.s32.totalorder %s3135_s5, %s1967_s14  ;;  %p1974_p10 = scmp.lt.u32.totalorder %s1967_s14, %s3135_s5 }
  0x63   : > { %p1970_p7 = pnand %p1968_p1, %p2632_p6 }
  0x65   : > { %p1971_p9 = pneg %p1970_p7 }
  0x67   : > { %p1976_p11 = pnand %p1974_p10, %p1971_p9 }
  0x69   : > { %1979 = shalt.err (!%p1976_p11)
}
  0x6a   : > { %s1980_s26 = scalar_lea.vmem %s451_s27, 64  ;;  %p1988_p12 = scmp.lt.s32.totalorder %s451_s27, %s451_s27 }
  0x6b   : > { %p1981_p13 = scmp.ne.s32.totalorder %s451_s27, %s1980_s26  ;;  %p1989_p0 = scmp.lt.s32.totalorder %s1980_s26, %s1980_s26 }
  0x6d   : > { %p1983_p2 = pnand %p1981_p13, %p2632_p6  ;;  %p1990_p3 = por %p1989_p0, %p1988_p12 }
  0x6f   : > { %p1984_p8 = pneg %p1983_p2 }
  0x71   : > { %p1991_p5 = pnand %p1990_p3, %p1984_p8 }
  0x73   : > { %1994 = shalt.err (!%p1991_p5)
}
  0x74   : > { %1758 = dma.hbm_to_vmem [thread:$0]  (!%p3133_p4), %s3135_s5, 64, %s451_s27, [#allocation14]  }
  0x75   : > { %s1995_s16 = scalar_lea.hbm %s3085_s7, 16 }
  0x76   : > { %p1996_p1 = scmp.ne.s32.totalorder %s3085_s7, %s1995_s16  ;;  %p2002_p10 = scmp.lt.u32.totalorder %s1995_s16, %s3085_s7 }
  0x78   : > { %p1998_p7 = pnand %p1996_p1, %p2632_p6 }
  0x7a   : > { %p1999_p9 = pneg %p1998_p7 }
  0x7c   : > { %p2004_p11 = pnand %p2002_p10, %p1999_p9 }
  0x7e   : > { %2007 = shalt.err (!%p2004_p11)
}
  0x7f   : > { %s2008_s1 = scalar_lea.vmem %s473_s21, 16  ;;  %s2015_s27 = scalar_lea.vmem %s473_s21, 32 }
  0x80   : > { %p2009_p13 = scmp.ne.s32.totalorder %s473_s21, %s2008_s1  ;;  %p2016_p12 = scmp.lt.s32.totalorder %s473_s21, %s473_s21 }
  0x81   : > { %p2017_p0 = scmp.lt.s32.totalorder %s2015_s27, %s2008_s1 }
  0x82   : > { %p2011_p2 = pnand %p2009_p13, %p2632_p6 }
  0x83   : > { %p2018_p3 = por %p2017_p0, %p2016_p12 }
  0x84   : > { %p2012_p8 = pneg %p2011_p2 }
  0x86   : > { %p2019_p5 = pnand %p2018_p3, %p2012_p8 }
  0x88   : > { %2022 = shalt.err (!%p2019_p5)
}
  0x89   : > { %1764 = dma.hbm_to_vmem [thread:$0]  (!%p3133_p4), %s3085_s7, 16, %s473_s21, [#allocation17]  }
  0x8a   : > { %s2427_s22 = smov [#allocation19]   ;;  %s2428_s14 = smov [#allocation22]  }
  0x8b   : > { %s495_s0 = sshll.u32 %s2427_s22, 4  ;;  %s521_s16 = sshll.u32 %s2428_s14, 4  ;;  %s496_s0 = int_to_ptr.vmem [resolvable:$true] %s495_s0  ;;  %s522_s16 = int_to_ptr.vmem [resolvable:$true] %s521_s16 }
  0x8c   : > { %s2023_s23 = scalar_lea.hbm %s3087_s9, 256 }
  0x8d   : > { %p2024_p1 = scmp.ne.s32.totalorder %s3087_s9, %s2023_s23  ;;  %p2030_p10 = scmp.lt.u32.totalorder %s2023_s23, %s3087_s9 }
  0x8f   : > { %p2026_p7 = pnand %p2024_p1, %p2632_p6 }
  0x91   : > { %p2027_p9 = pneg %p2026_p7 }
  0x93   : > { %p2032_p11 = pnand %p2030_p10, %p2027_p9 }
  0x95   : > { %2035 = shalt.err (!%p2032_p11)
}
  0x96   : > { %s2036_s21 = scalar_lea.vmem %s496_s0, 256  ;;  %p2044_p12 = scmp.lt.s32.totalorder %s496_s0, %s496_s0 }
  0x97   : > { %p2037_p13 = scmp.ne.s32.totalorder %s496_s0, %s2036_s21  ;;  %p2045_p0 = scmp.lt.s32.totalorder %s2036_s21, %s2036_s21 }
  0x99   : > { %p2039_p2 = pnand %p2037_p13, %p2632_p6  ;;  %p2046_p3 = por %p2045_p0, %p2044_p12 }
  0x9b   : > { %p2040_p8 = pneg %p2039_p2 }
  0x9d   : > { %p2047_p5 = pnand %p2046_p3, %p2040_p8 }
  0x9f   : > { %2050 = shalt.err (!%p2047_p5)
}
  0xa0   : > { %s3136_s29 = smov 4   ;;  %s3137_s22 = smov 64  }
  0xa1   : > { %1770 = dma.hbm_to_vmem [thread:$0]  (!%p3133_p4), %s3087_s9, 256, %s496_s0, [#allocation20], %s3137_s22, %s3137_s22, %s3136_s29  }
  0xa2   : > { %s2051_s28 = scalar_lea.hbm %s3089_s11, 256 }
  0xa3   : > { %p2052_p1 = scmp.ne.s32.totalorder %s3089_s11, %s2051_s28  ;;  %p2058_p10 = scmp.lt.u32.totalorder %s2051_s28, %s3089_s11 }
  0xa5   : > { %p2054_p7 = pnand %p2052_p1, %p2632_p6 }
  0xa7   : > { %p2055_p9 = pneg %p2054_p7 }
  0xa9   : > { %p2060_p11 = pnand %p2058_p10, %p2055_p9 }
  0xab   : > { %2063 = shalt.err (!%p2060_p11)
}
  0xac   : > { %s2064_s14 = scalar_lea.vmem %s522_s16, 256  ;;  %p2072_p12 = scmp.lt.s32.totalorder %s522_s16, %s522_s16 }
  0xad   : > { %p2065_p13 = scmp.ne.s32.totalorder %s522_s16, %s2064_s14  ;;  %p2073_p0 = scmp.lt.s32.totalorder %s2064_s14, %s2064_s14 }
  0xaf   : > { %p2067_p2 = pnand %p2065_p13, %p2632_p6  ;;  %p2074_p3 = por %p2073_p0, %p2072_p12 }
  0xb1   : > { %p2068_p8 = pneg %p2067_p2 }
  0xb3   : > { %p2075_p5 = pnand %p2074_p3, %p2068_p8 }
  0xb5   : > { %2078 = shalt.err (!%p2075_p5)
}
  0xb6   : > { %1776 = dma.hbm_to_vmem [thread:$0]  (!%p3133_p4), %s3089_s11, 256, %s522_s16, [#allocation23], %s3137_s22, %s3137_s22, %s3136_s29  }
  0xb7   : > { %s2429_s19 = smov [#allocation9]   ;;  %s2430_s28 = smov [#allocation12]  }
  0xb8   : > { %s417_s23 = sshll.u32 %s2429_s19, 4  ;;  %s439_s1 = sshll.u32 %s2430_s28, 4  ;;  %s418_s23 = int_to_ptr.vmem [resolvable:$true] %s417_s23  ;;  %s440_s1 = int_to_ptr.vmem [resolvable:$true] %s439_s1 }
  0xb9   : > { %s2079_s21 = scalar_lea.hbm %s3080_s2, 32 }
  0xba   : > { %p2080_p1 = scmp.ne.s32.totalorder %s3080_s2, %s2079_s21  ;;  %p2086_p10 = scmp.lt.u32.totalorder %s2079_s21, %s3080_s2 }
  0xbc   : > { %p2082_p7 = pnand %p2080_p1, %p2632_p6 }
  0xbe   : > { %p2083_p9 = pneg %p2082_p7 }
  0xc0   : > { %p2088_p11 = pnand %p2086_p10, %p2083_p9 }
  0xc2   : > { %2091 = shalt.err (!%p2088_p11)
}
  0xc3   : > { %s2092_s16 = scalar_lea.vmem %s418_s23, 32  ;;  %p2100_p12 = scmp.lt.s32.totalorder %s418_s23, %s418_s23 }
  0xc4   : > { %p2093_p13 = scmp.ne.s32.totalorder %s418_s23, %s2092_s16  ;;  %p2101_p0 = scmp.lt.s32.totalorder %s2092_s16, %s2092_s16 }
  0xc6   : > { %p2095_p2 = pnand %p2093_p13, %p2632_p6  ;;  %p2102_p3 = por %p2101_p0, %p2100_p12 }
  0xc8   : > { %p2096_p8 = pneg %p2095_p2 }
  0xca   : > { %p2103_p5 = pnand %p2102_p3, %p2096_p8 }
  0xcc   : > { %2106 = shalt.err (!%p2103_p5)
}
  0xcd   : > { %1749 = dma.hbm_to_vmem [thread:$0]  (!%p3133_p4), %s3080_s2, 32, %s418_s23, [#allocation8]  }
  0xce   : > { %s2107_s28 = scalar_lea.hbm %s3082_s4, 16 }
  0xcf   : > { %p2108_p1 = scmp.ne.s32.totalorder %s3082_s4, %s2107_s28  ;;  %p2114_p10 = scmp.lt.u32.totalorder %s2107_s28, %s3082_s4 }
  0xd1   : > { %p2110_p7 = pnand %p2108_p1, %p2632_p6 }
  0xd3   : > { %p2111_p9 = pneg %p2110_p7 }
  0xd5   : > { %p2116_p11 = pnand %p2114_p10, %p2111_p9 }
  0xd7   : > { %2119 = shalt.err (!%p2116_p11)
}
  0xd8   : > { %s2120_s0 = scalar_lea.vmem %s440_s1, 16  ;;  %s2127_s23 = scalar_lea.vmem %s440_s1, 32 }
  0xd9   : > { %p2121_p13 = scmp.ne.s32.totalorder %s440_s1, %s2120_s0  ;;  %p2128_p12 = scmp.lt.s32.totalorder %s440_s1, %s440_s1 }
  0xda   : > { %p2129_p0 = scmp.lt.s32.totalorder %s2127_s23, %s2120_s0 }
  0xdb   : > { %p2123_p2 = pnand %p2121_p13, %p2632_p6 }
  0xdc   : > { %p2130_p3 = por %p2129_p0, %p2128_p12 }
  0xdd   : > { %p2124_p8 = pneg %p2123_p2 }
  0xdf   : > { %p2131_p5 = pnand %p2130_p3, %p2124_p8 }
  0xe1   : > { %2134 = shalt.err (!%p2131_p5)
}
  0xe2   : > { %1755 = dma.hbm_to_vmem [thread:$0]  (!%p3133_p4), %s3082_s4, 16, %s440_s1, [#allocation11]  }
  0xe3   : > { %s2431_s20 = smov [#allocation15]   ;;  %s2432_s19 = smov [#allocation18]  }
  0xe4   : > { %s461_s5 = sshll.u32 %s2431_s20, 4  ;;  %s482_s28 = sshll.u32 %s2432_s19, 4  ;;  %s462_s5 = int_to_ptr.vmem [resolvable:$true] %s461_s5  ;;  %s483_s28 = int_to_ptr.vmem [resolvable:$true] %s482_s28 }
  0xe5   : > { %s2135_s21 = scalar_lea.hbm %s3084_s6, 16 }
  0xe6   : > { %p2136_p1 = scmp.ne.s32.totalorder %s3084_s6, %s2135_s21  ;;  %p2142_p10 = scmp.lt.u32.totalorder %s2135_s21, %s3084_s6 }
  0xe8   : > { %p2138_p7 = pnand %p2136_p1, %p2632_p6 }
  0xea   : > { %p2139_p9 = pneg %p2138_p7 }
  0xec   : > { %p2144_p11 = pnand %p2142_p10, %p2139_p9 }
  0xee   : > { %2147 = shalt.err (!%p2144_p11)
}
  0xef   : > { %s2148_s1 = scalar_lea.vmem %s462_s5, 16  ;;  %s2155_s3 = scalar_lea.vmem %s462_s5, 32 }
  0xf0   : > { %p2149_p13 = scmp.ne.s32.totalorder %s462_s5, %s2148_s1  ;;  %p2156_p12 = scmp.lt.s32.totalorder %s462_s5, %s462_s5 }
  0xf1   : > { %p2157_p0 = scmp.lt.s32.totalorder %s2155_s3, %s2148_s1 }
  0xf2   : > { %p2151_p2 = pnand %p2149_p13, %p2632_p6 }
  0xf3   : > { %p2158_p3 = por %p2157_p0, %p2156_p12 }
  0xf4   : > { %p2152_p8 = pneg %p2151_p2 }
  0xf6   : > { %p2159_p5 = pnand %p2158_p3, %p2152_p8 }
  0xf8   : > { %2162 = shalt.err (!%p2159_p5)
}
  0xf9   : > { %1761 = dma.hbm_to_vmem [thread:$0]  (!%p3133_p4), %s3084_s6, 16, %s462_s5, [#allocation14]  }
  0xfa   : > { %s2163_s21 = scalar_lea.hbm %s3086_s8, 256 }
  0xfb   : > { %p2164_p1 = scmp.ne.s32.totalorder %s3086_s8, %s2163_s21  ;;  %p2170_p10 = scmp.lt.u32.totalorder %s2163_s21, %s3086_s8 }
  0xfd   : > { %p2166_p7 = pnand %p2164_p1, %p2632_p6 }
  0xff   : > { %p2167_p9 = pneg %p2166_p7 }
 0x101   : > { %p2172_p11 = pnand %p2170_p10, %p2167_p9 }
 0x103   : > { %2175 = shalt.err (!%p2172_p11)
}
 0x104   : > { %s2176_s1 = scalar_lea.vmem %s483_s28, 256  ;;  %p2184_p12 = scmp.lt.s32.totalorder %s483_s28, %s483_s28 }
 0x105   : > { %p2177_p13 = scmp.ne.s32.totalorder %s483_s28, %s2176_s1  ;;  %p2185_p0 = scmp.lt.s32.totalorder %s2176_s1, %s2176_s1 }
 0x107   : > { %p2179_p2 = pnand %p2177_p13, %p2632_p6  ;;  %p2186_p3 = por %p2185_p0, %p2184_p12 }
 0x109   : > { %p2180_p8 = pneg %p2179_p2 }
 0x10b   : > { %p2187_p5 = pnand %p2186_p3, %p2180_p8 }
 0x10d   : > { %2190 = shalt.err (!%p2187_p5)
}
 0x10e   : > { %1767 = dma.hbm_to_vmem [thread:$0]  (!%p3133_p4), %s3086_s8, 256, %s483_s28, [#allocation17], %s3137_s22, %s3137_s22, %s3136_s29  }
 0x10f   : > { %s2433_s20 = smov [#allocation21]   ;;  %s2434_s27 = smov [#allocation24]  }
 0x110   : > { %s508_s19 = sshll.u32 %s2433_s20, 4  ;;  %s534_s26 = sshll.u32 %s2434_s27, 4  ;;  %s509_s19 = int_to_ptr.vmem [resolvable:$true] %s508_s19  ;;  %s535_s26 = int_to_ptr.vmem [resolvable:$true] %s534_s26 }
 0x111   : > { %s2191_s0 = scalar_lea.hbm %s3088_s10, 256 }
 0x112   : > { %p2192_p1 = scmp.ne.s32.totalorder %s3088_s10, %s2191_s0  ;;  %p2198_p10 = scmp.lt.u32.totalorder %s2191_s0, %s3088_s10 }
 0x114   : > { %p2194_p7 = pnand %p2192_p1, %p2632_p6 }
 0x116   : > { %p2195_p9 = pneg %p2194_p7 }
 0x118   : > { %p2200_p11 = pnand %p2198_p10, %p2195_p9 }
 0x11a   : > { %2203 = shalt.err (!%p2200_p11)
}
 0x11b   : > { %s2204_s28 = scalar_lea.vmem %s509_s19, 256  ;;  %p2212_p12 = scmp.lt.s32.totalorder %s509_s19, %s509_s19 }
 0x11c   : > { %p2205_p13 = scmp.ne.s32.totalorder %s509_s19, %s2204_s28  ;;  %p2213_p0 = scmp.lt.s32.totalorder %s2204_s28, %s2204_s28 }
 0x11e   : > { %p2207_p2 = pnand %p2205_p13, %p2632_p6  ;;  %p2214_p3 = por %p2213_p0, %p2212_p12 }
 0x120   : > { %p2208_p8 = pneg %p2207_p2 }
 0x122   : > { %p2215_p5 = pnand %p2214_p3, %p2208_p8 }
 0x124   : > { %2218 = shalt.err (!%p2215_p5)
}
 0x125   : > { %1773 = dma.hbm_to_vmem [thread:$0]  (!%p3133_p4), %s3088_s10, 256, %s509_s19, [#allocation20], %s3137_s22, %s3137_s22, %s3136_s29  }
 0x126   : > { %s2219_s14 = scalar_lea.hbm %s3090_s12, 256 }
 0x127   : > { %p2220_p1 = scmp.ne.s32.totalorder %s3090_s12, %s2219_s14  ;;  %p2226_p10 = scmp.lt.u32.totalorder %s2219_s14, %s3090_s12 }
 0x129   : > { %p2222_p7 = pnand %p2220_p1, %p2632_p6 }
 0x12b   : > { %p2223_p9 = pneg %p2222_p7 }
 0x12d   : > { %p2228_p11 = pnand %p2226_p10, %p2223_p9 }
 0x12f   : > { %2231 = shalt.err (!%p2228_p11)
}
 0x130   : > { %s2232_s5 = scalar_lea.vmem %s535_s26, 256  ;;  %p2240_p12 = scmp.lt.s32.totalorder %s535_s26, %s535_s26 }
 0x131   : > { %p2233_p13 = scmp.ne.s32.totalorder %s535_s26, %s2232_s5  ;;  %p2241_p0 = scmp.lt.s32.totalorder %s2232_s5, %s2232_s5 }
 0x133   : > { %p2235_p2 = pnand %p2233_p13, %p2632_p6  ;;  %p2242_p3 = por %p2241_p0, %p2240_p12 }
 0x135   : > { %p2236_p8 = pneg %p2235_p2 }
 0x137   : > { %p2243_p5 = pnand %p2242_p3, %p2236_p8 }
 0x139   : > { %2246 = shalt.err (!%p2243_p5)
}
 0x13a   : > { %1779 = dma.hbm_to_vmem [thread:$0]  (!%p3133_p4), %s3090_s12, 256, %s535_s26, [#allocation23], %s3137_s22, %s3137_s22, %s3136_s29  }
 0x13b   : > { %s2435_s3 = smov [#allocation25]   ;;  %s2247_s14 = scalar_lea.hbm %s3091_s13, 256 }
 0x13c   : > { %s547_s20 = sshll.u32 %s2435_s3, 4  ;;  %p2248_p1 = scmp.ne.s32.totalorder %s3091_s13, %s2247_s14  ;;  %s548_s20 = int_to_ptr.vmem [resolvable:$true] %s547_s20 }
 0x13d   : > { %p2254_p10 = scmp.lt.u32.totalorder %s2247_s14, %s3091_s13 }
 0x13e   : > { %p2250_p7 = pnand %p2248_p1, %p2632_p6 }
 0x140   : > { %p2251_p9 = pneg %p2250_p7 }
 0x142   : > { %p2256_p11 = pnand %p2254_p10, %p2251_p9 }
 0x144   : > { %2259 = shalt.err (!%p2256_p11)
}
 0x145   : > { %s2260_s26 = scalar_lea.vmem %s548_s20, 256  ;;  %p2268_p12 = scmp.lt.s32.totalorder %s548_s20, %s548_s20 }
 0x146   : > { %p2261_p13 = scmp.ne.s32.totalorder %s548_s20, %s2260_s26  ;;  %p2269_p0 = scmp.lt.s32.totalorder %s2260_s26, %s2260_s26 }
 0x148   : > { %p2263_p2 = pnand %p2261_p13, %p2632_p6  ;;  %p2270_p3 = por %p2269_p0, %p2268_p12 }
 0x14a   : > { %p2264_p8 = pneg %p2263_p2 }
 0x14c   : > { %p2271_p5 = pnand %p2270_p3, %p2264_p8 }
 0x14e   : > { %2274 = shalt.err (!%p2271_p5)
}
 0x14f   : > { %1782 = dma.hbm_to_vmem [thread:$0]  (!%p3133_p4), %s3091_s13, 256, %s548_s20, [#allocation26], %s3137_s22, %s3137_s22, %s3136_s29  }
 0x150   : > { %s49_s25 = sadd.s32 1, %s2415_s17  ;;  %s58_s24 = sadd.s32 1, %s2407_s15 }
 0x151   : > { %p51_p6 = scmp.ge.s32.totalorder %s49_s25, 2  ;;  %p65_p1 = scmp.ne.s32.totalorder %s2407_s15, %s2403_s30 }
 0x152   : > { %p66_p7 = scmp.eq.s32.totalorder %s2419_s18, 0  ;;  %s3138_s28 = sadd.s32 4294967295, %s2419_s18  }
 0x153   : > { %p375_p9 = scmp.eq.s32.totalorder %s3138_s28, 1  ;;  %s3162_s25 = smov (%p51_p6, %s49_s25), 0 }
 0x154   : > { %p2873_p10 = por %p66_p7, %p65_p1  ;;  %s53_s29 = ssub.s32 %s2415_s17, %s3162_s25 }
 0x155   : > { %p2877_p11 = por %p375_p9, %p65_p1  ;;  %p1803_p4 = scmp.lt.s32.totalorder %s2419_s18, 2 }
 0x156   : > { %p56_p13 = scmp.eq.s32.totalorder %s53_s29, 0  ;;  %s561_s22 = sand.u32 1, %s2407_s15  }
 0x157   : > { %s1549_s20 = sshll.u32 %s561_s22, 2  ;;  %s1550_s14 = sshll.u32 %s2415_s17, 6 }
 0x158   : > { %s2886_s21 = scalar_select %p56_p13, %s2407_s15, %s58_s24  }
 0x159   : > { %s3141_s16 = sld [smem:[#allocation44_spill]]  ;;  %s565_s5 = scalar_lea.vmem [#allocation4], %s1549_s20 }
 0x15a   : > { %s573_s19 = sshll.u32 %s565_s5, 4  ;;  %p2898_p2 = pnand %p1803_p4, %p2873_p10  ;;  %s2894_s19 = int_to_ptr.vmem [resolvable:$true] %s573_s19 }
 0x15b   : > { %s562_s24 = scalar_lea.sflag [#allocation5], %s561_s22 }
 0x15c   : > { %p2277_p12 = pneg %p2898_p2 }
 0x15f   : > { %s3142_s1 = smov %s3141_s16  ;;  %s2892_s26 = scalar_lea.hbm %s3141_s16, %s1550_s14 }
 0x160   : > { %s2275_s29 = scalar_lea.hbm %s2892_s26, 64  ;;  %s2280_s0 = scalar_lea.hbm %s3142_s1, 128 }
 0x161   : > { %p2276_p8 = scmp.ne.s32.totalorder %s2892_s26, %s2275_s29  ;;  %p2281_p5 = scmp.lt.u32.totalorder %s2892_s26, %s3142_s1 }
 0x162   : > { %p2282_p6 = scmp.lt.u32.totalorder %s2280_s0, %s2275_s29  ;;  %p2284_p7 = scmp.lt.u32.totalorder %s2275_s29, %s2892_s26 }
 0x163   : > { %p2278_p0 = pnand %p2277_p12, %p2276_p8 }
 0x164   : > { %p2283_p1 = por %p2282_p6, %p2281_p5 }
 0x165   : > { %p2279_p3 = pneg %p2278_p0 }
 0x166   : > { %p2285_p9 = por %p2284_p7, %p2283_p1 }
 0x168   : > { %p2286_p10 = pnand %p2285_p9, %p2279_p3 }
 0x16a   : > { %2289 = shalt.err (!%p2286_p10)
}
 0x16b   : > { %s2290_s22 = scalar_lea.vmem %s2894_s19, 64  ;;  %s2436_s16 = smov [#allocation4]  }
 0x16c   : > { %p2291_p4 = scmp.ne.s32.totalorder %s2894_s19, %s2290_s22  ;;  %s2295_s5 = sshll.u32 %s2436_s16, 4  ;;  %s2296_s5 = int_to_ptr.vmem [resolvable:$false] %s2295_s5 }
 0x16d   : > { %s2297_s20 = scalar_lea.vmem %s2296_s5, 128  ;;  %p2298_p0 = scmp.lt.s32.totalorder %s2894_s19, %s2296_s5 }
 0x16e   : > { %p2293_p13 = pnand %p2291_p4, %p2277_p12  ;;  %p2299_p5 = scmp.lt.s32.totalorder %s2297_s20, %s2290_s22 }
 0x170   : > { %p2294_p8 = pneg %p2293_p13  ;;  %p2300_p6 = por %p2299_p5, %p2298_p0 }
 0x172   : > { %p2301_p1 = pnand %p2300_p6, %p2294_p8 }
 0x174   : > { %2304 = shalt.err (!%p2301_p1)
}
 0x175   : > { %1786 = dma.hbm_to_vmem [thread:$0]  (!%p2898_p2), %s2892_s26, 64, %s2894_s19, %s562_s24  }
 0x176   : > { %s3144_s29 = sld [smem:[#allocation43_spill]] }
 0x17c   : > { %p3145_p3 = scmp.ne.s32.totalorder %s3144_s29, 0 }
 0x17d   : > { %s3146_s14 = sld [smem:[#allocation41_spill]] (!%p3145_p3)  ;;  %s2930_s0 = sand.u32 (!%p3145_p3), 1, %s2403_s30  }
 0x17e   : > { %582 = sbr.rel (%p3145_p3) target bundleno = 2922 (0xb6a), region = 76  ;;  %s1552_s3 = sshll.u32 (!%p3145_p3), %s2930_s0, 2 }
 0x17f   : > { %s585_s23 = scalar_lea.sflag (!%p3145_p3), [#allocation5], %s2930_s0  ;;  %s588_s22 = scalar_lea.vmem (!%p3145_p3), [#allocation4], %s1552_s3 }
 0x183   : > { %p3147_p12 = scmp.ne.s32.totalorder (!%p3145_p3), %s3146_s14, 0 }
 0x185   : > { %2358 = dma.done.wait (%p3147_p12), %s585_s23, 64  }
 0x186   : > { %2360 = vsyncadd (%p3147_p12), %s585_s23, 4294967232 }
 0x187   : > { %2362 = dma.done.wait (%p3147_p12), [#allocation8], 128  }
 0x188   : > { %2364 = vsyncadd (%p3147_p12), [#allocation8], 4294967168  ;;  %s3148_s26 = sld [smem:[#allocation40_spill]] }
 0x18e   : > { %p3149_p2 = scmp.ne.s32.totalorder %s3148_s26, 0 }
 0x190   : > { %2366 = dma.done.wait (%p3149_p2), [#allocation8], 32  }
 0x191   : > { %2368 = vsyncadd (%p3149_p2), [#allocation8], 4294967264 }
 0x192   : > { %2370 = dma.done.wait (%p3149_p2), [#allocation11], 80  }
 0x193   : > { %2372 = vsyncadd (%p3149_p2), [#allocation11], 4294967216 }
 0x194   : > { %2374 = dma.done.wait (%p3149_p2), [#allocation14], 80  }
 0x195   : > { %2376 = vsyncadd (%p3149_p2), [#allocation14], 4294967216 }
 0x196   : > { %2378 = dma.done.wait (%p3149_p2), [#allocation17], 272  }
 0x197   : > { %2380 = vsyncadd (%p3149_p2), [#allocation17], 4294967024 }
 0x198   : > { %2382 = dma.done.wait (%p3149_p2), [#allocation20], 512  }
 0x199   : > { %2384 = vsyncadd (%p3149_p2), [#allocation20], 4294966784 }
 0x19a   : > { %2386 = dma.done.wait (%p3149_p2), [#allocation23], 512  }
 0x19b   : > { %2388 = vsyncadd (%p3149_p2), [#allocation23], 4294966784 }
 0x19c   : > { %2390 = dma.done.wait (%p3149_p2), [#allocation26], 256  }
 0x19d   : > { %2392 = vsyncadd (%p3149_p2), [#allocation26], 4294967040  ;;  %v1604_v0 = vld [vmem:[#allocation7] sm:$0xff]   ;;  %vm696_vm0 = vcmask 261120   ;;  %v811_v1 = vld [vmem:[%s588_s22] sm:$0xf] }
 0x19e   : > { %v1605_v2 = vunpack.c.l.bf16 %v1604_v0  ;;  %v812_v3 = vunpack.c.l.bf16 %v811_v1  ;;  %v1606_v4 = vunpack.c.h.bf16 %v1604_v0  ;;  %v1883_v23 = vld [vmem:[#allocation18] sm:$0xff]   ;;  %v1884_v24 = vld [vmem:[#allocation19] sm:$0xff]   ;;  %v2437_v25 = vmov 0.0   ;;  %v1885_v26 = vld [vmem:[#allocation18 + $0x8] sm:$0xff]   ;;  %s2439_s19 = smov 96   ;;  %s3150_s28 = sld [smem:[#allocation39_spill]] }
 0x19f   : > { %1629 = vmatprep.subr.bf16.mxu0 %v2437_v25  ;;  %1637 = vmatprep.subr.bf16.mxu1 %v2437_v25  ;;  %v1886_v27 = vld [vmem:[#allocation19 + $0x8] sm:$0xff]   ;;  %vm2438_vm1 = vmmov 0   ;;  %v1566_v39 = vld [vmem:[#allocation9] ss:$0 sm:$0xff]  ;;  %v1572_v41 = vld [vmem:[#allocation10] ss:$0 sm:$0xff] }
 0x1a0   : > { %v697_v5 = vsel %vm696_vm0, %v1605_v2, 0.0  ;;  %v816_v6 = vsel %vm696_vm0, %v812_v3, 0.0  ;;  %v700_v7 = vsel %vm696_vm0, %v1606_v4, 0.0  ;;  %1630 = vmatpush3.bf16.msra.mxu0 %v1883_v23  ;;  %1638 = vmatpush3.bf16.msra.mxu1 %v1884_v24  ;;  %v1573_v46 = vld [vmem:[#allocation10 + $0x1] ss:$0 sm:$0xff]  ;;  %vm954_vm2 = vcmask 130048  }
 0x1a1   : > { %698 = vadd.xlane.f32.xlu0 %v697_v5  ;;  %817 = vadd.xlane.f32.xlu1 %v816_v6  ;;  %v1567_v47 = vld [vmem:[#allocation9 + $0x1] ss:$0 sm:$0xff]  ;;  %v1568_v56 = vld [vmem:[#allocation12] ss:$0 sm:$0xff]  ;;  %s684_s16 = scalar_lea.vmem [#allocation27], %s1552_s3  ;;  %vm1308_vm3 = vcmask 125952  }
 0x1a2   : > { %1631 = vmatprep.subr.bf16.mxu0 %v2437_v25  ;;  %1639 = vmatprep.subr.bf16.mxu1 %v2437_v25  ;;  %s1325_s5 = sshll.u32 %s684_s16, 4  ;;  %s3151_s14 = sld [smem:[#allocation48_spill]]  ;;  %s3031_s5 = int_to_ptr.vmem [resolvable:$true] %s1325_s5 }
 0x1a3   : > { %1633 = vmatprep.mubr.msk.bf16.mxu0 %vm2438_vm1, %v2437_v25  ;;  %1641 = vmatprep.mubr.msk.bf16.mxu1 %vm2438_vm1, %v2437_v25  ;;  %s1311_s22 = scalar_lea.sflag [#allocation6], %s2930_s0  ;;  %s2305_s3 = scalar_lea.vmem %s3031_s5, 64 }
 0x1a4   : > { %1632 = vmatpush3.bf16.msra.mxu0 %v1885_v26  ;;  %1640 = vmatpush3.bf16.msra.mxu1 %v1886_v27  ;;  %v1888_v27 = vld [vmem:[#allocation21 + $0x8] sm:$0xff]   ;;  %s1599_s24 = sshll.u32 %s3150_s28, 6  ;;  %p2306_p7 = scmp.ne.s32.totalorder %s3031_s5, %s2305_s3 }
 0x1a5   : > { %701 = vadd.xlane.f32.xlu0 %v700_v7  ;;  %1645 = vmatprep.subr.bf16.mxu0 %v2437_v25  ;;  %s2440_s26 = smov [#allocation27]  }
 0x1a6   : > { %1651 = vmatprep.subr.bf16.mxu1 %v2437_v25  ;;  %p2307_p9 = pnand %p2306_p7, %p2877_p11 }
 0x1a8   : > { %s3029_s23 = scalar_lea.hbm %s3151_s14, %s1599_s24  ;;  %p2308_p10 = pneg %p2307_p9 }
 0x22e   : > { %v699_v8 = vpop.xlane.xlu0 %698  ;;  %v818_v9 = vpop.xlane.xlu1 %817 }
 0x22f   : > { %v704_v10 = vmul.f32 0.03125, %v699_v8  ;;  %v820_v11 = vmul.f32 0.03125, %v818_v9 }
 0x231   : > { %v706_v12 = vsub.f32 %v1605_v2, %v704_v10  ;;  %v821_v13 = vsub.f32 %v812_v3, %v820_v11  ;;  %v1574_v3 = vld [vmem:[#allocation13] ss:$0 sm:$0xff] }
 0x232   : > { %v702_v14 = vpop.xlane.xlu0 %701 }
 0x233   : > { %v705_v15 = vmul.f32 0.03125, %v702_v14  ;;  %v708_v16 = vmul.f32 %v706_v12, %v706_v12  ;;  %v822_v17 = vmul.f32 %v821_v13, %v821_v13 }
 0x235   : > { %v707_v18 = vsub.f32 %v1606_v4, %v705_v15  ;;  %v710_v19 = vsel %vm696_vm0, %v708_v16, 0.0  ;;  %v823_v20 = vsel %vm696_vm0, %v822_v17, 0.0 }
 0x236   : > { %711 = vadd.xlane.f32.xlu1 %v710_v19 }
 0x237   : > { %v709_v21 = vmul.f32 %v707_v18, %v707_v18 }
 0x239   : > { %v713_v22 = vsel %vm696_vm0, %v709_v21, 0.0  ;;  %v1887_v21 = vld [vmem:[#allocation21] sm:$0xff]  }
 0x23a   : > { %824 = vadd.xlane.f32.xlu1 %v823_v20  ;;  %714 = vadd.xlane.f32.xlu0 %v713_v22 }
 0x2c3   : > { %v712_v28 = vpop.xlane.xlu1 %711 }
 0x2c4   : > { %v716_v29 = vmul.f32 0.03125, %v712_v28 }
 0x2c6   : > { %v718_v30 = vadd.f32 1e-05, %v716_v29 }
 0x2c7   : > { %v825_v31 = vpop.xlane.xlu1 %824  ;;  %v715_v32 = vpop.xlane.xlu0 %714 }
 0x2c8   : > { %1895 = vrsqrt.f32 %v718_v30  ;;  %v826_v33 = vmul.f32 0.03125, %v825_v31  ;;  %v717_v34 = vmul.f32 0.03125, %v715_v32 }
 0x2ca   : > { %v827_v35 = vadd.f32 1e-05, %v826_v33  ;;  %v719_v36 = vadd.f32 1e-05, %v717_v34  ;;  %v1580_v33 = vld [vmem:[#allocation13 + $0x1] ss:$0 sm:$0xff] }
 0x2cc   : > { %1897 = vrsqrt.f32 %v827_v35 }
 0x2cd   : > { %1899 = vrsqrt.f32 %v719_v36 }
 0x2d2   : > { %v1896_v37 = vpop.eup %1895 }
 0x2d3   : > { %v722_v38 = vmul.f32 %v1896_v37, %v706_v12 }
 0x2d5   : > { %v728_v45 = vmul.f32 %v1566_v39, %v722_v38 }
 0x2d6   : > { %v1898_v40 = vpop.eup %1897 }
 0x2d7   : > { %v1900_v42 = vpop.eup %1899  ;;  %v829_v43 = vmul.f32 %v1898_v40, %v821_v13  ;;  %v734_v51 = vadd.f32 %v1567_v47, %v728_v45  ;;  %v1889_v45 = vld [vmem:[#allocation22] sm:$0xff]  }
 0x2d8   : > { %v723_v44 = vmul.f32 %v1900_v42, %v707_v18 }
 0x2d9   : > { %v834_v48 = vmul.f32 %v1572_v41, %v829_v43 }
 0x2da   : > { %v729_v49 = vmul.f32 %v1566_v39, %v723_v44 }
 0x2db   : > { %v839_v50 = vadd.f32 %v1573_v46, %v834_v48  ;;  %v1890_v46 = vld [vmem:[#allocation22 + $0x8] sm:$0xff]  }
 0x2dc   : > { %v735_v52 = vadd.f32 %v1567_v47, %v729_v49 }
 0x2dd   : > { %v840_v53 = vpack.c.bf16 %v839_v50, %v839_v50 }
 0x2de   : > { %v736_v54 = vpack.c.bf16 %v735_v52, %v734_v51  ;;  %v1584_v51 = vld [vmem:[#allocation10 + $0x2] ss:$0 sm:$0xff] }
 0x2df   : > { %1642 = vmatmul.mubr.msk.bf16.vlgmr.msra.gmra.mrb[0].mxu1 %vm696_vm0, %v840_v53  ;;  %v1585_v53 = vld [vmem:[#allocation10 + $0x3] ss:$0 sm:$0xff] }
 0x2e0   : > { %1634 = vmatmul.mubr.msk.bf16.vlgmr.msra.gmra.mrb[0].mxu0 %vm696_vm0, %v736_v54  ;;  %1653 = vmatprep.mubr.msk.bf16.mxu1 %vm2438_vm1, %v2437_v25 }
 0x2e1   : > { %1647 = vmatprep.mubr.msk.bf16.mxu0 %vm2438_vm1, %v2437_v25 }
 0x3b2   : > { %v899_v55 = vpop.f32.mrb[0].mxu1 }
 0x3b3   : > { %v797_v57 = vpop.f32.mrb[0].mxu0  ;;  %v1643_v58 = vpop.f32.mrb[1].mxu1  ;;  %v900_v4 = vadd.f32 %v1574_v3, %v899_v55 }
 0x3b4   : > { %v1635_v59 = vpop.f32.mrb[1].mxu0  ;;  %v902_v60 = vpop.f32.mrb[2].mxu1  ;;  %v798_v63 = vadd.f32 %v1568_v56, %v797_v57  ;;  %v1891_v57 = vld [vmem:[#allocation24] sm:$0xff]   ;;  %v1892_v58 = vld [vmem:[#allocation24 + $0x8] sm:$0xff]  }
 0x3b5   : > { %v800_v61 = vpop.f32.mrb[2].mxu0  ;;  %v1644_v62 = vpop.f32.mrb[3].mxu1  ;;  %v905_v7 = vmul.f32 0.17677669, %v900_v4  ;;  %v1586_v59 = vld [vmem:[#allocation15] ss:$0 sm:$0xff] }
 0x3b6   : > { %v801_v0 = vadd.f32 %v1568_v56, %v800_v61  ;;  %v1636_v1 = vpop.f32.mrb[3].mxu0 }
 0x3b7   : > { %v906_v8 = vpack.c.bf16 %v905_v7, %v905_v7  ;;  %v1893_v7 = vld [vmem:[#allocation25] sm:$0xff]  }
 0x3b8   : > { %v804_v2 = vpack.c.bf16 %v801_v0, %v798_v63 }
 0x3ba   : > { %805 = vst.msk [vmem:[#allocation2] sm:$0xff] %vm696_vm0, %v804_v2 }
 0x3c1   : > { %v907_v5 = vld [vmem:[#allocation2] sm:$0xff] }
 0x3c2   : > { %v912_v6 = vsel %vm696_vm0, %v907_v5, 0 }
 0x3c3   : > { %1646 = vmatpush3.bf16.xpose.msra.mxu0 %v912_v6 }
 0x3c4   : > { %1657 = vmatprep.subr.bf16.mxu0 %v2437_v25 }
 0x3ca   : > { %1648 = vmatmul.mubr.msk.bf16.vlgmr.msra.gmra.mrb[4].mxu0 %vm696_vm0, %v906_v8  ;;  %v1894_v8 = vld [vmem:[#allocation25 + $0x8] sm:$0xff]  }
 0x3cb   : > { %1661 = vmatprep.mubr.msk.bf16.mxu0 %vm2438_vm1, %v2437_v25  ;;  %1658 = vmatpush3.bf16.msra.mxu0 %v1887_v21 }
 0x3cc   : > { %1659 = vmatprep.subr.bf16.mxu0 %v2437_v25 }
 0x3cf   : > { %1660 = vmatpush3.bf16.msra.mxu0 %v1888_v27 }
 0x3d0   : > { %1673 = vmatprep.subr.bf16.mxu0 %v2437_v25 }
 0x49d   : > { %v948_v9 = vpop.f32.mrb[4].mxu0 }
 0x49e   : > { %v1649_v10 = vpop.f32.mrb[5].mxu0  ;;  %v955_v11 = vsel %vm954_vm2, %v948_v9, -inf }
 0x49f   : > { %956 = vmax.xlane.f32.xlu0 %v955_v11  ;;  %v951_v12 = vpop.f32.mrb[6].mxu0 }
 0x4a0   : > { %v1650_v13 = vpop.f32.mrb[7].mxu0 }
 0x4b5   : > { %807 = vrot.lane.b32.xlu0 %v804_v2, %s2439_s19  ;;  %s2309_s19 = sshll.u32 %s2440_s26, 4  ;;  %s2310_s19 = int_to_ptr.vmem [resolvable:$false] %s2309_s19 }
 0x4b6   : > { %s2311_s28 = scalar_lea.vmem %s2310_s19, 128  ;;  %p2312_p4 = scmp.lt.s32.totalorder %s3031_s5, %s2310_s19 }
 0x4b7   : > { %p2313_p13 = scmp.lt.s32.totalorder %s2311_s28, %s2305_s3 }
 0x4b9   : > { %p2314_p8 = por %p2313_p13, %p2312_p4 }
 0x4bb   : > { %p2315_p0 = pnand %p2314_p8, %p2308_p10 }
 0x52c   : > { %v957_v14 = vpop.xlane.xlu0 %956 }
 0x52d   : > { %v958_v15 = vsub.f32 %v948_v9, %v957_v14  ;;  %v1590_v9 = vld [vmem:[#allocation13 + $0x2] ss:$0 sm:$0xff] }
 0x52f   : > { %v959_v16 = vmul.f32 1.442695, %v958_v15 }
 0x530   : > { %v808_v17 = vpop.permute.xlu0 %807 }
 0x531   : > { %1901 = vpow2.f32 %v959_v16  ;;  %810 = vst.msk [vmem:[#allocation3] sm:$0xff] %vm696_vm0, %v808_v17  ;;  %v1594_v17 = vld [vmem:[#allocation16] ss:$0 sm:$0xff] }
 0x538   : > { %v967_v18 = vld [vmem:[#allocation3] sm:$0xff] }
 0x539   : > { %1652 = vmatpush3.bf16.msra.mxu1 %v967_v18 }
 0x53a   : > { %1665 = vmatprep.subr.bf16.mxu1 %v2437_v25 }
 0x53b   : > { %v1902_v19 = vpop.eup %1901 }
 0x53c   : > { %v961_v20 = vsel %vm954_vm2, %v1902_v19, 0.0 }
 0x53d   : > { %962 = vadd.xlane.f32.xlu1 %v961_v20 }
 0x5ca   : > { %v963_v22 = vpop.xlane.xlu1 %962 }
 0x5cb   : > { %1903 = vrcp.f32 %v963_v22 }
 0x5d5   : > { %v1904_v23 = vpop.eup %1903 }
 0x5d6   : > { %v965_v24 = vmul.f32 %v1904_v23, %v1902_v19 }
 0x5d8   : > { %v966_v26 = vpack.c.bf16 %v965_v24, %v965_v24 }
 0x5da   : > { %1654 = vmatmul.mubr.msk.bf16.vlgmr.msra.gmra.mrb[4].mxu1 %vm954_vm2, %v966_v26 }
 0x5db   : > { %1669 = vmatprep.mubr.msk.bf16.mxu1 %vm2438_vm1, %v2437_v25  ;;  %1666 = vmatpush3.bf16.msra.mxu1 %v1889_v45 }
 0x5dc   : > { %1667 = vmatprep.subr.bf16.mxu1 %v2437_v25 }
 0x5df   : > { %1668 = vmatpush3.bf16.msra.mxu1 %v1890_v46 }
 0x5e0   : > { %1681 = vmatprep.subr.bf16.mxu1 %v2437_v25 }
 0x6ad   : > { %v1005_v28 = vpop.f32.mrb[4].mxu1 }
 0x6ae   : > { %v1011_v29 = vpack.c.bf16 %v1005_v28, %v1005_v28  ;;  %v1655_v30 = vpop.f32.mrb[5].mxu1 }
 0x6af   : > { %v1008_v31 = vpop.f32.mrb[6].mxu1 }
 0x6b0   : > { %v1656_v32 = vpop.f32.mrb[7].mxu1  ;;  %1662 = vmatmul.mubr.msk.bf16.vlgmr.msra.gmra.mrb[8].mxu0 %vm696_vm0, %v1011_v29 }
 0x6b1   : > { %1677 = vmatprep.mubr.msk.bf16.mxu0 %vm2438_vm1, %v2437_v25  ;;  %1674 = vmatpush3.bf16.msra.mxu0 %v1891_v57 }
 0x6b2   : > { %1675 = vmatprep.subr.bf16.mxu0 %v2437_v25 }
 0x6b5   : > { %1676 = vmatpush3.bf16.msra.mxu0 %v1892_v58 }
 0x783   : > { %v1070_v34 = vpop.f32.mrb[8].mxu0 }
 0x784   : > { %v1071_v35 = vadd.f32 %v1580_v33, %v1070_v34  ;;  %v1663_v36 = vpop.f32.mrb[9].mxu0 }
 0x785   : > { %v1073_v37 = vpop.f32.mrb[10].mxu0 }
 0x786   : > { %v1664_v38 = vpop.f32.mrb[11].mxu0  ;;  %v1078_v39 = vsel %vm696_vm0, %v1071_v35, 0.0 }
 0x787   : > { %1079 = vadd.xlane.f32.xlu1 %v1078_v39 }
 0x814   : > { %v1080_v40 = vpop.xlane.xlu1 %1079 }
 0x815   : > { %v1081_v41 = vmul.f32 0.03125, %v1080_v40 }
 0x817   : > { %v1082_v42 = vsub.f32 %v1071_v35, %v1081_v41 }
 0x819   : > { %v1083_v43 = vmul.f32 %v1082_v42, %v1082_v42 }
 0x81b   : > { %v1084_v44 = vsel %vm696_vm0, %v1083_v43, 0.0 }
 0x81c   : > { %1085 = vadd.xlane.f32.xlu1 %v1084_v44 }
 0x8a9   : > { %v1086_v47 = vpop.xlane.xlu1 %1085 }
 0x8aa   : > { %v1087_v48 = vmul.f32 0.03125, %v1086_v47 }
 0x8ac   : > { %v1088_v49 = vadd.f32 1e-05, %v1087_v48 }
 0x8ae   : > { %1905 = vrsqrt.f32 %v1088_v49 }
 0x8b8   : > { %v1906_v50 = vpop.eup %1905 }
 0x8b9   : > { %v1090_v52 = vmul.f32 %v1906_v50, %v1082_v42 }
 0x8bb   : > { %v1095_v54 = vmul.f32 %v1584_v51, %v1090_v52 }
 0x8bd   : > { %v1100_v55 = vadd.f32 %v1585_v53, %v1095_v54 }
 0x8bf   : > { %v1101_v56 = vpack.c.bf16 %v1100_v55, %v1100_v55 }
 0x8c1   : > { %1670 = vmatmul.mubr.msk.bf16.vlgmr.msra.gmra.mrb[8].mxu1 %vm696_vm0, %v1101_v56 }
 0x8c2   : > { %1685 = vmatprep.mubr.msk.bf16.mxu1 %vm2438_vm1, %v2437_v25  ;;  %1682 = vmatpush3.bf16.msra.mxu1 %v1893_v7 }
 0x8c3   : > { %1683 = vmatprep.subr.bf16.mxu1 %v2437_v25 }
 0x8c6   : > { %1684 = vmatpush3.bf16.msra.mxu1 %v1894_v8 }
 0x994   : > { %v1162_v60 = vpop.f32.mrb[8].mxu1 }
 0x995   : > { %v1163_v61 = vadd.f32 %v1586_v59, %v1162_v60  ;;  %v1671_v62 = vpop.f32.mrb[9].mxu1 }
 0x996   : > { %v1165_v63 = vpop.f32.mrb[10].mxu1 }
 0x997   : > { %v1170_v0 = vmul.f32 0.70710677, %v1163_v61  ;;  %v1672_v1 = vpop.f32.mrb[11].mxu1  ;;  %v1168_v3 = vmul.f32 0.5, %v1163_v61 }
 0x999   : > { %1907 = verf.f32 %v1170_v0 }
 0x9a3   : > { %v1908_v2 = vpop.eup %1907 }
 0x9a4   : > { %v1172_v4 = vadd.f32 1.0, %v1908_v2 }
 0x9a6   : > { %v1173_v5 = vmul.f32 %v1172_v4, %v1168_v3 }
 0x9a8   : > { %v1174_v6 = vpack.c.bf16 %v1173_v5, %v1173_v5 }
 0x9aa   : > { %1678 = vmatmul.mubr.msk.bf16.vlgmr.msra.gmra.mrb[12].mxu0 %vm696_vm0, %v1174_v6 }
 0xa7d   : > { %v1233_v10 = vpop.f32.mrb[12].mxu0 }
 0xa7e   : > { %v1234_v11 = vadd.f32 %v1590_v9, %v1233_v10  ;;  %v1679_v12 = vpop.f32.mrb[13].mxu0 }
 0xa7f   : > { %v1236_v13 = vpop.f32.mrb[14].mxu0 }
 0xa80   : > { %v1239_v14 = vadd.f32 %v1234_v11, %v1071_v35  ;;  %v1680_v15 = vpop.f32.mrb[15].mxu0 }
 0xa82   : > { %v1240_v16 = vpack.c.bf16 %v1239_v14, %v1239_v14 }
 0xa84   : > { %1686 = vmatmul.mubr.msk.bf16.vlgmr.msra.gmra.mrb[12].mxu1 %vm696_vm0, %v1240_v16 }
 0xb57   : > { %v1301_v18 = vpop.f32.mrb[12].mxu1 }
 0xb58   : > { %v1302_v25 = vadd.f32 %v1594_v17, %v1301_v18  ;;  %v1687_v19 = vpop.f32.mrb[13].mxu1 }
 0xb59   : > { %v1304_v20 = vpop.f32.mrb[14].mxu1 }
 0xb5a   : > { %v1307_v21 = vpack.c.bf16 %v1302_v25, %v1302_v25  ;;  %v1688_v22 = vpop.f32.mrb[15].mxu1 }
 0xb5c   : > { %1309 = vst.msk [vmem:[%s684_s16] sm:$0xf] %vm1308_vm3, %v1307_v21 }
 0xb5d   : > { %2318 = shalt.err (!%p2315_p0)
}
 0xb5e   : > { %s2319_s0 = scalar_lea.hbm %s3029_s23, 64  ;;  %s2323_s20 = scalar_lea.hbm %s3151_s14, 128 }
 0xb5f   : > { %p2320_p5 = scmp.ne.s32.totalorder %s3029_s23, %s2319_s0  ;;  %p2324_p3 = scmp.lt.u32.totalorder %s3029_s23, %s3151_s14 }
 0xb60   : > { %p2325_p12 = scmp.lt.u32.totalorder %s2323_s20, %s2319_s0  ;;  %p2327_p7 = scmp.lt.u32.totalorder %s2319_s0, %s3029_s23 }
 0xb61   : > { %p2321_p6 = pnand %p2320_p5, %p2877_p11 }
 0xb62   : > { %p2326_p2 = por %p2325_p12, %p2324_p3 }
 0xb63   : > { %p2322_p1 = pneg %p2321_p6 }
 0xb64   : > { %p2328_p9 = por %p2327_p7, %p2326_p2 }
 0xb66   : > { %p2329_p10 = pnand %p2328_p9, %p2322_p1 }
 0xb68   : > { %2332 = shalt.err (!%p2329_p10)
}
 0xb69   : > { %1741 = dma.vmem_to_hbm [thread:$0]  (%p2877_p11), %s3031_s5, 64, %s3029_s23, %s1311_s22  }
 0xb6a PF: > { %s3152_s3 = sld [smem:[#allocation38_spill]]  ;;  %s3153_s19 = sld [smem:[#allocation42_spill]] }
 0xb6b   : > { %p3155_p13 = scmp.ge.s32.totalorder %s2419_s18, 2 }
 0xb70   : > { %s1337_s28 = sand.u32 1, %s3152_s3   ;;  %p3154_p4 = scmp.ne.s32.totalorder %s3153_s19, 0 }
 0xb71   : > { %s1338_s24 = scalar_lea.sflag [#allocation6], %s1337_s28 }
 0xb72   : > { %p1788_p8 = pnand %p3155_p13, %p3154_p4 }
 0xb74   : > { %2394 = dma.done.wait (!%p1788_p8), %s1338_s24, 64  }
 0xb75   : > { %2396 = vsyncadd (!%p1788_p8), %s1338_s24, 4294967232  ;;  %s37_s18 = sadd.s32 1, %s2419_s18   ;;  %s3156_s29 = smov %s2403_s30 }
 0xb76   : > { %p34_p0 = scmp.ge.s32.totalorder %s37_s18, 4   ;;  %s3157_s30 = smov %s2407_s15 }
 0xb77   : > { %s3158_s15 = smov %s2886_s21  ;;  %s3159_s16 = smov %s2415_s17 }
 0xb78   : > { %s3160_s17 = smov %s3162_s25  ;;  %36 = sbr.rel (!%p34_p0) target bundleno = 19 (0x13), region = 178 }
 0xb7f   :  { %1343 = vsyncpa [#allocation5], 1 }
 0xb80   :  { %1345 = vsyncpa [#allocation5 + $0x1], 1 }
 0xb81   :  { %1346 = vsyncpa [#allocation8], 1 }
 0xb82   :  { %1347 = vsyncpa [#allocation11], 1 }
 0xb83   :  { %1348 = vsyncpa [#allocation14], 1 }
 0xb84   :  { %1349 = vsyncpa [#allocation17], 1 }
 0xb85   :  { %1350 = vsyncpa [#allocation20], 1 }
 0xb86   :  { %1351 = vsyncpa [#allocation23], 1 }
 0xb87   :  { %1352 = vsyncpa [#allocation26], 1 }
 0xb88   :  { %1353 = vsyncpa [#allocation6], 1 }
 0xb89   :  { %1355 = vsyncpa [#allocation6 + $0x1], 1 }

// kernel: tpu_custom_call.1
= control target key start
LH: loop header
LB: loop body
LE: loop exit
PB: predicated region body
PF: predicated region fallthrough
CT: control target
= control target key end

     0   :  { %s3150_s0 = inlined_call_operand.hbm [shape: bf16[2,8,32], index: 0, kind: input, shape index: {}]   ;;  %s3151_s1 = inlined_call_operand.hbm [shape: bf16[2,16,32], index: 1, kind: input, shape index: {}]   ;;  %s3152_s2 = inlined_call_operand.hbm [shape: f32[2,32], index: 2, kind: input, shape index: {}]   ;;  %s3153_s3 = inlined_call_operand.hbm [shape: f32[4,32], index: 3, kind: input, shape index: {}]   ;;  %s3154_s4 = inlined_call_operand.hbm [shape: f32[1,64], index: 4, kind: input, shape index: {}]   ;;  %s3155_s5 = inlined_call_operand.hbm [shape: f32[3,32], index: 5, kind: input, shape index: {}]   ;;  %s3156_s6 = inlined_call_operand.hbm [shape: f32[1,32], index: 6, kind: input, shape index: {}]   ;;  %s3157_s7 = inlined_call_operand.hbm [shape: f32[1,16], index: 7, kind: input, shape index: {}]   ;;  %s3158_s8 = inlined_call_operand.hbm [shape: bf16[32,64], index: 8, kind: input, shape index: {}]   ;;  %s3159_s9 = inlined_call_operand.hbm [shape: bf16[32,32], index: 9, kind: input, shape index: {}]   ;;  %s3160_s10 = inlined_call_operand.hbm [shape: bf16[32,32], index: 10, kind: input, shape index: {}]   ;;  %s3161_s11 = inlined_call_operand.hbm [shape: bf16[32,32], index: 11, kind: input, shape index: {}]   ;;  %s3162_s12 = inlined_call_operand.hbm [shape: bf16[32,32], index: 12, kind: input, shape index: {}]   ;;  %s3163_s13 = inlined_call_operand.hbm [shape: bf16[32,16], index: 13, kind: input, shape index: {}]   ;;  %s3164_s14 = inlined_call_operand.hbm [shape: bf16[2,8,16], index: 14, kind: output, shape index: {}]  }
   0x1   :  { %3177 = sst [smem:[#allocation41_spill]] %s3150_s0 }
   0x2   :  { %3178 = sst [smem:[#allocation42_spill]] %s3151_s1 }
   0x3   :  { %3179 = sst [smem:[#allocation43_spill]] %s3152_s2 }
   0x4   :  { %3180 = sst [smem:[#allocation44_spill]] %s3153_s3 }
   0x5   :  { %3181 = sst [smem:[#allocation45_spill]] %s3154_s4 }
   0x6   :  { %3182 = sst [smem:[#allocation46_spill]] %s3155_s5 }
   0x7   :  { %3183 = sst [smem:[#allocation47_spill]] %s3156_s6 }
   0x8   :  { %3184 = sst [smem:[#allocation48_spill]] %s3157_s7 }
   0x9   :  { %3185 = sst [smem:[#allocation49_spill]] %s3158_s8 }
   0xa   :  { %3186 = sst [smem:[#allocation50_spill]] %s3159_s9 }
   0xb   :  { %3187 = sst [smem:[#allocation51_spill]] %s3164_s14 }
   0xc   :  { %19 = vsyncpa [#allocation5], 0 }
   0xd   :  { %21 = vsyncpa [#allocation5 + $0x1], 0 }
   0xe   :  { %22 = vsyncpa [#allocation8], 0 }
   0xf   :  { %24 = vsyncpa [#allocation8 + $0x1], 0 }
  0x10   :  { %25 = vsyncpa [#allocation11], 0 }
  0x11   :  { %26 = vsyncpa [#allocation14], 0 }
  0x12   :  { %27 = vsyncpa [#allocation17], 0 }
  0x13   :  { %28 = vsyncpa [#allocation20], 0 }
  0x14   :  { %29 = vsyncpa [#allocation23], 0 }
  0x15   :  { %30 = vsyncpa [#allocation26], 0 }
  0x16   :  { %31 = vsyncpa [#allocation6], 0 }
  0x17   :  { %33 = vsyncpa [#allocation6 + $0x1], 0  ;;  %s2545_s29 = smov 0   ;;  %s2547_s30 = smov 0  }
  0x18   :  { %s2549_s15 = smov 0   ;;  %s2551_s16 = smov 0  }
  0x19   :  { %s2553_s17 = smov 0   ;;  %s2555_s18 = smov 0  }
  0x1a LB: > { %3188 = sst [smem:[#allocation38_spill]] %s2440_s16  ;;  %s2576_s19 = sadd.s32 4294967295, %s2448_s18   ;;  %s2448_s18 = sphi %s2555_s18, %s39_s18   ;;  %s2444_s17 = sphi %s2553_s17, %s3240_s17   ;;  %s2440_s16 = sphi %s2551_s16, %s3239_s16   ;;  %s2436_s15 = sphi %s2549_s15, %s3238_s15   ;;  %s2432_s30 = sphi %s2547_s30, %s3237_s30   ;;  %s2428_s29 = sphi %s2545_s29, %s3236_s29  }
  0x1b   : > { %3189 = sst [smem:[#allocation39_spill]] %s2576_s19  ;;  %p1561_p0 = scmp.ge.s32.totalorder %s2448_s18, 1 }
  0x1c   : > { %p3168_p1 = scmp.eq.s32.totalorder %s2576_s19, 0  ;;  %p390_p2 = scmp.lt.s32.totalorder %s2448_s18, 3 }
  0x1d   : > { %s2450_s21 = smov [#allocation9]   ;;  %s2451_s23 = smov [#allocation10]  }
  0x1e   : > { %p2581_p3 = pnand %p1561_p0, %p390_p2  ;;  %s403_s22 = sshll.u32 %s2450_s21, 4  ;;  %s404_s22 = int_to_ptr.vmem [resolvable:$true] %s403_s22 }
  0x1f   : > { %s414_s24 = sshll.u32 %s2451_s23, 4  ;;  %s2452_s26 = smov [#allocation13]   ;;  %s2594_s24 = int_to_ptr.vmem [resolvable:$true] %s414_s24 }
  0x20   : > { %s3190_s20 = scalar_select %p2581_p3, 1, 0 }
  0x21   : > { %p1773_p5 = pneg %p2581_p3  ;;  %s436_s27 = sshll.u32 %s2452_s26, 4  ;;  %s2596_s27 = int_to_ptr.vmem [resolvable:$true] %s436_s27 }
  0x22   : > { %3191 = sst [smem:[#allocation40_spill]] %s3190_s20  ;;  %s3193_s2 = sld [smem:[#allocation43_spill]] }
  0x23   : > { %p2590_p6 = pnand %p1773_p5, %p3168_p1 }
  0x25   : > { %p2606_p8 = pneg %p2590_p6 }
  0x28   : > { %s1938_s14 = scalar_lea.hbm %s3193_s2, 32 }
  0x29   : > { %p1939_p7 = scmp.ne.s32.totalorder %s3193_s2, %s1938_s14  ;;  %p1945_p11 = scmp.lt.u32.totalorder %s1938_s14, %s3193_s2 }
  0x2b   : > { %p1941_p9 = pnand %p2606_p8, %p1939_p7 }
  0x2d   : > { %p1942_p10 = pneg %p1941_p9 }
  0x2f   : > { %p1947_p12 = pnand %p1945_p11, %p1942_p10 }
  0x31   : > { %1950 = shalt.err (!%p1947_p12)
}
  0x32   : > { %s1951_s28 = scalar_lea.vmem %s404_s22, 32  ;;  %p1959_p5 = scmp.lt.s32.totalorder %s404_s22, %s404_s22 }
  0x33   : > { %p1952_p13 = scmp.ne.s32.totalorder %s404_s22, %s1951_s28  ;;  %p1960_p4 = scmp.lt.s32.totalorder %s1951_s28, %s1951_s28 }
  0x35   : > { %p1954_p0 = pnand %p1952_p13, %p2606_p8  ;;  %p1961_p1 = por %p1960_p4, %p1959_p5 }
  0x37   : > { %p1955_p2 = pneg %p1954_p0 }
  0x39   : > { %p1962_p3 = pnand %p1961_p1, %p1955_p2 }
  0x3b   : > { %1965 = shalt.err (!%p1962_p3)
}
  0x3c   : > { %1776 = dma.hbm_to_vmem [thread:$0]  (!%p2590_p6), %s3193_s2, 32, %s404_s22, [#allocation8]  }
  0x3d   : > { %s3195_s3 = sld [smem:[#allocation44_spill]] }
  0x43   : > { %s1966_s21 = scalar_lea.hbm %s3195_s3, 64 }
  0x44   : > { %p1967_p7 = scmp.ne.s32.totalorder %s3195_s3, %s1966_s21  ;;  %p1973_p1 = scmp.lt.u32.totalorder %s1966_s21, %s3195_s3 }
  0x46   : > { %p1969_p9 = pnand %p1967_p7, %p2606_p8 }
  0x48   : > { %p1970_p4 = pneg %p1969_p9 }
  0x4a   : > { %p1975_p3 = pnand %p1973_p1, %p1970_p4 }
  0x4c   : > { %1978 = shalt.err (!%p1975_p3)
}
  0x4d   : > { %s1979_s22 = scalar_lea.vmem %s2594_s24, 64  ;;  %p1987_p13 = scmp.lt.s32.totalorder %s2594_s24, %s2594_s24 }
  0x4e   : > { %p1980_p10 = scmp.ne.s32.totalorder %s2594_s24, %s1979_s22  ;;  %p1988_p0 = scmp.lt.s32.totalorder %s1979_s22, %s1979_s22 }
  0x50   : > { %p1982_p11 = pnand %p1980_p10, %p2606_p8  ;;  %p1989_p2 = por %p1988_p0, %p1987_p13 }
  0x52   : > { %p1983_p12 = pneg %p1982_p11 }
  0x54   : > { %p1990_p5 = pnand %p1989_p2, %p1983_p12 }
  0x56   : > { %1993 = shalt.err (!%p1990_p5)
}
  0x57   : > { %1779 = dma.hbm_to_vmem [thread:$0]  (!%p2590_p6), %s3195_s3, 64, %s2594_s24, [#allocation11]  }
  0x58   : > { %s3196_s5 = sld [smem:[#allocation46_spill]] }
  0x5e   : > { %s1994_s1 = scalar_lea.hbm %s3196_s5, 64 }
  0x5f   : > { %p1995_p7 = scmp.ne.s32.totalorder %s3196_s5, %s1994_s1  ;;  %p2001_p1 = scmp.lt.u32.totalorder %s1994_s1, %s3196_s5 }
  0x61   : > { %p1997_p9 = pnand %p1995_p7, %p2606_p8 }
  0x63   : > { %p1998_p4 = pneg %p1997_p9 }
  0x65   : > { %p2003_p3 = pnand %p2001_p1, %p1998_p4 }
  0x67   : > { %2006 = shalt.err (!%p2003_p3)
}
  0x68   : > { %s2007_s24 = scalar_lea.vmem %s2596_s27, 64  ;;  %p2015_p13 = scmp.lt.s32.totalorder %s2596_s27, %s2596_s27 }
  0x69   : > { %p2008_p10 = scmp.ne.s32.totalorder %s2596_s27, %s2007_s24  ;;  %p2016_p0 = scmp.lt.s32.totalorder %s2007_s24, %s2007_s24 }
  0x6b   : > { %p2010_p11 = pnand %p2008_p10, %p2606_p8  ;;  %p2017_p2 = por %p2016_p0, %p2015_p13 }
  0x6d   : > { %p2011_p12 = pneg %p2010_p11 }
  0x6f   : > { %p2018_p5 = pnand %p2017_p2, %p2011_p12 }
  0x71   : > { %2021 = shalt.err (!%p2018_p5)
}
  0x72   : > { %1785 = dma.hbm_to_vmem [thread:$0]  (!%p2590_p6), %s3196_s5, 64, %s2596_s27, [#allocation14]  }
  0x73   : > { %s2453_s19 = smov [#allocation16]   ;;  %s3197_s7 = sld [smem:[#allocation48_spill]] }
  0x74   : > { %s458_s16 = sshll.u32 %s2453_s19, 4  ;;  %s459_s16 = int_to_ptr.vmem [resolvable:$true] %s458_s16 }
  0x79   : > { %s2022_s14 = scalar_lea.hbm %s3197_s7, 16 }
  0x7a   : > { %p2023_p7 = scmp.ne.s32.totalorder %s3197_s7, %s2022_s14  ;;  %p2029_p1 = scmp.lt.u32.totalorder %s2022_s14, %s3197_s7 }
  0x7c   : > { %p2025_p9 = pnand %p2023_p7, %p2606_p8 }
  0x7e   : > { %p2026_p4 = pneg %p2025_p9 }
  0x80   : > { %p2031_p3 = pnand %p2029_p1, %p2026_p4 }
  0x82   : > { %2034 = shalt.err (!%p2031_p3)
}
  0x83   : > { %s2035_s27 = scalar_lea.vmem %s459_s16, 16  ;;  %s2042_s22 = scalar_lea.vmem %s459_s16, 32 }
  0x84   : > { %p2036_p10 = scmp.ne.s32.totalorder %s459_s16, %s2035_s27  ;;  %p2043_p13 = scmp.lt.s32.totalorder %s459_s16, %s459_s16 }
  0x85   : > { %p2044_p0 = scmp.lt.s32.totalorder %s2042_s22, %s2035_s27 }
  0x86   : > { %p2038_p11 = pnand %p2036_p10, %p2606_p8 }
  0x87   : > { %p2045_p2 = por %p2044_p0, %p2043_p13 }
  0x88   : > { %p2039_p12 = pneg %p2038_p11 }
  0x8a   : > { %p2046_p5 = pnand %p2045_p2, %p2039_p12 }
  0x8c   : > { %2049 = shalt.err (!%p2046_p5)
}
  0x8d   : > { %1791 = dma.hbm_to_vmem [thread:$0]  (!%p2590_p6), %s3197_s7, 16, %s459_s16, [#allocation17]  }
  0x8e   : > { %s2454_s20 = smov [#allocation19]   ;;  %s2455_s14 = smov [#allocation22]  }
  0x8f   : > { %s481_s1 = sshll.u32 %s2454_s20, 4  ;;  %s507_s21 = sshll.u32 %s2455_s14, 4  ;;  %s482_s1 = int_to_ptr.vmem [resolvable:$true] %s481_s1  ;;  %s2686_s21 = int_to_ptr.vmem [resolvable:$true] %s507_s21 }
  0x90   : > { %s3198_s9 = sld [smem:[#allocation50_spill]] }
  0x96   : > { %s2050_s24 = scalar_lea.hbm %s3198_s9, 256 }
  0x97   : > { %p2051_p7 = scmp.ne.s32.totalorder %s3198_s9, %s2050_s24  ;;  %p2057_p1 = scmp.lt.u32.totalorder %s2050_s24, %s3198_s9 }
  0x99   : > { %p2053_p9 = pnand %p2051_p7, %p2606_p8 }
  0x9b   : > { %p2054_p4 = pneg %p2053_p9 }
  0x9d   : > { %p2059_p3 = pnand %p2057_p1, %p2054_p4 }
  0x9f   : > { %2062 = shalt.err (!%p2059_p3)
}
  0xa0   : > { %s2063_s19 = scalar_lea.vmem %s482_s1, 256  ;;  %p2071_p13 = scmp.lt.s32.totalorder %s482_s1, %s482_s1 }
  0xa1   : > { %p2064_p10 = scmp.ne.s32.totalorder %s482_s1, %s2063_s19  ;;  %p2072_p0 = scmp.lt.s32.totalorder %s2063_s19, %s2063_s19 }
  0xa3   : > { %p2066_p11 = pnand %p2064_p10, %p2606_p8  ;;  %p2073_p2 = por %p2072_p0, %p2071_p13 }
  0xa5   : > { %p2067_p12 = pneg %p2066_p11 }
  0xa7   : > { %p2074_p5 = pnand %p2073_p2, %p2067_p12 }
  0xa9   : > { %2077 = shalt.err (!%p2074_p5)
}
  0xaa   : > { %s3174_s20 = smov 64   ;;  %s3175_s14 = smov 4  }
  0xab   : > { %1797 = dma.hbm_to_vmem [thread:$0]  (!%p2590_p6), %s3198_s9, 256, %s482_s1, [#allocation20], %s3174_s20, %s3174_s20, %s3175_s14  }
  0xac   : > { %s2078_s22 = scalar_lea.hbm %s3161_s11, 256 }
  0xad   : > { %p2079_p7 = scmp.ne.s32.totalorder %s3161_s11, %s2078_s22  ;;  %p2085_p1 = scmp.lt.u32.totalorder %s2078_s22, %s3161_s11 }
  0xaf   : > { %p2081_p9 = pnand %p2079_p7, %p2606_p8 }
  0xb1   : > { %p2082_p4 = pneg %p2081_p9 }
  0xb3   : > { %p2087_p3 = pnand %p2085_p1, %p2082_p4 }
  0xb5   : > { %2090 = shalt.err (!%p2087_p3)
}
  0xb6   : > { %s2091_s1 = scalar_lea.vmem %s2686_s21, 256  ;;  %p2099_p13 = scmp.lt.s32.totalorder %s2686_s21, %s2686_s21 }
  0xb7   : > { %p2092_p10 = scmp.ne.s32.totalorder %s2686_s21, %s2091_s1  ;;  %p2100_p0 = scmp.lt.s32.totalorder %s2091_s1, %s2091_s1 }
  0xb9   : > { %p2094_p11 = pnand %p2092_p10, %p2606_p8  ;;  %p2101_p2 = por %p2100_p0, %p2099_p13 }
  0xbb   : > { %p2095_p12 = pneg %p2094_p11 }
  0xbd   : > { %p2102_p5 = pnand %p2101_p2, %p2095_p12 }
  0xbf   : > { %2105 = shalt.err (!%p2102_p5)
}
  0xc0   : > { %1803 = dma.hbm_to_vmem [thread:$0]  (!%p2590_p6), %s3161_s11, 256, %s2686_s21, [#allocation23], %s3174_s20, %s3174_s20, %s3175_s14  }
  0xc1   : > { %s2458_s28 = smov [#allocation12]   ;;  %s2459_s27 = smov [#allocation15]  }
  0xc2   : > { %s425_s24 = sshll.u32 %s2458_s28, 4  ;;  %s447_s22 = sshll.u32 %s2459_s27, 4  ;;  %s426_s24 = int_to_ptr.vmem [resolvable:$true] %s425_s24  ;;  %s2735_s22 = int_to_ptr.vmem [resolvable:$true] %s447_s22 }
  0xc3   : > { %s3199_s4 = sld [smem:[#allocation45_spill]] }
  0xc9   : > { %s2106_s19 = scalar_lea.hbm %s3199_s4, 16 }
  0xca   : > { %p2107_p7 = scmp.ne.s32.totalorder %s3199_s4, %s2106_s19  ;;  %p2113_p1 = scmp.lt.u32.totalorder %s2106_s19, %s3199_s4 }
  0xcc   : > { %p2109_p9 = pnand %p2107_p7, %p2606_p8 }
  0xce   : > { %p2110_p4 = pneg %p2109_p9 }
  0xd0   : > { %p2115_p3 = pnand %p2113_p1, %p2110_p4 }
  0xd2   : > { %2118 = shalt.err (!%p2115_p3)
}
  0xd3   : > { %s2119_s26 = scalar_lea.vmem %s426_s24, 16  ;;  %s2126_s28 = scalar_lea.vmem %s426_s24, 32 }
  0xd4   : > { %p2120_p10 = scmp.ne.s32.totalorder %s426_s24, %s2119_s26  ;;  %p2127_p13 = scmp.lt.s32.totalorder %s426_s24, %s426_s24 }
  0xd5   : > { %p2128_p0 = scmp.lt.s32.totalorder %s2126_s28, %s2119_s26 }
  0xd6   : > { %p2122_p11 = pnand %p2120_p10, %p2606_p8 }
  0xd7   : > { %p2129_p2 = por %p2128_p0, %p2127_p13 }
  0xd8   : > { %p2123_p12 = pneg %p2122_p11 }
  0xda   : > { %p2130_p5 = pnand %p2129_p2, %p2123_p12 }
  0xdc   : > { %2133 = shalt.err (!%p2130_p5)
}
  0xdd   : > { %1782 = dma.hbm_to_vmem [thread:$0]  (!%p2590_p6), %s3199_s4, 16, %s426_s24, [#allocation11]  }
  0xde   : > { %s3200_s6 = sld [smem:[#allocation47_spill]] }
  0xe4   : > { %s2134_s19 = scalar_lea.hbm %s3200_s6, 16 }
  0xe5   : > { %p2135_p7 = scmp.ne.s32.totalorder %s3200_s6, %s2134_s19  ;;  %p2141_p1 = scmp.lt.u32.totalorder %s2134_s19, %s3200_s6 }
  0xe7   : > { %p2137_p9 = pnand %p2135_p7, %p2606_p8 }
  0xe9   : > { %p2138_p4 = pneg %p2137_p9 }
  0xeb   : > { %p2143_p3 = pnand %p2141_p1, %p2138_p4 }
  0xed   : > { %2146 = shalt.err (!%p2143_p3)
}
  0xee   : > { %s2147_s24 = scalar_lea.vmem %s2735_s22, 16  ;;  %s2154_s28 = scalar_lea.vmem %s2735_s22, 32 }
  0xef   : > { %p2148_p10 = scmp.ne.s32.totalorder %s2735_s22, %s2147_s24  ;;  %p2155_p13 = scmp.lt.s32.totalorder %s2735_s22, %s2735_s22 }
  0xf0   : > { %p2156_p0 = scmp.lt.s32.totalorder %s2154_s28, %s2147_s24 }
  0xf1   : > { %p2150_p11 = pnand %p2148_p10, %p2606_p8 }
  0xf2   : > { %p2157_p2 = por %p2156_p0, %p2155_p13 }
  0xf3   : > { %p2151_p12 = pneg %p2150_p11 }
  0xf5   : > { %p2158_p5 = pnand %p2157_p2, %p2151_p12 }
  0xf7   : > { %2161 = shalt.err (!%p2158_p5)
}
  0xf8   : > { %1788 = dma.hbm_to_vmem [thread:$0]  (!%p2590_p6), %s3200_s6, 16, %s2735_s22, [#allocation14]  }
  0xf9   : > { %s2460_s0 = smov [#allocation18]   ;;  %s2461_s19 = smov [#allocation21]  }
  0xfa   : > { %s468_s16 = sshll.u32 %s2460_s0, 4  ;;  %s494_s1 = sshll.u32 %s2461_s19, 4  ;;  %s469_s16 = int_to_ptr.vmem [resolvable:$true] %s468_s16  ;;  %s2779_s1 = int_to_ptr.vmem [resolvable:$true] %s494_s1 }
  0xfb   : > { %s3201_s8 = sld [smem:[#allocation49_spill]] }
 0x101   : > { %s2162_s26 = scalar_lea.hbm %s3201_s8, 256 }
 0x102   : > { %p2163_p7 = scmp.ne.s32.totalorder %s3201_s8, %s2162_s26  ;;  %p2169_p1 = scmp.lt.u32.totalorder %s2162_s26, %s3201_s8 }
 0x104   : > { %p2165_p9 = pnand %p2163_p7, %p2606_p8 }
 0x106   : > { %p2166_p4 = pneg %p2165_p9 }
 0x108   : > { %p2171_p3 = pnand %p2169_p1, %p2166_p4 }
 0x10a   : > { %2174 = shalt.err (!%p2171_p3)
}
 0x10b   : > { %s2175_s27 = scalar_lea.vmem %s469_s16, 256  ;;  %p2183_p13 = scmp.lt.s32.totalorder %s469_s16, %s469_s16 }
 0x10c   : > { %p2176_p10 = scmp.ne.s32.totalorder %s469_s16, %s2175_s27  ;;  %p2184_p0 = scmp.lt.s32.totalorder %s2175_s27, %s2175_s27 }
 0x10e   : > { %p2178_p11 = pnand %p2176_p10, %p2606_p8  ;;  %p2185_p2 = por %p2184_p0, %p2183_p13 }
 0x110   : > { %p2179_p12 = pneg %p2178_p11 }
 0x112   : > { %p2186_p5 = pnand %p2185_p2, %p2179_p12 }
 0x114   : > { %2189 = shalt.err (!%p2186_p5)
}
 0x115   : > { %1794 = dma.hbm_to_vmem [thread:$0]  (!%p2590_p6), %s3201_s8, 256, %s469_s16, [#allocation17], %s3174_s20, %s3174_s20, %s3175_s14  }
 0x116   : > { %s2190_s26 = scalar_lea.hbm %s3160_s10, 256 }
 0x117   : > { %p2191_p7 = scmp.ne.s32.totalorder %s3160_s10, %s2190_s26  ;;  %p2197_p1 = scmp.lt.u32.totalorder %s2190_s26, %s3160_s10 }
 0x119   : > { %p2193_p9 = pnand %p2191_p7, %p2606_p8 }
 0x11b   : > { %p2194_p4 = pneg %p2193_p9 }
 0x11d   : > { %p2199_p3 = pnand %p2197_p1, %p2194_p4 }
 0x11f   : > { %2202 = shalt.err (!%p2199_p3)
}
 0x120   : > { %s2203_s16 = scalar_lea.vmem %s2779_s1, 256  ;;  %p2211_p13 = scmp.lt.s32.totalorder %s2779_s1, %s2779_s1 }
 0x121   : > { %p2204_p10 = scmp.ne.s32.totalorder %s2779_s1, %s2203_s16  ;;  %p2212_p0 = scmp.lt.s32.totalorder %s2203_s16, %s2203_s16 }
 0x123   : > { %p2206_p11 = pnand %p2204_p10, %p2606_p8  ;;  %p2213_p2 = por %p2212_p0, %p2211_p13 }
 0x125   : > { %p2207_p12 = pneg %p2206_p11 }
 0x127   : > { %p2214_p5 = pnand %p2213_p2, %p2207_p12 }
 0x129   : > { %2217 = shalt.err (!%p2214_p5)
}
 0x12a   : > { %1800 = dma.hbm_to_vmem [thread:$0]  (!%p2590_p6), %s3160_s10, 256, %s2779_s1, [#allocation20], %s3174_s20, %s3174_s20, %s3175_s14  }
 0x12b   : > { %s2462_s19 = smov [#allocation24]   ;;  %s2463_s21 = smov [#allocation25]  }
 0x12c   : > { %s520_s2 = sshll.u32 %s2462_s19, 4  ;;  %s533_s26 = sshll.u32 %s2463_s21, 4  ;;  %s521_s2 = int_to_ptr.vmem [resolvable:$true] %s520_s2  ;;  %s2828_s26 = int_to_ptr.vmem [resolvable:$true] %s533_s26 }
 0x12d   : > { %s2218_s3 = scalar_lea.hbm %s3162_s12, 256 }
 0x12e   : > { %p2219_p7 = scmp.ne.s32.totalorder %s3162_s12, %s2218_s3  ;;  %p2225_p1 = scmp.lt.u32.totalorder %s2218_s3, %s3162_s12 }
 0x130   : > { %p2221_p9 = pnand %p2219_p7, %p2606_p8 }
 0x132   : > { %p2222_p4 = pneg %p2221_p9 }
 0x134   : > { %p2227_p3 = pnand %p2225_p1, %p2222_p4 }
 0x136   : > { %2230 = shalt.err (!%p2227_p3)
}
 0x137   : > { %s2231_s0 = scalar_lea.vmem %s521_s2, 256  ;;  %p2239_p13 = scmp.lt.s32.totalorder %s521_s2, %s521_s2 }
 0x138   : > { %p2232_p10 = scmp.ne.s32.totalorder %s521_s2, %s2231_s0  ;;  %p2240_p0 = scmp.lt.s32.totalorder %s2231_s0, %s2231_s0 }
 0x13a   : > { %p2234_p11 = pnand %p2232_p10, %p2606_p8  ;;  %p2241_p2 = por %p2240_p0, %p2239_p13 }
 0x13c   : > { %p2235_p12 = pneg %p2234_p11 }
 0x13e   : > { %p2242_p5 = pnand %p2241_p2, %p2235_p12 }
 0x140   : > { %2245 = shalt.err (!%p2242_p5)
}
 0x141   : > { %1806 = dma.hbm_to_vmem [thread:$0]  (!%p2590_p6), %s3162_s12, 256, %s521_s2, [#allocation23], %s3174_s20, %s3174_s20, %s3175_s14  }
 0x142   : > { %s2246_s3 = scalar_lea.hbm %s3163_s13, 256 }
 0x143   : > { %p2247_p7 = scmp.ne.s32.totalorder %s3163_s13, %s2246_s3  ;;  %p2253_p1 = scmp.lt.u32.totalorder %s2246_s3, %s3163_s13 }
 0x145   : > { %p2249_p9 = pnand %p2247_p7, %p2606_p8 }
 0x147   : > { %p2250_p4 = pneg %p2249_p9 }
 0x149   : > { %p2255_p3 = pnand %p2253_p1, %p2250_p4 }
 0x14b   : > { %2258 = shalt.err (!%p2255_p3)
}
 0x14c   : > { %s2259_s2 = scalar_lea.vmem %s2828_s26, 256  ;;  %p2267_p13 = scmp.lt.s32.totalorder %s2828_s26, %s2828_s26 }
 0x14d   : > { %p2260_p10 = scmp.ne.s32.totalorder %s2828_s26, %s2259_s2  ;;  %p2268_p0 = scmp.lt.s32.totalorder %s2259_s2, %s2259_s2 }
 0x14f   : > { %p2262_p11 = pnand %p2260_p10, %p2606_p8  ;;  %p2269_p2 = por %p2268_p0, %p2267_p13 }
 0x151   : > { %p2263_p12 = pneg %p2262_p11 }
 0x153   : > { %p2270_p5 = pnand %p2269_p2, %p2263_p12 }
 0x155   : > { %2273 = shalt.err (!%p2270_p5)
}
 0x156   : > { %s3202_s23 = sld [smem:[#allocation39_spill]]  ;;  %s1560_s25 = sadd.s32 4294967294, %s2448_s18  }
 0x157   : > { %1809 = dma.hbm_to_vmem [thread:$0]  (!%p2590_p6), %s3163_s13, 256, %s2828_s26, [#allocation26], %s3174_s20, %s3174_s20, %s3175_s14  }
 0x158   : > { %s51_s21 = sadd.s32 1, %s2444_s17  ;;  %s60_s24 = sadd.s32 1, %s2436_s15 }
 0x159   : > { %p53_p8 = scmp.ge.s32.totalorder %s51_s21, 2  ;;  %p67_p7 = scmp.ne.s32.totalorder %s2436_s15, %s2432_s30 }
 0x15a   : > { %p68_p9 = scmp.eq.s32.totalorder %s2448_s18, 0  ;;  %p73_p1 = scmp.ne.s32.totalorder %s2432_s30, %s2428_s29 }
 0x15b   : > { %s3242_s21 = smov (%p53_p8, %s51_s21), 0  ;;  %p383_p13 = scmp.eq.s32.totalorder %s1560_s25, 1 }
 0x15c   : > { %p2885_p4 = por %p68_p9, %p67_p7  ;;  %s55_s26 = ssub.s32 %s2444_s17, %s3242_s21 }
 0x15d   : > { %p377_p6 = scmp.eq.s32.totalorder %s3202_s23, 1  ;;  %p58_p3 = scmp.eq.s32.totalorder %s55_s26, 0 }
 0x15e   : > { %p3204_p10 = scmp.eq.s32.totalorder %s3202_s23, 0  ;;  %p2907_p0 = por %p383_p13, %p73_p1 }
 0x15f   : > { %p2900_p12 = por %p377_p6, %p67_p7  ;;  %p1833_p2 = scmp.lt.s32.totalorder %s2448_s18, 2 }
 0x160   : > { %p2896_p11 = por %p3204_p10, %p73_p1  ;;  %s2913_s1 = sand.u32 1, %s2436_s15  }
 0x161   : > { %s3206_s22 = scalar_select %p2900_p12, 1, 0 }
 0x162   : > { %s2905_s16 = scalar_select %p58_p3, %s2436_s15, %s60_s24  }
 0x163   : > { %s3207_s27 = scalar_select %p2907_p0, 1, 0 }
 0x164   : > { %s1576_s2 = sshll.u32 %s2444_s17, 6  ;;  %s1575_s0 = sshll.u32 %s2913_s1, 2 }
 0x165   : > { %s3208_s26 = sld [smem:[#allocation41_spill]]  ;;  %s551_s25 = scalar_lea.vmem [#allocation4], %s1575_s0 }
 0x166   : > { %s559_s24 = sshll.u32 %s551_s25, 4  ;;  %p2924_p5 = pnand %p1833_p2, %p2885_p4  ;;  %s2928_s24 = int_to_ptr.vmem [resolvable:$true] %s559_s24 }
 0x167   : > { %s548_s5 = scalar_lea.sflag [#allocation5], %s2913_s1 }
 0x168   : > { %p2276_p7 = pneg %p2924_p5 }
 0x16b   : > { %s2920_s20 = scalar_lea.hbm %s3208_s26, %s1576_s2  ;;  %s2279_s0 = scalar_lea.hbm %s3208_s26, 128 }
 0x16c   : > { %s2274_s19 = scalar_lea.hbm %s2920_s20, 64  ;;  %p2280_p4 = scmp.lt.u32.totalorder %s2920_s20, %s3208_s26 }
 0x16d   : > { %p2275_p8 = scmp.ne.s32.totalorder %s2920_s20, %s2274_s19  ;;  %p2281_p6 = scmp.lt.u32.totalorder %s2279_s0, %s2274_s19 }
 0x16e   : > { %p2283_p10 = scmp.lt.u32.totalorder %s2274_s19, %s2920_s20 }
 0x16f   : > { %p2277_p9 = pnand %p2276_p7, %p2275_p8  ;;  %p2282_p3 = por %p2281_p6, %p2280_p4 }
 0x171   : > { %p2278_p1 = pneg %p2277_p9  ;;  %p2284_p13 = por %p2283_p10, %p2282_p3 }
 0x173   : > { %p2285_p2 = pnand %p2284_p13, %p2278_p1 }
 0x175   : > { %2288 = shalt.err (!%p2285_p2)
}
 0x176   : > { %s2289_s4 = scalar_lea.vmem %s2928_s24, 64  ;;  %s2464_s2 = smov [#allocation4]  }
 0x177   : > { %p2290_p8 = scmp.ne.s32.totalorder %s2928_s24, %s2289_s4  ;;  %s2294_s28 = sshll.u32 %s2464_s2, 4  ;;  %s2295_s28 = int_to_ptr.vmem [resolvable:$false] %s2294_s28 }
 0x178   : > { %s2296_s23 = scalar_lea.vmem %s2295_s28, 128  ;;  %p2297_p12 = scmp.lt.s32.totalorder %s2928_s24, %s2295_s28 }
 0x179   : > { %p2292_p9 = pnand %p2290_p8, %p2276_p7  ;;  %p2298_p4 = scmp.lt.s32.totalorder %s2296_s23, %s2289_s4 }
 0x17b   : > { %p2293_p0 = pneg %p2292_p9  ;;  %p2299_p6 = por %p2298_p4, %p2297_p12 }
 0x17d   : > { %p2300_p3 = pnand %p2299_p6, %p2293_p0 }
 0x17f   : > { %2303 = shalt.err (!%p2300_p3)
}
 0x180   : > { %1813 = dma.hbm_to_vmem [thread:$0]  (!%p2924_p5), %s2920_s20, 64, %s2928_s24, %s548_s5  }
 0x181   : > { %s1632_s19 = sshll.u32 %s2444_s17, 7  ;;  %s3210_s0 = sshll.u32 %s2913_s1, 3 }
 0x182   : > { %s570_s25 = scalar_lea.vmem [#allocation7], %s3210_s0  ;;  %s566_s28 = sand.u32 1, %s2448_s18  }
 0x183   : > { %s577_s2 = sshll.u32 %s570_s25, 4  ;;  %s3211_s6 = sld [smem:[#allocation42_spill]]  ;;  %s2960_s2 = int_to_ptr.vmem [resolvable:$true] %s577_s2 }
 0x184   : > { %s2968_s8 = scalar_lea.sflag [#allocation8], %s566_s28 }
 0x189   : > { %s2966_s7 = scalar_lea.hbm %s3211_s6, %s1632_s19  ;;  %s2309_s1 = scalar_lea.hbm %s3211_s6, 256 }
 0x18a   : > { %s2304_s9 = scalar_lea.hbm %s2966_s7, 128  ;;  %p2310_p10 = scmp.lt.u32.totalorder %s2966_s7, %s3211_s6 }
 0x18b   : > { %p2305_p12 = scmp.ne.s32.totalorder %s2966_s7, %s2304_s9  ;;  %p2311_p13 = scmp.lt.u32.totalorder %s2309_s1, %s2304_s9 }
 0x18c   : > { %p2313_p8 = scmp.lt.u32.totalorder %s2304_s9, %s2966_s7 }
 0x18d   : > { %p2307_p0 = pnand %p2305_p12, %p2276_p7  ;;  %p2312_p2 = por %p2311_p13, %p2310_p10 }
 0x18f   : > { %p2308_p1 = pneg %p2307_p0  ;;  %p2314_p9 = por %p2313_p8, %p2312_p2 }
 0x191   : > { %p2315_p4 = pnand %p2314_p9, %p2308_p1 }
 0x193   : > { %2318 = shalt.err (!%p2315_p4)
}
 0x194   : > { %s2319_s19 = scalar_lea.vmem %s2960_s2, 128  ;;  %s2465_s25 = smov [#allocation7]  }
 0x195   : > { %p2320_p6 = scmp.ne.s32.totalorder %s2960_s2, %s2319_s19  ;;  %s2324_s28 = sshll.u32 %s2465_s25, 4  ;;  %s2325_s28 = int_to_ptr.vmem [resolvable:$false] %s2324_s28 }
 0x196   : > { %s2326_s4 = scalar_lea.vmem %s2325_s28, 256  ;;  %p2327_p0 = scmp.lt.s32.totalorder %s2960_s2, %s2325_s28 }
 0x197   : > { %p2322_p3 = pnand %p2320_p6, %p2276_p7  ;;  %p2328_p10 = scmp.lt.s32.totalorder %s2326_s4, %s2319_s19 }
 0x199   : > { %p2323_p12 = pneg %p2322_p3  ;;  %p2329_p13 = por %p2328_p10, %p2327_p0 }
 0x19b   : > { %p2330_p2 = pnand %p2329_p13, %p2323_p12 }
 0x19d   : > { %2333 = shalt.err (!%p2330_p2)
}
 0x19e   : > { %s3212_s9 = smov 4   ;;  %s3213_s23 = smov 64  }
 0x19f   : > { %1816 = dma.hbm_to_vmem [thread:$0]  (!%p2924_p5), %s2966_s7, 128, %s2960_s2, %s2968_s8, %s3213_s23, %s3213_s23, %s3212_s9  }
 0x1a0   : > { %s3214_s5 = sld [smem:[#allocation40_spill]] }
 0x1a6   : > { %p3215_p7 = scmp.ne.s32.totalorder %s3214_s5, 0 }
 0x1a7   : > { %s3000_s20 = sand.u32 (!%p3215_p7), 1, %s2432_s30  }
 0x1a8   : > { %589 = sbr.rel (%p3215_p7) target bundleno = 2972 (0xb9c), region = 76  ;;  %s1581_s1 = sshll.u32 (!%p3215_p7), %s3000_s20, 2 }
 0x1a9   : > { %s592_s24 = scalar_lea.sflag (!%p3215_p7), [#allocation5], %s3000_s20  ;;  %s595_s14 = scalar_lea.vmem (!%p3215_p7), [#allocation4], %s1581_s1 }
 0x1af   : > { %2387 = dma.done.wait (%p2896_p11), %s592_s24, 64  }
 0x1b0   : > { %2389 = vsyncadd (%p2896_p11), %s592_s24, 4294967232  ;;  %s3216_s7 = sld [smem:[#allocation39_spill]]  ;;  %s1582_s2 = sshll.u32 %s3000_s20, 3 }
 0x1b1   : > { %s604_s19 = scalar_lea.vmem [#allocation7], %s1582_s2 }
 0x1b6   : > { %s600_s8 = sand.u32 1, %s3216_s7  }
 0x1b7   : > { %s601_s0 = scalar_lea.sflag [#allocation8], %s600_s8 }
 0x1b8   : > { %2391 = dma.done.wait (%p2896_p11), %s601_s0, 128  }
 0x1b9   : > { %2393 = vsyncadd (%p2896_p11), %s601_s0, 4294967168  ;;  %p3217_p5 = scmp.eq.s32.totalorder %s3216_s7, 0 }
 0x1bb   : > { %2395 = dma.done.wait (%p3217_p5), [#allocation8], 32   ;;  %p3218_p1 = pmov %p3217_p5 }
 0x1bd   : > { %2397 = vsyncadd (%p3218_p1), [#allocation8], 4294967264  ;;  %p3219_p8 = pmov %p3218_p1 }
 0x1be   : > { %p3220_p9 = pmov %p3218_p1 }
 0x1bf   : > { %2399 = dma.done.wait (%p3219_p8), [#allocation11], 80  }
 0x1c0   : > { %2401 = vsyncadd (%p3220_p9), [#allocation11], 4294967216  ;;  %p3221_p4 = pmov %p3218_p1 }
 0x1c1   : > { %p3222_p6 = pmov %p3218_p1 }
 0x1c2   : > { %2403 = dma.done.wait (%p3221_p4), [#allocation14], 80  }
 0x1c3   : > { %2405 = vsyncadd (%p3222_p6), [#allocation14], 4294967216  ;;  %p3223_p11 = pmov %p3218_p1 }
 0x1c4   : > { %p3224_p3 = pmov %p3218_p1 }
 0x1c5   : > { %2407 = dma.done.wait (%p3223_p11), [#allocation17], 272  }
 0x1c6   : > { %2409 = vsyncadd (%p3224_p3), [#allocation17], 4294967024  ;;  %p3225_p12 = pmov %p3218_p1 }
 0x1c7   : > { %p3226_p0 = pmov %p3218_p1 }
 0x1c8   : > { %2411 = dma.done.wait (%p3225_p12), [#allocation20], 512  }
 0x1c9   : > { %2413 = vsyncadd (%p3226_p0), [#allocation20], 4294966784  ;;  %p3227_p10 = pmov %p3226_p0 }
 0x1ca   : > { %p3228_p13 = pmov %p3226_p0 }
 0x1cb   : > { %2415 = dma.done.wait (%p3227_p10), [#allocation23], 512  }
 0x1cc   : > { %2417 = vsyncadd (%p3228_p13), [#allocation23], 4294966784  ;;  %p3229_p2 = pmov %p3226_p0 }
 0x1cd   : > { %p3230_p7 = pmov %p3226_p0 }
 0x1ce   : > { %2419 = dma.done.wait (%p3229_p2), [#allocation26], 256  }
 0x1cf   : > { %2421 = vsyncadd (%p3230_p7), [#allocation26], 4294967040  ;;  %v1634_v0 = vld [vmem:[%s604_s19] sm:$0xff]   ;;  %vm713_vm0 = vcmask 261120   ;;  %v828_v1 = vld [vmem:[%s595_s14] sm:$0xf] }
 0x1d0   : > { %v1635_v2 = vunpack.c.l.bf16 %v1634_v0  ;;  %v829_v3 = vunpack.c.l.bf16 %v828_v1  ;;  %v1636_v4 = vunpack.c.h.bf16 %v1634_v0  ;;  %v1912_v23 = vld [vmem:[#allocation18] sm:$0xff]   ;;  %v1913_v24 = vld [vmem:[#allocation19] sm:$0xff]   ;;  %v2466_v25 = vmov 0.0   ;;  %v1914_v26 = vld [vmem:[#allocation18 + $0x8] sm:$0xff]   ;;  %s2468_s3 = smov 96   ;;  %s3231_s25 = sld [smem:[#allocation38_spill]] }
 0x1d1   : > { %1659 = vmatprep.subr.bf16.mxu0 %v2466_v25  ;;  %1667 = vmatprep.subr.bf16.mxu1 %v2466_v25  ;;  %v1915_v27 = vld [vmem:[#allocation19 + $0x8] sm:$0xff]   ;;  %vm2467_vm1 = vmmov 0   ;;  %v1596_v39 = vld [vmem:[#allocation9] ss:$0 sm:$0xff]  ;;  %v1602_v41 = vld [vmem:[#allocation10] ss:$0 sm:$0xff] }
 0x1d2   : > { %v714_v5 = vsel %vm713_vm0, %v1635_v2, 0.0  ;;  %v833_v6 = vsel %vm713_vm0, %v829_v3, 0.0  ;;  %v717_v7 = vsel %vm713_vm0, %v1636_v4, 0.0  ;;  %1660 = vmatpush3.bf16.msra.mxu0 %v1912_v23  ;;  %1668 = vmatpush3.bf16.msra.mxu1 %v1913_v24  ;;  %v1603_v46 = vld [vmem:[#allocation10 + $0x1] ss:$0 sm:$0xff]  ;;  %vm971_vm2 = vcmask 130048  }
 0x1d3   : > { %715 = vadd.xlane.f32.xlu0 %v714_v5  ;;  %834 = vadd.xlane.f32.xlu1 %v833_v6  ;;  %v1597_v47 = vld [vmem:[#allocation9 + $0x1] ss:$0 sm:$0xff]  ;;  %v1598_v56 = vld [vmem:[#allocation12] ss:$0 sm:$0xff]  ;;  %s701_s4 = scalar_lea.vmem [#allocation27], %s1581_s1  ;;  %vm1325_vm3 = vcmask 125952  }
 0x1d4   : > { %1661 = vmatprep.subr.bf16.mxu0 %v2466_v25  ;;  %1669 = vmatprep.subr.bf16.mxu1 %v2466_v25  ;;  %s1342_s9 = sshll.u32 %s701_s4, 4  ;;  %s3232_s24 = sld [smem:[#allocation51_spill]]  ;;  %s3103_s9 = int_to_ptr.vmem [resolvable:$true] %s1342_s9 }
 0x1d5   : > { %1663 = vmatprep.mubr.msk.bf16.mxu0 %vm2467_vm1, %v2466_v25  ;;  %1671 = vmatprep.mubr.msk.bf16.mxu1 %vm2467_vm1, %v2466_v25  ;;  %s1328_s7 = scalar_lea.sflag [#allocation6], %s3000_s20  ;;  %s2334_s1 = scalar_lea.vmem %s3103_s9, 64 }
 0x1d6   : > { %1662 = vmatpush3.bf16.msra.mxu0 %v1914_v26  ;;  %1670 = vmatpush3.bf16.msra.mxu1 %v1915_v27  ;;  %v1917_v27 = vld [vmem:[#allocation21 + $0x8] sm:$0xff]   ;;  %s1629_s28 = sshll.u32 %s3231_s25, 6  ;;  %p2335_p5 = scmp.ne.s32.totalorder %s3103_s9, %s2334_s1 }
 0x1d7   : > { %718 = vadd.xlane.f32.xlu0 %v717_v7  ;;  %1675 = vmatprep.subr.bf16.mxu0 %v2466_v25  ;;  %p3233_p1 = scmp.ne.s32.totalorder %s3206_s22, 0  ;;  %s2469_s8 = smov [#allocation27]  }
 0x1d8   : > { %1681 = vmatprep.subr.bf16.mxu1 %v2466_v25  ;;  %s2338_s2 = sshll.u32 %s2469_s8, 4  ;;  %s2339_s2 = int_to_ptr.vmem [resolvable:$false] %s2338_s2 }
 0x1d9   : > { %p2336_p8 = pnand %p2335_p5, %p3233_p1  ;;  %s2340_s0 = scalar_lea.vmem %s2339_s2, 128 }
 0x1da   : > { %s3101_s14 = scalar_lea.hbm %s3232_s24, %s1629_s28  ;;  %p2341_p4 = scmp.lt.s32.totalorder %s3103_s9, %s2339_s2 }
 0x1db   : > { %p2337_p9 = pneg %p2336_p8  ;;  %p2342_p6 = scmp.lt.s32.totalorder %s2340_s0, %s2334_s1 }
 0x1dd   : > { %p2343_p11 = por %p2342_p6, %p2341_p4 }
 0x1df   : > { %p2344_p3 = pnand %p2343_p11, %p2337_p9 }
 0x260   : > { %v716_v8 = vpop.xlane.xlu0 %715  ;;  %v835_v9 = vpop.xlane.xlu1 %834 }
 0x261   : > { %v721_v10 = vmul.f32 0.03125, %v716_v8  ;;  %v837_v11 = vmul.f32 0.03125, %v835_v9 }
 0x263   : > { %v723_v12 = vsub.f32 %v1635_v2, %v721_v10  ;;  %v838_v13 = vsub.f32 %v829_v3, %v837_v11  ;;  %v1604_v3 = vld [vmem:[#allocation13] ss:$0 sm:$0xff] }
 0x264   : > { %v719_v14 = vpop.xlane.xlu0 %718 }
 0x265   : > { %v722_v15 = vmul.f32 0.03125, %v719_v14  ;;  %v725_v16 = vmul.f32 %v723_v12, %v723_v12  ;;  %v839_v17 = vmul.f32 %v838_v13, %v838_v13 }
 0x267   : > { %v724_v18 = vsub.f32 %v1636_v4, %v722_v15  ;;  %v727_v19 = vsel %vm713_vm0, %v725_v16, 0.0  ;;  %v840_v20 = vsel %vm713_vm0, %v839_v17, 0.0 }
 0x268   : > { %728 = vadd.xlane.f32.xlu1 %v727_v19 }
 0x269   : > { %v726_v21 = vmul.f32 %v724_v18, %v724_v18 }
 0x26b   : > { %v730_v22 = vsel %vm713_vm0, %v726_v21, 0.0  ;;  %v1916_v21 = vld [vmem:[#allocation21] sm:$0xff]  }
 0x26c   : > { %841 = vadd.xlane.f32.xlu1 %v840_v20  ;;  %731 = vadd.xlane.f32.xlu0 %v730_v22 }
 0x2f5   : > { %v729_v28 = vpop.xlane.xlu1 %728 }
 0x2f6   : > { %v733_v29 = vmul.f32 0.03125, %v729_v28 }
 0x2f8   : > { %v735_v30 = vadd.f32 1e-05, %v733_v29 }
 0x2f9   : > { %v842_v31 = vpop.xlane.xlu1 %841  ;;  %v732_v32 = vpop.xlane.xlu0 %731 }
 0x2fa   : > { %1924 = vrsqrt.f32 %v735_v30  ;;  %v843_v33 = vmul.f32 0.03125, %v842_v31  ;;  %v734_v34 = vmul.f32 0.03125, %v732_v32 }
 0x2fc   : > { %v844_v35 = vadd.f32 1e-05, %v843_v33  ;;  %v736_v36 = vadd.f32 1e-05, %v734_v34  ;;  %v1610_v33 = vld [vmem:[#allocation13 + $0x1] ss:$0 sm:$0xff] }
 0x2fe   : > { %1926 = vrsqrt.f32 %v844_v35 }
 0x2ff   : > { %1928 = vrsqrt.f32 %v736_v36 }
 0x304   : > { %v1925_v37 = vpop.eup %1924 }
 0x305   : > { %v739_v38 = vmul.f32 %v1925_v37, %v723_v12 }
 0x307   : > { %v745_v45 = vmul.f32 %v1596_v39, %v739_v38 }
 0x308   : > { %v1927_v40 = vpop.eup %1926 }
 0x309   : > { %v1929_v42 = vpop.eup %1928  ;;  %v846_v43 = vmul.f32 %v1927_v40, %v838_v13  ;;  %v751_v51 = vadd.f32 %v1597_v47, %v745_v45  ;;  %v1918_v45 = vld [vmem:[#allocation22] sm:$0xff]  }
 0x30a   : > { %v740_v44 = vmul.f32 %v1929_v42, %v724_v18 }
 0x30b   : > { %v851_v48 = vmul.f32 %v1602_v41, %v846_v43 }
 0x30c   : > { %v746_v49 = vmul.f32 %v1596_v39, %v740_v44 }
 0x30d   : > { %v856_v50 = vadd.f32 %v1603_v46, %v851_v48  ;;  %v1919_v46 = vld [vmem:[#allocation22 + $0x8] sm:$0xff]  }
 0x30e   : > { %v752_v52 = vadd.f32 %v1597_v47, %v746_v49 }
 0x30f   : > { %v857_v53 = vpack.c.bf16 %v856_v50, %v856_v50 }
 0x310   : > { %v753_v54 = vpack.c.bf16 %v752_v52, %v751_v51  ;;  %v1614_v51 = vld [vmem:[#allocation10 + $0x2] ss:$0 sm:$0xff] }
 0x311   : > { %1672 = vmatmul.mubr.msk.bf16.vlgmr.msra.gmra.mrb[0].mxu1 %vm713_vm0, %v857_v53  ;;  %v1615_v53 = vld [vmem:[#allocation10 + $0x3] ss:$0 sm:$0xff] }
 0x312   : > { %1664 = vmatmul.mubr.msk.bf16.vlgmr.msra.gmra.mrb[0].mxu0 %vm713_vm0, %v753_v54  ;;  %1683 = vmatprep.mubr.msk.bf16.mxu1 %vm2467_vm1, %v2466_v25 }
 0x313   : > { %1677 = vmatprep.mubr.msk.bf16.mxu0 %vm2467_vm1, %v2466_v25 }
 0x3e4   : > { %v916_v55 = vpop.f32.mrb[0].mxu1 }
 0x3e5   : > { %v814_v57 = vpop.f32.mrb[0].mxu0  ;;  %v1673_v58 = vpop.f32.mrb[1].mxu1  ;;  %v917_v4 = vadd.f32 %v1604_v3, %v916_v55 }
 0x3e6   : > { %v1665_v59 = vpop.f32.mrb[1].mxu0  ;;  %v919_v60 = vpop.f32.mrb[2].mxu1  ;;  %v815_v63 = vadd.f32 %v1598_v56, %v814_v57  ;;  %v1920_v57 = vld [vmem:[#allocation24] sm:$0xff]   ;;  %v1921_v58 = vld [vmem:[#allocation24 + $0x8] sm:$0xff]  }
 0x3e7   : > { %v817_v61 = vpop.f32.mrb[2].mxu0  ;;  %v1674_v62 = vpop.f32.mrb[3].mxu1  ;;  %v922_v7 = vmul.f32 0.17677669, %v917_v4  ;;  %v1616_v59 = vld [vmem:[#allocation15] ss:$0 sm:$0xff] }
 0x3e8   : > { %v818_v0 = vadd.f32 %v1598_v56, %v817_v61  ;;  %v1666_v1 = vpop.f32.mrb[3].mxu0 }
 0x3e9   : > { %v923_v8 = vpack.c.bf16 %v922_v7, %v922_v7  ;;  %v1922_v7 = vld [vmem:[#allocation25] sm:$0xff]  }
 0x3ea   : > { %v821_v2 = vpack.c.bf16 %v818_v0, %v815_v63 }
 0x3ec   : > { %822 = vst.msk [vmem:[#allocation2] sm:$0xff] %vm713_vm0, %v821_v2 }
 0x3f3   : > { %v924_v5 = vld [vmem:[#allocation2] sm:$0xff] }
 0x3f4   : > { %v929_v6 = vsel %vm713_vm0, %v924_v5, 0 }
 0x3f5   : > { %1676 = vmatpush3.bf16.xpose.msra.mxu0 %v929_v6 }
 0x3f6   : > { %1687 = vmatprep.subr.bf16.mxu0 %v2466_v25 }
 0x3fc   : > { %1678 = vmatmul.mubr.msk.bf16.vlgmr.msra.gmra.mrb[4].mxu0 %vm713_vm0, %v923_v8  ;;  %v1923_v8 = vld [vmem:[#allocation25 + $0x8] sm:$0xff]  }
 0x3fd   : > { %1691 = vmatprep.mubr.msk.bf16.mxu0 %vm2467_vm1, %v2466_v25  ;;  %1688 = vmatpush3.bf16.msra.mxu0 %v1916_v21 }
 0x3fe   : > { %1689 = vmatprep.subr.bf16.mxu0 %v2466_v25 }
 0x401   : > { %1690 = vmatpush3.bf16.msra.mxu0 %v1917_v27 }
 0x402   : > { %1703 = vmatprep.subr.bf16.mxu0 %v2466_v25 }
 0x4cf   : > { %v965_v9 = vpop.f32.mrb[4].mxu0 }
 0x4d0   : > { %v1679_v10 = vpop.f32.mrb[5].mxu0  ;;  %v972_v11 = vsel %vm971_vm2, %v965_v9, -inf }
 0x4d1   : > { %973 = vmax.xlane.f32.xlu0 %v972_v11  ;;  %v968_v12 = vpop.f32.mrb[6].mxu0 }
 0x4d2   : > { %v1680_v13 = vpop.f32.mrb[7].mxu0 }
 0x4e7   : > { %824 = vrot.lane.b32.xlu0 %v821_v2, %s2468_s3 }
 0x55e   : > { %v974_v14 = vpop.xlane.xlu0 %973 }
 0x55f   : > { %v975_v15 = vsub.f32 %v965_v9, %v974_v14  ;;  %v1620_v9 = vld [vmem:[#allocation13 + $0x2] ss:$0 sm:$0xff] }
 0x561   : > { %v976_v16 = vmul.f32 1.442695, %v975_v15 }
 0x562   : > { %v825_v17 = vpop.permute.xlu0 %824 }
 0x563   : > { %1930 = vpow2.f32 %v976_v16  ;;  %827 = vst.msk [vmem:[#allocation3] sm:$0xff] %vm713_vm0, %v825_v17  ;;  %v1624_v17 = vld [vmem:[#allocation16] ss:$0 sm:$0xff] }
 0x56a   : > { %v984_v18 = vld [vmem:[#allocation3] sm:$0xff] }
 0x56b   : > { %1682 = vmatpush3.bf16.msra.mxu1 %v984_v18 }
 0x56c   : > { %1695 = vmatprep.subr.bf16.mxu1 %v2466_v25 }
 0x56d   : > { %v1931_v19 = vpop.eup %1930 }
 0x56e   : > { %v978_v20 = vsel %vm971_vm2, %v1931_v19, 0.0 }
 0x56f   : > { %979 = vadd.xlane.f32.xlu1 %v978_v20 }
 0x5fc   : > { %v980_v22 = vpop.xlane.xlu1 %979 }
 0x5fd   : > { %1932 = vrcp.f32 %v980_v22 }
 0x607   : > { %v1933_v23 = vpop.eup %1932 }
 0x608   : > { %v982_v24 = vmul.f32 %v1933_v23, %v1931_v19 }
 0x60a   : > { %v983_v26 = vpack.c.bf16 %v982_v24, %v982_v24 }
 0x60c   : > { %1684 = vmatmul.mubr.msk.bf16.vlgmr.msra.gmra.mrb[4].mxu1 %vm971_vm2, %v983_v26 }
 0x60d   : > { %1699 = vmatprep.mubr.msk.bf16.mxu1 %vm2467_vm1, %v2466_v25  ;;  %1696 = vmatpush3.bf16.msra.mxu1 %v1918_v45 }
 0x60e   : > { %1697 = vmatprep.subr.bf16.mxu1 %v2466_v25 }
 0x611   : > { %1698 = vmatpush3.bf16.msra.mxu1 %v1919_v46 }
 0x612   : > { %1711 = vmatprep.subr.bf16.mxu1 %v2466_v25 }
 0x6df   : > { %v1022_v28 = vpop.f32.mrb[4].mxu1 }
 0x6e0   : > { %v1028_v29 = vpack.c.bf16 %v1022_v28, %v1022_v28  ;;  %v1685_v30 = vpop.f32.mrb[5].mxu1 }
 0x6e1   : > { %v1025_v31 = vpop.f32.mrb[6].mxu1 }
 0x6e2   : > { %v1686_v32 = vpop.f32.mrb[7].mxu1  ;;  %1692 = vmatmul.mubr.msk.bf16.vlgmr.msra.gmra.mrb[8].mxu0 %vm713_vm0, %v1028_v29 }
 0x6e3   : > { %1707 = vmatprep.mubr.msk.bf16.mxu0 %vm2467_vm1, %v2466_v25  ;;  %1704 = vmatpush3.bf16.msra.mxu0 %v1920_v57 }
 0x6e4   : > { %1705 = vmatprep.subr.bf16.mxu0 %v2466_v25 }
 0x6e7   : > { %1706 = vmatpush3.bf16.msra.mxu0 %v1921_v58 }
 0x7b5   : > { %v1087_v34 = vpop.f32.mrb[8].mxu0 }
 0x7b6   : > { %v1088_v35 = vadd.f32 %v1610_v33, %v1087_v34  ;;  %v1693_v36 = vpop.f32.mrb[9].mxu0 }
 0x7b7   : > { %v1090_v37 = vpop.f32.mrb[10].mxu0 }
 0x7b8   : > { %v1694_v38 = vpop.f32.mrb[11].mxu0  ;;  %v1095_v39 = vsel %vm713_vm0, %v1088_v35, 0.0 }
 0x7b9   : > { %1096 = vadd.xlane.f32.xlu1 %v1095_v39 }
 0x846   : > { %v1097_v40 = vpop.xlane.xlu1 %1096 }
 0x847   : > { %v1098_v41 = vmul.f32 0.03125, %v1097_v40 }
 0x849   : > { %v1099_v42 = vsub.f32 %v1088_v35, %v1098_v41 }
 0x84b   : > { %v1100_v43 = vmul.f32 %v1099_v42, %v1099_v42 }
 0x84d   : > { %v1101_v44 = vsel %vm713_vm0, %v1100_v43, 0.0 }
 0x84e   : > { %1102 = vadd.xlane.f32.xlu1 %v1101_v44 }
 0x8db   : > { %v1103_v47 = vpop.xlane.xlu1 %1102 }
 0x8dc   : > { %v1104_v48 = vmul.f32 0.03125, %v1103_v47 }
 0x8de   : > { %v1105_v49 = vadd.f32 1e-05, %v1104_v48 }
 0x8e0   : > { %1934 = vrsqrt.f32 %v1105_v49 }
 0x8ea   : > { %v1935_v50 = vpop.eup %1934 }
 0x8eb   : > { %v1107_v52 = vmul.f32 %v1935_v50, %v1099_v42 }
 0x8ed   : > { %v1112_v54 = vmul.f32 %v1614_v51, %v1107_v52 }
 0x8ef   : > { %v1117_v55 = vadd.f32 %v1615_v53, %v1112_v54 }
 0x8f1   : > { %v1118_v56 = vpack.c.bf16 %v1117_v55, %v1117_v55 }
 0x8f3   : > { %1700 = vmatmul.mubr.msk.bf16.vlgmr.msra.gmra.mrb[8].mxu1 %vm713_vm0, %v1118_v56 }
 0x8f4   : > { %1715 = vmatprep.mubr.msk.bf16.mxu1 %vm2467_vm1, %v2466_v25  ;;  %1712 = vmatpush3.bf16.msra.mxu1 %v1922_v7 }
 0x8f5   : > { %1713 = vmatprep.subr.bf16.mxu1 %v2466_v25 }
 0x8f8   : > { %1714 = vmatpush3.bf16.msra.mxu1 %v1923_v8 }
 0x9c6   : > { %v1179_v60 = vpop.f32.mrb[8].mxu1 }
 0x9c7   : > { %v1180_v61 = vadd.f32 %v1616_v59, %v1179_v60  ;;  %v1701_v62 = vpop.f32.mrb[9].mxu1 }
 0x9c8   : > { %v1182_v63 = vpop.f32.mrb[10].mxu1 }
 0x9c9   : > { %v1187_v0 = vmul.f32 0.70710677, %v1180_v61  ;;  %v1702_v1 = vpop.f32.mrb[11].mxu1  ;;  %v1185_v3 = vmul.f32 0.5, %v1180_v61 }
 0x9cb   : > { %1936 = verf.f32 %v1187_v0 }
 0x9d5   : > { %v1937_v2 = vpop.eup %1936 }
 0x9d6   : > { %v1189_v4 = vadd.f32 1.0, %v1937_v2 }
 0x9d8   : > { %v1190_v5 = vmul.f32 %v1189_v4, %v1185_v3 }
 0x9da   : > { %v1191_v6 = vpack.c.bf16 %v1190_v5, %v1190_v5 }
 0x9dc   : > { %1708 = vmatmul.mubr.msk.bf16.vlgmr.msra.gmra.mrb[12].mxu0 %vm713_vm0, %v1191_v6 }
 0xaaf   : > { %v1250_v10 = vpop.f32.mrb[12].mxu0 }
 0xab0   : > { %v1251_v11 = vadd.f32 %v1620_v9, %v1250_v10  ;;  %v1709_v12 = vpop.f32.mrb[13].mxu0 }
 0xab1   : > { %v1253_v13 = vpop.f32.mrb[14].mxu0 }
 0xab2   : > { %v1256_v14 = vadd.f32 %v1251_v11, %v1088_v35  ;;  %v1710_v15 = vpop.f32.mrb[15].mxu0 }
 0xab4   : > { %v1257_v16 = vpack.c.bf16 %v1256_v14, %v1256_v14 }
 0xab6   : > { %1716 = vmatmul.mubr.msk.bf16.vlgmr.msra.gmra.mrb[12].mxu1 %vm713_vm0, %v1257_v16 }
 0xb89   : > { %v1318_v18 = vpop.f32.mrb[12].mxu1 }
 0xb8a   : > { %v1319_v25 = vadd.f32 %v1624_v17, %v1318_v18  ;;  %v1717_v19 = vpop.f32.mrb[13].mxu1 }
 0xb8b   : > { %v1321_v20 = vpop.f32.mrb[14].mxu1 }
 0xb8c   : > { %v1324_v21 = vpack.c.bf16 %v1319_v25, %v1319_v25  ;;  %v1718_v22 = vpop.f32.mrb[15].mxu1 }
 0xb8e   : > { %1326 = vst.msk [vmem:[%s701_s4] sm:$0xf] %vm1325_vm3, %v1324_v21 }
 0xb8f   : > { %2347 = shalt.err (!%p2344_p3)
}
 0xb90   : > { %s2348_s20 = scalar_lea.hbm %s3101_s14, 64  ;;  %s2352_s25 = scalar_lea.hbm %s3232_s24, 128 }
 0xb91   : > { %p2349_p12 = scmp.ne.s32.totalorder %s3101_s14, %s2348_s20  ;;  %p2353_p13 = scmp.lt.u32.totalorder %s3101_s14, %s3232_s24 }
 0xb92   : > { %p2354_p2 = scmp.lt.u32.totalorder %s2352_s25, %s2348_s20  ;;  %p2356_p5 = scmp.lt.u32.totalorder %s2348_s20, %s3101_s14 }
 0xb93   : > { %p2350_p0 = pnand %p2349_p12, %p3233_p1 }
 0xb94   : > { %p2355_p7 = por %p2354_p2, %p2353_p13 }
 0xb95   : > { %p2351_p10 = pneg %p2350_p0 }
 0xb96   : > { %p2357_p8 = por %p2356_p5, %p2355_p7 }
 0xb98   : > { %p2358_p9 = pnand %p2357_p8, %p2351_p10 }
 0xb9a   : > { %2361 = shalt.err (!%p2358_p9)
}
 0xb9b   : > { %1771 = dma.vmem_to_hbm [thread:$0]  (%p3233_p1), %s3103_s9, 64, %s3101_s14, %s1328_s7  }
 0xb9c PF: > { %s1354_s23 = sand.u32 1, %s2428_s29   ;;  %p3234_p4 = scmp.ne.s32.totalorder %s3207_s27, 0 }
 0xb9d   : > { %p3235_p6 = scmp.ge.s32.totalorder %s2448_s18, 2  ;;  %s1355_s5 = scalar_lea.sflag [#allocation6], %s1354_s23 }
 0xb9f   : > { %p1818_p11 = pnand %p3235_p6, %p3234_p4 }
 0xba1   : > { %2423 = dma.done.wait (!%p1818_p11), %s1355_s5, 64  }
 0xba2   : > { %2425 = vsyncadd (!%p1818_p11), %s1355_s5, 4294967232  ;;  %s39_s18 = sadd.s32 1, %s2448_s18   ;;  %s3236_s29 = smov %s2432_s30 }
 0xba3   : > { %p36_p3 = scmp.ge.s32.totalorder %s39_s18, 4   ;;  %s3237_s30 = smov %s2436_s15 }
 0xba4   : > { %s3238_s15 = smov %s2905_s16  ;;  %s3239_s16 = smov %s2444_s17 }
 0xba5   : > { %s3240_s17 = smov %s3242_s21  ;;  %38 = sbr.rel (!%p36_p3) target bundleno = 26 (0x1a), region = 186 }
 0xbac   :  { %1360 = vsyncpa [#allocation5], 1 }
 0xbad   :  { %1362 = vsyncpa [#allocation5 + $0x1], 1 }
 0xbae   :  { %1363 = vsyncpa [#allocation8], 1 }
 0xbaf   :  { %1365 = vsyncpa [#allocation8 + $0x1], 1 }
 0xbb0   :  { %1366 = vsyncpa [#allocation11], 1 }
 0xbb1   :  { %1367 = vsyncpa [#allocation14], 1 }
 0xbb2   :  { %1368 = vsyncpa [#allocation17], 1 }
 0xbb3   :  { %1369 = vsyncpa [#allocation20], 1 }
 0xbb4   :  { %1370 = vsyncpa [#allocation23], 1 }
 0xbb5   :  { %1371 = vsyncpa [#allocation26], 1 }
 0xbb6   :  { %1372 = vsyncpa [#allocation6], 1 }
 0xbb7   :  { %1374 = vsyncpa [#allocation6 + $0x1], 1 }

</bundles_post_ra>
